<compile_context>
chip_gen: v5e
topology: v5e:2x2
jax: 0.10.0
libtpu: 0.0.40
codegen_flags: <defaults>
</compile_context>

<pallas_src>
import functools
import inspect

import jax
import jax.numpy as jnp
from jax import lax
from jax.experimental import pallas as pl
from jax.experimental.pallas import tpu as pltpu


# ------------------------------ small helpers --------------------------------
def _round_up(x, m):
    return ((x + m - 1) // m) * m


def _pick_tile(dim, target, align):
    """Largest divisor of `dim` that is <= target and a multiple of `align`.
    `dim` is always a multiple of `align` here, so `align` is a valid floor."""
    if dim <= target:
        return dim
    t = target - (target % align)
    while t >= align:
        if dim % t == 0:
            return t
        t -= align
    return dim


def _supports_pipeline_mode():
    try:
        return ("pipeline_mode" in inspect.signature(pl.BlockSpec).parameters
                and hasattr(pl, "Buffered"))
    except (TypeError, ValueError):
        return False


_PIPELINE_MODE_OK = _supports_pipeline_mode()


def _resident_spec(shape, index_map):
    """Single-buffer blocks whose index never changes (weights stay resident in
    VMEM without a second pipeline buffer)."""
    if _PIPELINE_MODE_OK:
        return pl.BlockSpec(shape, index_map, pipeline_mode=pl.Buffered(1))
    return pl.BlockSpec(shape, index_map)


def _vmem_limit(est_bytes):
    return int(min(max(2 * est_bytes + (8 << 20), 32 << 20), 100 << 20))


# ------------------------- tiled GEMM (+bias) kernel --------------------------
def _gemm_bias_kernel(x_ref, w_ref, b_ref, o_ref):
    o_ref[...] = (jnp.dot(x_ref[...], w_ref[...],
                          preferred_element_type=jnp.float32)
                  + b_ref[...]).astype(o_ref.dtype)


def gemm_bias(x, w, b_row, out_dtype=jnp.float32, tm_target=256, tn_target=512):
    """x:[M,K] @ w:[K,N] + b_row:[1,N] -> [M,N]; pads M/N so tiles never blow
    up to a full-extent block (e.g. a 50k-vocab weight slab)."""
    M, K = x.shape
    N = w.shape[1]
    tm = tm_target if M >= tm_target else _round_up(M, 16)
    tn = tn_target if N >= tn_target else _round_up(N, 128)
    m_pad = _round_up(M, tm)
    n_pad = _round_up(N, tn)
    if m_pad != M:
        x = jnp.pad(x, ((0, m_pad - M), (0, 0)))
    if n_pad != N:
        w = jnp.pad(w, ((0, 0), (0, n_pad - N)))
        b_row = jnp.pad(b_row, ((0, 0), (0, n_pad - N)))
    b_row = b_row.astype(jnp.float32)

    est = (2 * tm * K * x.dtype.itemsize + 2 * K * tn * w.dtype.itemsize
           + 2 * tn * 4 + 2 * tm * tn * jnp.dtype(out_dtype).itemsize)

    out = pl.pallas_call(
        _gemm_bias_kernel,
        out_shape=jax.ShapeDtypeStruct((m_pad, n_pad), out_dtype),
        grid_spec=pltpu.PrefetchScalarGridSpec(
            num_scalar_prefetch=0,
            grid=(m_pad // tm, n_pad // tn),
            in_specs=[
                pl.BlockSpec((tm, K), lambda i, j: (i, 0)),
                pl.BlockSpec((K, tn), lambda i, j: (0, j)),
                pl.BlockSpec((1, tn), lambda i, j: (0, j)),
            ],
            out_specs=pl.BlockSpec((tm, tn), lambda i, j: (i, j)),
        ),
        compiler_params=pltpu.CompilerParams(
            dimension_semantics=("parallel", "parallel"),
            vmem_limit_bytes=_vmem_limit(est)),
    )(x, w, b_row)
    if m_pad != M or n_pad != N:
        out = out[:M, :N]
    return out


# ---------------------- fused multi-layer RNN recurrence ----------------------
def _make_rnn_kernel(num_layers, t_blk, seq_len, mask_tail, unroll, cdt):
    def kernel(xp0_ref, h0_ref, wihr_ref, whh_ref, brest_ref,
               y_ref, hlast_ref, h_state, y_buf):
        tb = pl.program_id(1)                       # time-block index

        @pl.when(tb == 0)                           # new batch block: reset h
        def _():
            h_state[...] = h0_ref[...]

        t_base = tb * t_blk

        def step(s, carry):
            valid = (t_base + s) < seq_len          # only used when mask_tail
            # layer 0: input projection (x @ W_ih0^T + biases) was hoisted out
            # of the recurrence into one big GEMM -> xp0.
            h = jnp.tanh(
                xp0_ref[s].astype(jnp.float32)
                + jnp.dot(h_state[0].astype(cdt), whh_ref[0],
                          preferred_element_type=jnp.float32))
            h_state[0] = jnp.where(valid, h, h_state[0]) if mask_tail else h
            # layers 1..L-1: weights stay resident in VMEM, intermediates never
            # leave the kernel.
            for l in range(1, num_layers):
                pre = (jnp.dot(h.astype(cdt), wihr_ref[l - 1],
                               preferred_element_type=jnp.float32)
                       + jnp.dot(h_state[l].astype(cdt), whh_ref[l],
                                 preferred_element_type=jnp.float32)
                       + brest_ref[l - 1])
                h = jnp.tanh(pre)
                h_state[l] = jnp.where(valid, h, h_state[l]) if mask_tail else h
            y_buf[s] = h.astype(cdt)                # time-major VMEM staging
            return carry

        lax.fori_loop(0, t_blk, step, 0, unroll=unroll)

        # Re-layout the staged (t_blk, b_blk, H) slab into the [B, T, H] output
        # block (static copies in VMEM; no HBM transpose round-trip).
        for s in range(t_blk):
            y_ref[:, s, :] = y_buf[s]

        @pl.when(tb == pl.num_programs(1) - 1)
        def _():
            hlast_ref[...] = h_state[...]

    return kernel


def rnn_stack(xp0, h0, wih_rest_t, whh_t, b_rest, *, t_blk, b_blk, seq_len):
    """Fused L-layer tanh RNN.

    xp0:        [T_pad, B_pad, H]  layer-0 pre-activation (time-major, cdt)
    h0:         [L, B_pad, H]      initial hidden state (f32)
    wih_rest_t: [max(L-1,1), H, H] W_ih^T of layers 1..L-1 (cdt)
    whh_t:      [L, H, H]          W_hh^T of all layers (cdt)
    b_rest:     [max(L-1,1), 1, H] (b_ih + b_hh) of layers 1..L-1 (f32)
    returns (y [B_pad, T_pad, H] last-layer outputs, h_last [L, B_pad, H] f32).
    """
    T_pad, B_pad, H = xp0.shape
    L = whh_t.shape[0]
    L1 = wih_rest_t.shape[0]
    cdt = xp0.dtype
    n_bb = B_pad // b_blk
    n_tb = T_pad // t_blk
    mask_tail = (seq_len != T_pad)
    unroll = max(1, min(8, t_blk))
    kernel = _make_rnn_kernel(L, t_blk, seq_len, mask_tail, unroll, cdt)

    ci = jnp.dtype(cdt).itemsize
    est = (2 * t_blk * b_blk * H * ci              # xp0 stream (double-buffered)
           + 2 * b_blk * t_blk * H * ci            # y stream
           + 2 * L * b_blk * H * 4                 # h0
           + (L1 + L) * H * H * ci + L1 * H * 4    # resident weights / biases
           + 2 * L * b_blk * H * 4                 # h_last out
           + L * b_blk * H * 4                     # h_state scratch
           + t_blk * b_blk * H * ci)               # y staging scratch

    return pl.pallas_call(
        kernel,
        out_shape=(jax.ShapeDtypeStruct((B_pad, T_pad, H), cdt),
                   jax.ShapeDtypeStruct((L, B_pad, H), jnp.float32)),
        grid_spec=pltpu.PrefetchScalarGridSpec(
            num_scalar_prefetch=0,
            grid=(n_bb, n_tb),                     # (batch blocks, time blocks)
            in_specs=[
                pl.BlockSpec((t_blk, b_blk, H), lambda b, t: (t, b, 0)),  # xp0
                pl.BlockSpec((L, b_blk, H), lambda b, t: (0, b, 0)),      # h0
                _resident_spec((L1, H, H), lambda b, t: (0, 0, 0)),  # W_ih 1..
                _resident_spec((L, H, H), lambda b, t: (0, 0, 0)),   # W_hh all
                _resident_spec((L1, 1, H), lambda b, t: (0, 0, 0)),  # biases
            ],
            out_specs=[
                pl.BlockSpec((b_blk, t_blk, H), lambda b, t: (b, t, 0)),  # y
                pl.BlockSpec((L, b_blk, H), lambda b, t: (0, b, 0)),      # h_T
            ],
            scratch_shapes=[pltpu.VMEM((L, b_blk, H), jnp.float32),
                            pltpu.VMEM((t_blk, b_blk, H), cdt)],
        ),
        compiler_params=pltpu.CompilerParams(
            dimension_semantics=("parallel", "arbitrary"),  # batch || , time seq
            vmem_limit_bytes=_vmem_limit(est)),
    )(xp0, h0, wih_rest_t, whh_t, b_rest)


# ------------------------------- module forward -------------------------------
def rnn_module_forward(params, input_ids, prev_hidden=None,
                       compute_dtype=jnp.bfloat16):
    """Matches RNNModule.forward (eval): returns (logits [B,T,V], hidden [L,B,H])."""
    emb_table = params["embedding"]                       # [V, E], pad row = 0
    wih0_t, b0 = params["wih0_t"], params["b0"]           # [E,H], [1,H]
    wih_rest_t, whh_t = params["wih_rest_t"], params["whh_t"]
    b_rest = params["b_rest"]
    fc_w_t, fc_b_row = params["fc_w_t"], params["fc_b_row"]

    cdt = jnp.dtype(compute_dtype)
    B, T = input_ids.shape
    E, H = wih0_t.shape
    L = whh_t.shape[0]

    sub = 16 if cdt == jnp.bfloat16 else 8
    H_pad = _round_up(H, 128)                # lane-dense stores / MXU tiles
    B_pad = _round_up(B, sub)
    T_pad = _round_up(T, sub)
    b_blk = _pick_tile(B_pad, 64, sub)
    t_blk = _pick_tile(T_pad, 32, sub)

    def _pad_last2(a, r, c):
        return jnp.pad(a, [(0, 0)] * (a.ndim - 2)
                       + [(0, r - a.shape[-2]), (0, c - a.shape[-1])])

    # zero-padding H keeps results exact: padded pre-activations are 0, tanh(0)=0.
    wih0_p = _pad_last2(wih0_t, E, H_pad).astype(cdt)
    b0_p = _pad_last2(b0, 1, H_pad).astype(jnp.float32)
    wihr_p = _pad_last2(wih_rest_t, H_pad, H_pad).astype(cdt)
    whh_p = _pad_last2(whh_t, H_pad, H_pad).astype(cdt)
    brest_p = _pad_last2(b_rest, 1, H_pad).astype(jnp.float32)
    fcw_p = _pad_last2(fc_w_t, H_pad, fc_w_t.shape[1]).astype(cdt)

    if prev_hidden is None:
        h0 = jnp.zeros((L, B_pad, H_pad), jnp.float32)
    else:
        h0 = _pad_last2(prev_hidden.astype(jnp.float32), B_pad, H_pad)

    # time-major embedding gather (transpose the tiny id matrix, not the
    # activations); padded ids hit the zeroed padding row.
    ids_tm = jnp.pad(jnp.transpose(input_ids), ((0, T_pad - T), (0, B_pad - B)))
    emb_tm = jnp.take(emb_table, ids_tm, axis=0)          # [T_pad, B_pad, E]

    # layer-0 input projection hoisted out of the recurrence: one big GEMM.
    xp0 = gemm_bias(emb_tm.reshape(T_pad * B_pad, E).astype(cdt),
                    wih0_p, b0_p, out_dtype=cdt)
    xp0 = xp0.reshape(T_pad, B_pad, H_pad)

    # fused recurrence; y comes back directly in [B, T, H] layout.
    y, hidden = rnn_stack(xp0, h0, wihr_p, whh_p, brest_p,
                          t_blk=t_blk, b_blk=b_blk, seq_len=T)

    # final FC: one tiled GEMM straight off y (no HBM transpose).
    logits = gemm_bias(y.reshape(B_pad * T_pad, H_pad), fcw_p,
                       fc_b_row.astype(jnp.float32), out_dtype=jnp.float32)
    logits = logits.reshape(B_pad, T_pad, -1)[:B, :T, :]
    hidden = hidden[:, :B, :H]
    return logits, hidden


# ------------------------------- reference (pure JAX) --------------------------
def rnn_module_forward_ref(params, input_ids):
    emb = jnp.take(params["embedding"], input_ids, axis=0)   # [B, T, E]
    B, T, _ = emb.shape
    L, _, H = params["whh_t"].shape
    x = emb
    h_finals = []
    for l in range(L):
        if l == 0:
            w_in, b = params["wih0_t"], params["b0"][0]
        else:
            w_in, b = params["wih_rest_t"][l - 1], params["b_rest"][l - 1, 0]
        w_hh = params["whh_t"][l]
        h = jnp.zeros((B, H), jnp.float32)
        ys = []
        for t in range(T):
            h = jnp.tanh(x[:, t, :] @ w_in + h @ w_hh + b)
            ys.append(h)
        x = jnp.stack(ys, axis=1)
        h_finals.append(h)
    hidden = jnp.stack(h_finals, axis=0)
    logits = x @ params["fc_w_t"] + params["fc_b_row"][0]
    return logits, hidden


# ------------------------------- params ---------------------------------------
def init_params(key, vocab_size, embed_dim, hidden_dim, num_layers,
                pad_token_id=0):
    keys = jax.random.split(key, 3 + 4 * num_layers)
    emb = jax.random.normal(keys[0], (vocab_size, embed_dim), jnp.float32)
    emb = emb.at[pad_token_id].set(0.0)                    # padding_idx row = 0
    bound = float(1.0 / (hidden_dim ** 0.5))

    wih0_t, b0 = None, None
    wih_rest, whh_all, b_rest = [], [], []
    kidx = 1
    for l in range(num_layers):
        in_dim = embed_dim if l == 0 else hidden_dim
        w_ih = jax.random.uniform(keys[kidx + 0], (hidden_dim, in_dim),
                                  jnp.float32, -bound, bound)
        w_hh = jax.random.uniform(keys[kidx + 1], (hidden_dim, hidden_dim),
                                  jnp.float32, -bound, bound)
        b_ih = jax.random.uniform(keys[kidx + 2], (hidden_dim,),
                                  jnp.float32, -bound, bound)
        b_hh = jax.random.uniform(keys[kidx + 3], (hidden_dim,),
                                  jnp.float32, -bound, bound)
        kidx += 4
        if l == 0:
            wih0_t = w_ih.T
            b0 = (b_ih + b_hh).reshape(1, hidden_dim)
        else:
            wih_rest.append(w_ih.T)
            b_rest.append(b_ih + b_hh)
        whh_all.append(w_hh.T)

    if num_layers > 1:
        wih_rest_t = jnp.stack(wih_rest, axis=0)                    # [L-1,H,H]
        b_rest_arr = jnp.stack(b_rest, axis=0).reshape(
            num_layers - 1, 1, hidden_dim)
    else:  # dummies (unused in-kernel when L == 1)
        wih_rest_t = jnp.zeros((1, hidden_dim, hidden_dim), jnp.float32)
        b_rest_arr = jnp.zeros((1, 1, hidden_dim), jnp.float32)
    whh_t = jnp.stack(whh_all, axis=0)                              # [L,H,H]

    fc_w = jax.random.uniform(keys[-2], (vocab_size, hidden_dim),
                              jnp.float32, -bound, bound)
    fc_b = jax.random.uniform(keys[-1], (vocab_size,),
                              jnp.float32, -bound, bound)
    return dict(embedding=emb, wih0_t=wih0_t, b0=b0,
                wih_rest_t=wih_rest_t, whh_t=whh_t, b_rest=b_rest_arr,
                fc_w_t=fc_w.T, fc_b_row=fc_b.reshape(1, -1))


# ------------------------------- main ------------------------------------------
if __name__ == "__main__":
    VOCAB, EMBED, HIDDEN, LAYERS = 64, 32, 32, 3
    B, T = 2, 40   # T=40 exercises multiple time blocks + the tail mask path

    key = jax.random.PRNGKey(0)
    pkey, ikey = jax.random.split(key)
    params = init_params(pkey, VOCAB, EMBED, HIDDEN, LAYERS, pad_token_id=0)
    input_ids = jax.random.randint(ikey, (B, T), 0, VOCAB, dtype=jnp.int32)

    ref_logits, ref_hidden = rnn_module_forward_ref(params, input_ids)

    # 1) exact f32 path: verifies kernel structure / padding / recurrence carry.
    fwd32 = jax.jit(functools.partial(rnn_module_forward, params,
                                      compute_dtype=jnp.float32))
    logits32, hidden32 = fwd32(input_ids)
    jax.block_until_ready((logits32, hidden32))
    assert logits32.shape == (B, T, VOCAB) and hidden32.shape == (LAYERS, B, HIDDEN)
    assert jnp.allclose(logits32, ref_logits, atol=2e-4, rtol=2e-4)
    assert jnp.allclose(hidden32, ref_hidden, atol=2e-4, rtol=2e-4)

    # 2) bf16 production path (bf16 MXU operands, f32 accumulation): compare
    #    against an f32 reference run with bf16-rounded weights; tolerance is
    #    loosened to cover the in-kernel bf16 activation rounding.
    params_bf = jax.tree_util.tree_map(
        lambda a: a.astype(jnp.bfloat16).astype(jnp.float32), params)
    ref_logits_bf, ref_hidden_bf = rnn_module_forward_ref(params_bf, input_ids)
    fwd16 = jax.jit(functools.partial(rnn_module_forward, params,
                                      compute_dtype=jnp.bfloat16))
    logits16, hidden16 = fwd16(input_ids)
    jax.block_until_ready((logits16, hidden16))
    assert logits16.shape == (B, T, VOCAB) and hidden16.shape == (LAYERS, B, HIDDEN)
    assert jnp.allclose(logits16, ref_logits_bf, atol=2e-1, rtol=1e-1)
    assert jnp.allclose(hidden16, ref_hidden_bf, atol=2e-1, rtol=1e-1)

    print("KERNEL_OK")
</pallas_src>

<mosaic_0001>
module attributes {stable_mosaic.version = 11 : i64} {
  func.func @_gemm_bias_kernel(%arg0: i32, %arg1: i32, %arg2: memref<256x32xf32, #tpu.memory_space<vmem>>, %arg3: memref<32x128xf32, #tpu.memory_space<vmem>>, %arg4: memref<1x128xf32, #tpu.memory_space<vmem>>, %arg5: memref<256x128xf32, #tpu.memory_space<vmem>>) attributes {dimension_semantics = [#tpu.dimension_semantics<parallel>, #tpu.dimension_semantics<parallel>], iteration_bounds = array<i64: 2, 1>, scalar_prefetch = 0 : i64, scratch_operands = 0 : i64, tpu.core_type = #tpu.core_type<tc>, window_params = [{transform_indices = @transform_0, window_bounds = array<i64: 256, 32>}, {transform_indices = @transform_1, window_bounds = array<i64: 32, 128>}, {transform_indices = @transform_2, window_bounds = array<i64: 1, 128>}, {transform_indices = @transform_3, window_bounds = array<i64: 256, 128>}]} {
    %c0 = arith.constant 0 : index
    %c0_0 = arith.constant 0 : index
    %0 = vector.load %arg2[%c0, %c0_0] : memref<256x32xf32, #tpu.memory_space<vmem>>, vector<256x32xf32>
    %c0_1 = arith.constant 0 : index
    %c0_2 = arith.constant 0 : index
    %1 = vector.load %arg3[%c0_1, %c0_2] : memref<32x128xf32, #tpu.memory_space<vmem>>, vector<32x128xf32>
    %cst = arith.constant dense<0.000000e+00> : vector<256x128xf32>
    %2 = tpu.matmul %0, %1, %cst {dimension_numbers = #tpu.dot_dimension_numbers<[1], [0], [0], [1], [0, 0, 1, 1], [], []>} : vector<256x32xf32>, vector<32x128xf32>, vector<256x128xf32> -> vector<256x128xf32>
    %c0_3 = arith.constant 0 : index
    %c0_4 = arith.constant 0 : index
    %3 = vector.load %arg4[%c0_3, %c0_4] : memref<1x128xf32, #tpu.memory_space<vmem>>, vector<1x128xf32>
    %4 = vector.broadcast %3 : vector<1x128xf32> to vector<256x128xf32>
    %5 = arith.addf %2, %4 : vector<256x128xf32>
    %c0_5 = arith.constant 0 : index
    %c0_6 = arith.constant 0 : index
    %6 = vector.load %arg5[%c0_5, %c0_6] : memref<256x128xf32, #tpu.memory_space<vmem>>, vector<256x128xf32>
    tpu.vector_store %arg5[%c0_5, %c0_6], %5 {strides = array<i32>} : memref<256x128xf32, #tpu.memory_space<vmem>>, vector<256x128xf32>,
    return
  }
  func.func @transform_0(%arg0: i32, %arg1: i32) -> (i32, i32) {
    %c0_i32 = arith.constant 0 : i32
    %c0_i32_0 = arith.constant 0 : i32
    return %arg0, %c0_i32 : i32, i32
  }
  func.func @transform_1(%arg0: i32, %arg1: i32) -> (i32, i32) {
    %c0_i32 = arith.constant 0 : i32
    %c0_i32_0 = arith.constant 0 : i32
    return %c0_i32, %arg1 : i32, i32
  }
  func.func @transform_2(%arg0: i32, %arg1: i32) -> (i32, i32) {
    %c0_i32 = arith.constant 0 : i32
    %c0_i32_0 = arith.constant 0 : i32
    return %c0_i32, %arg1 : i32, i32
  }
  func.func @transform_3(%arg0: i32, %arg1: i32) -> (i32, i32) {
    %c0_i32 = arith.constant 0 : i32
    return %arg0, %arg1 : i32, i32
  }
}

module attributes {stable_mosaic.version = 11 : i64} {
  func.func @kernel(%arg0: i32, %arg1: i32, %arg2: memref<8x8x128xf32, #tpu.memory_space<vmem>>, %arg3: memref<3x8x128xf32, #tpu.memory_space<vmem>>, %arg4: memref<2x128x128xf32, #tpu.memory_space<vmem>>, %arg5: memref<3x128x128xf32, #tpu.memory_space<vmem>>, %arg6: memref<2x1x128xf32, #tpu.memory_space<vmem>>, %arg7: memref<8x8x128xf32, #tpu.memory_space<vmem>>, %arg8: memref<3x8x128xf32, #tpu.memory_space<vmem>>, %arg9: memref<3x8x128xf32, #tpu.memory_space<vmem>>, %arg10: memref<8x8x128xf32, #tpu.memory_space<vmem>>) attributes {dimension_semantics = [#tpu.dimension_semantics<parallel>, #tpu.dimension_semantics<arbitrary>], iteration_bounds = array<i64: 1, 5>, scalar_prefetch = 0 : i64, scratch_operands = 2 : i64, tpu.core_type = #tpu.core_type<tc>, window_params = [{transform_indices = @transform_0, window_bounds = array<i64: 8, 8, 128>}, {transform_indices = @transform_1, window_bounds = array<i64: 3, 8, 128>}, {pipeline_mode = #tpu.pipeline_mode<synchronous>, transform_indices = @transform_2, window_bounds = array<i64: 2, 128, 128>}, {pipeline_mode = #tpu.pipeline_mode<synchronous>, transform_indices = @transform_3, window_bounds = array<i64: 3, 128, 128>}, {pipeline_mode = #tpu.pipeline_mode<synchronous>, transform_indices = @transform_4, window_bounds = array<i64: 2, 1, 128>}, {transform_indices = @transform_5, window_bounds = array<i64: 8, 8, 128>}, {transform_indices = @transform_6, window_bounds = array<i64: 3, 8, 128>}]} {
    %c0_i32 = arith.constant 0 : i32
    %0 = arith.cmpi eq, %arg1, %c0_i32 : i32
    %1 = arith.extui %0 : i1 to i32
    %c0_i32_0 = arith.constant 0 : i32
    %2 = arith.cmpi ne, %1, %c0_i32_0 : i32
    scf.if %2 {
      %c0_427 = arith.constant 0 : index
      %c0_428 = arith.constant 0 : index
      %c0_429 = arith.constant 0 : index
      %454 = vector.load %arg3[%c0_427, %c0_428, %c0_429] : memref<3x8x128xf32, #tpu.memory_space<vmem>>, vector<3x8x128xf32>
      %c0_430 = arith.constant 0 : index
      %c0_431 = arith.constant 0 : index
      %c0_432 = arith.constant 0 : index
      %455 = vector.load %arg9[%c0_430, %c0_431, %c0_432] : memref<3x8x128xf32, #tpu.memory_space<vmem>>, vector<3x8x128xf32>
      tpu.vector_store %arg9[%c0_430, %c0_431, %c0_432], %454 {strides = array<i32>} : memref<3x8x128xf32, #tpu.memory_space<vmem>>, vector<3x8x128xf32>,
    } else {
    }
    %c0_i32_1 = arith.constant 0 : i32
    %3 = arith.index_cast %c0_i32_1 : i32 to index
    %c0 = arith.constant 0 : index
    %c0_2 = arith.constant 0 : index
    %4 = vector.load %arg2[%3, %c0, %c0_2] : memref<8x8x128xf32, #tpu.memory_space<vmem>>, vector<1x8x128xf32>
    %5 = vector.shape_cast %4 : vector<1x8x128xf32> to vector<8x128xf32>
    %c0_3 = arith.constant 0 : index
    %c0_4 = arith.constant 0 : index
    %c0_5 = arith.constant 0 : index
    %6 = vector.load %arg9[%c0_3, %c0_4, %c0_5] : memref<3x8x128xf32, #tpu.memory_space<vmem>>, vector<1x8x128xf32>
    %7 = vector.shape_cast %6 : vector<1x8x128xf32> to vector<8x128xf32>
    %c0_6 = arith.constant 0 : index
    %c0_7 = arith.constant 0 : index
    %c0_8 = arith.constant 0 : index
    %8 = vector.load %arg5[%c0_6, %c0_7, %c0_8] : memref<3x128x128xf32, #tpu.memory_space<vmem>>, vector<1x128x128xf32>
    %9 = vector.shape_cast %8 : vector<1x128x128xf32> to vector<128x128xf32>
    %cst = arith.constant dense<0.000000e+00> : vector<8x128xf32>
    %10 = tpu.matmul %7, %9, %cst {dimension_numbers = #tpu.dot_dimension_numbers<[1], [0], [0], [1], [0, 0, 1, 1], [], []>} : vector<8x128xf32>, vector<128x128xf32>, vector<8x128xf32> -> vector<8x128xf32>
    %11 = arith.addf %5, %10 : vector<8x128xf32>
    %12 = math.tanh %11 : vector<8x128xf32>
    %c0_9 = arith.constant 0 : index
    %c0_10 = arith.constant 0 : index
    %c0_11 = arith.constant 0 : index
    %13 = vector.load %arg9[%c0_9, %c0_10, %c0_11] : memref<3x8x128xf32, #tpu.memory_space<vmem>>, vector<1x8x128xf32>
    %14 = vector.shape_cast %13 : vector<1x8x128xf32> to vector<8x128xf32>
    %15 = vector.shape_cast %12 : vector<8x128xf32> to vector<1x8x128xf32>
    tpu.vector_store %arg9[%c0_9, %c0_10, %c0_11], %15 {strides = array<i32>} : memref<3x8x128xf32, #tpu.memory_space<vmem>>, vector<1x8x128xf32>,
    %c0_12 = arith.constant 0 : index
    %c0_13 = arith.constant 0 : index
    %c0_14 = arith.constant 0 : index
    %16 = vector.load %arg4[%c0_12, %c0_13, %c0_14] : memref<2x128x128xf32, #tpu.memory_space<vmem>>, vector<1x128x128xf32>
    %17 = vector.shape_cast %16 : vector<1x128x128xf32> to vector<128x128xf32>
    %cst_15 = arith.constant dense<0.000000e+00> : vector<8x128xf32>
    %18 = tpu.matmul %12, %17, %cst_15 {dimension_numbers = #tpu.dot_dimension_numbers<[1], [0], [0], [1], [0, 0, 1, 1], [], []>} : vector<8x128xf32>, vector<128x128xf32>, vector<8x128xf32> -> vector<8x128xf32>
    %c1 = arith.constant 1 : index
    %c0_16 = arith.constant 0 : index
    %c0_17 = arith.constant 0 : index
    %19 = vector.load %arg9[%c1, %c0_16, %c0_17] : memref<3x8x128xf32, #tpu.memory_space<vmem>>, vector<1x8x128xf32>
    %20 = vector.shape_cast %19 : vector<1x8x128xf32> to vector<8x128xf32>
    %c1_18 = arith.constant 1 : index
    %c0_19 = arith.constant 0 : index
    %c0_20 = arith.constant 0 : index
    %21 = vector.load %arg5[%c1_18, %c0_19, %c0_20] : memref<3x128x128xf32, #tpu.memory_space<vmem>>, vector<1x128x128xf32>
    %22 = vector.shape_cast %21 : vector<1x128x128xf32> to vector<128x128xf32>
    %cst_21 = arith.constant dense<0.000000e+00> : vector<8x128xf32>
    %23 = tpu.matmul %20, %22, %cst_21 {dimension_numbers = #tpu.dot_dimension_numbers<[1], [0], [0], [1], [0, 0, 1, 1], [], []>} : vector<8x128xf32>, vector<128x128xf32>, vector<8x128xf32> -> vector<8x128xf32>
    %24 = arith.addf %18, %23 : vector<8x128xf32>
    %c0_22 = arith.constant 0 : index
    %c0_23 = arith.constant 0 : index
    %c0_24 = arith.constant 0 : index
    %25 = vector.load %arg6[%c0_22, %c0_23, %c0_24] : memref<2x1x128xf32, #tpu.memory_space<vmem>>, vector<1x1x128xf32>
    %26 = vector.shape_cast %25 : vector<1x1x128xf32> to vector<1x128xf32>
    %27 = vector.broadcast %26 : vector<1x128xf32> to vector<8x128xf32>
    %28 = arith.addf %24, %27 : vector<8x128xf32>
    %29 = math.tanh %28 : vector<8x128xf32>
    %c1_25 = arith.constant 1 : index
    %c0_26 = arith.constant 0 : index
    %c0_27 = arith.constant 0 : index
    %30 = vector.load %arg9[%c1_25, %c0_26, %c0_27] : memref<3x8x128xf32, #tpu.memory_space<vmem>>, vector<1x8x128xf32>
    %31 = vector.shape_cast %30 : vector<1x8x128xf32> to vector<8x128xf32>
    %32 = vector.shape_cast %29 : vector<8x128xf32> to vector<1x8x128xf32>
    tpu.vector_store %arg9[%c1_25, %c0_26, %c0_27], %32 {strides = array<i32>} : memref<3x8x128xf32, #tpu.memory_space<vmem>>, vector<1x8x128xf32>,
    %c1_28 = arith.constant 1 : index
    %c0_29 = arith.constant 0 : index
    %c0_30 = arith.constant 0 : index
    %33 = vector.load %arg4[%c1_28, %c0_29, %c0_30] : memref<2x128x128xf32, #tpu.memory_space<vmem>>, vector<1x128x128xf32>
    %34 = vector.shape_cast %33 : vector<1x128x128xf32> to vector<128x128xf32>
    %cst_31 = arith.constant dense<0.000000e+00> : vector<8x128xf32>
    %35 = tpu.matmul %29, %34, %cst_31 {dimension_numbers = #tpu.dot_dimension_numbers<[1], [0], [0], [1], [0, 0, 1, 1], [], []>} : vector<8x128xf32>, vector<128x128xf32>, vector<8x128xf32> -> vector<8x128xf32>
    %c2 = arith.constant 2 : index
    %c0_32 = arith.constant 0 : index
    %c0_33 = arith.constant 0 : index
    %36 = vector.load %arg9[%c2, %c0_32, %c0_33] : memref<3x8x128xf32, #tpu.memory_space<vmem>>, vector<1x8x128xf32>
    %37 = vector.shape_cast %36 : vector<1x8x128xf32> to vector<8x128xf32>
    %c2_34 = arith.constant 2 : index
    %c0_35 = arith.constant 0 : index
    %c0_36 = arith.constant 0 : index
    %38 = vector.load %arg5[%c2_34, %c0_35, %c0_36] : memref<3x128x128xf32, #tpu.memory_space<vmem>>, vector<1x128x128xf32>
    %39 = vector.shape_cast %38 : vector<1x128x128xf32> to vector<128x128xf32>
    %cst_37 = arith.constant dense<0.000000e+00> : vector<8x128xf32>
    %40 = tpu.matmul %37, %39, %cst_37 {dimension_numbers = #tpu.dot_dimension_numbers<[1], [0], [0], [1], [0, 0, 1, 1], [], []>} : vector<8x128xf32>, vector<128x128xf32>, vector<8x128xf32> -> vector<8x128xf32>
    %41 = arith.addf %35, %40 : vector<8x128xf32>
    %c1_38 = arith.constant 1 : index
    %c0_39 = arith.constant 0 : index
    %c0_40 = arith.constant 0 : index
    %42 = vector.load %arg6[%c1_38, %c0_39, %c0_40] : memref<2x1x128xf32, #tpu.memory_space<vmem>>, vector<1x1x128xf32>
    %43 = vector.shape_cast %42 : vector<1x1x128xf32> to vector<1x128xf32>
    %44 = vector.broadcast %43 : vector<1x128xf32> to vector<8x128xf32>
    %45 = arith.addf %41, %44 : vector<8x128xf32>
    %46 = math.tanh %45 : vector<8x128xf32>
    %c2_41 = arith.constant 2 : index
    %c0_42 = arith.constant 0 : index
    %c0_43 = arith.constant 0 : index
    %47 = vector.load %arg9[%c2_41, %c0_42, %c0_43] : memref<3x8x128xf32, #tpu.memory_space<vmem>>, vector<1x8x128xf32>
    %48 = vector.shape_cast %47 : vector<1x8x128xf32> to vector<8x128xf32>
    %49 = vector.shape_cast %46 : vector<8x128xf32> to vector<1x8x128xf32>
    tpu.vector_store %arg9[%c2_41, %c0_42, %c0_43], %49 {strides = array<i32>} : memref<3x8x128xf32, #tpu.memory_space<vmem>>, vector<1x8x128xf32>,
    %50 = arith.index_cast %c0_i32_1 : i32 to index
    %c0_44 = arith.constant 0 : index
    %c0_45 = arith.constant 0 : index
    %51 = vector.load %arg10[%50, %c0_44, %c0_45] : memref<8x8x128xf32, #tpu.memory_space<vmem>>, vector<1x8x128xf32>
    %52 = vector.shape_cast %51 : vector<1x8x128xf32> to vector<8x128xf32>
    %53 = vector.shape_cast %46 : vector<8x128xf32> to vector<1x8x128xf32>
    tpu.vector_store %arg10[%50, %c0_44, %c0_45], %53 {strides = array<i32>} : memref<8x8x128xf32, #tpu.memory_space<vmem>>, vector<1x8x128xf32>,
    %c1_i32 = arith.constant 1 : i32
    %54 = arith.index_cast %c1_i32 : i32 to index
    %c0_46 = arith.constant 0 : index
    %c0_47 = arith.constant 0 : index
    %55 = vector.load %arg2[%54, %c0_46, %c0_47] : memref<8x8x128xf32, #tpu.memory_space<vmem>>, vector<1x8x128xf32>
    %56 = vector.shape_cast %55 : vector<1x8x128xf32> to vector<8x128xf32>
    %c0_48 = arith.constant 0 : index
    %c0_49 = arith.constant 0 : index
    %c0_50 = arith.constant 0 : index
    %57 = vector.load %arg9[%c0_48, %c0_49, %c0_50] : memref<3x8x128xf32, #tpu.memory_space<vmem>>, vector<1x8x128xf32>
    %58 = vector.shape_cast %57 : vector<1x8x128xf32> to vector<8x128xf32>
    %c0_51 = arith.constant 0 : index
    %c0_52 = arith.constant 0 : index
    %c0_53 = arith.constant 0 : index
    %59 = vector.load %arg5[%c0_51, %c0_52, %c0_53] : memref<3x128x128xf32, #tpu.memory_space<vmem>>, vector<1x128x128xf32>
    %60 = vector.shape_cast %59 : vector<1x128x128xf32> to vector<128x128xf32>
    %cst_54 = arith.constant dense<0.000000e+00> : vector<8x128xf32>
    %61 = tpu.matmul %58, %60, %cst_54 {dimension_numbers = #tpu.dot_dimension_numbers<[1], [0], [0], [1], [0, 0, 1, 1], [], []>} : vector<8x128xf32>, vector<128x128xf32>, vector<8x128xf32> -> vector<8x128xf32>
    %62 = arith.addf %56, %61 : vector<8x128xf32>
    %63 = math.tanh %62 : vector<8x128xf32>
    %c0_55 = arith.constant 0 : index
    %c0_56 = arith.constant 0 : index
    %c0_57 = arith.constant 0 : index
    %64 = vector.load %arg9[%c0_55, %c0_56, %c0_57] : memref<3x8x128xf32, #tpu.memory_space<vmem>>, vector<1x8x128xf32>
    %65 = vector.shape_cast %64 : vector<1x8x128xf32> to vector<8x128xf32>
    %66 = vector.shape_cast %63 : vector<8x128xf32> to vector<1x8x128xf32>
    tpu.vector_store %arg9[%c0_55, %c0_56, %c0_57], %66 {strides = array<i32>} : memref<3x8x128xf32, #tpu.memory_space<vmem>>, vector<1x8x128xf32>,
    %c0_58 = arith.constant 0 : index
    %c0_59 = arith.constant 0 : index
    %c0_60 = arith.constant 0 : index
    %67 = vector.load %arg4[%c0_58, %c0_59, %c0_60] : memref<2x128x128xf32, #tpu.memory_space<vmem>>, vector<1x128x128xf32>
    %68 = vector.shape_cast %67 : vector<1x128x128xf32> to vector<128x128xf32>
    %cst_61 = arith.constant dense<0.000000e+00> : vector<8x128xf32>
    %69 = tpu.matmul %63, %68, %cst_61 {dimension_numbers = #tpu.dot_dimension_numbers<[1], [0], [0], [1], [0, 0, 1, 1], [], []>} : vector<8x128xf32>, vector<128x128xf32>, vector<8x128xf32> -> vector<8x128xf32>
    %c1_62 = arith.constant 1 : index
    %c0_63 = arith.constant 0 : index
    %c0_64 = arith.constant 0 : index
    %70 = vector.load %arg9[%c1_62, %c0_63, %c0_64] : memref<3x8x128xf32, #tpu.memory_space<vmem>>, vector<1x8x128xf32>
    %71 = vector.shape_cast %70 : vector<1x8x128xf32> to vector<8x128xf32>
    %c1_65 = arith.constant 1 : index
    %c0_66 = arith.constant 0 : index
    %c0_67 = arith.constant 0 : index
    %72 = vector.load %arg5[%c1_65, %c0_66, %c0_67] : memref<3x128x128xf32, #tpu.memory_space<vmem>>, vector<1x128x128xf32>
    %73 = vector.shape_cast %72 : vector<1x128x128xf32> to vector<128x128xf32>
    %cst_68 = arith.constant dense<0.000000e+00> : vector<8x128xf32>
    %74 = tpu.matmul %71, %73, %cst_68 {dimension_numbers = #tpu.dot_dimension_numbers<[1], [0], [0], [1], [0, 0, 1, 1], [], []>} : vector<8x128xf32>, vector<128x128xf32>, vector<8x128xf32> -> vector<8x128xf32>
    %75 = arith.addf %69, %74 : vector<8x128xf32>
    %c0_69 = arith.constant 0 : index
    %c0_70 = arith.constant 0 : index
    %c0_71 = arith.constant 0 : index
    %76 = vector.load %arg6[%c0_69, %c0_70, %c0_71] : memref<2x1x128xf32, #tpu.memory_space<vmem>>, vector<1x1x128xf32>
    %77 = vector.shape_cast %76 : vector<1x1x128xf32> to vector<1x128xf32>
    %78 = vector.broadcast %77 : vector<1x128xf32> to vector<8x128xf32>
    %79 = arith.addf %75, %78 : vector<8x128xf32>
    %80 = math.tanh %79 : vector<8x128xf32>
    %c1_72 = arith.constant 1 : index
    %c0_73 = arith.constant 0 : index
    %c0_74 = arith.constant 0 : index
    %81 = vector.load %arg9[%c1_72, %c0_73, %c0_74] : memref<3x8x128xf32, #tpu.memory_space<vmem>>, vector<1x8x128xf32>
    %82 = vector.shape_cast %81 : vector<1x8x128xf32> to vector<8x128xf32>
    %83 = vector.shape_cast %80 : vector<8x128xf32> to vector<1x8x128xf32>
    tpu.vector_store %arg9[%c1_72, %c0_73, %c0_74], %83 {strides = array<i32>} : memref<3x8x128xf32, #tpu.memory_space<vmem>>, vector<1x8x128xf32>,
    %c1_75 = arith.constant 1 : index
    %c0_76 = arith.constant 0 : index
    %c0_77 = arith.constant 0 : index
    %84 = vector.load %arg4[%c1_75, %c0_76, %c0_77] : memref<2x128x128xf32, #tpu.memory_space<vmem>>, vector<1x128x128xf32>
    %85 = vector.shape_cast %84 : vector<1x128x128xf32> to vector<128x128xf32>
    %cst_78 = arith.constant dense<0.000000e+00> : vector<8x128xf32>
    %86 = tpu.matmul %80, %85, %cst_78 {dimension_numbers = #tpu.dot_dimension_numbers<[1], [0], [0], [1], [0, 0, 1, 1], [], []>} : vector<8x128xf32>, vector<128x128xf32>, vector<8x128xf32> -> vector<8x128xf32>
    %c2_79 = arith.constant 2 : index
    %c0_80 = arith.constant 0 : index
    %c0_81 = arith.constant 0 : index
    %87 = vector.load %arg9[%c2_79, %c0_80, %c0_81] : memref<3x8x128xf32, #tpu.memory_space<vmem>>, vector<1x8x128xf32>
    %88 = vector.shape_cast %87 : vector<1x8x128xf32> to vector<8x128xf32>
    %c2_82 = arith.constant 2 : index
    %c0_83 = arith.constant 0 : index
    %c0_84 = arith.constant 0 : index
    %89 = vector.load %arg5[%c2_82, %c0_83, %c0_84] : memref<3x128x128xf32, #tpu.memory_space<vmem>>, vector<1x128x128xf32>
    %90 = vector.shape_cast %89 : vector<1x128x128xf32> to vector<128x128xf32>
    %cst_85 = arith.constant dense<0.000000e+00> : vector<8x128xf32>
    %91 = tpu.matmul %88, %90, %cst_85 {dimension_numbers = #tpu.dot_dimension_numbers<[1], [0], [0], [1], [0, 0, 1, 1], [], []>} : vector<8x128xf32>, vector<128x128xf32>, vector<8x128xf32> -> vector<8x128xf32>
    %92 = arith.addf %86, %91 : vector<8x128xf32>
    %c1_86 = arith.constant 1 : index
    %c0_87 = arith.constant 0 : index
    %c0_88 = arith.constant 0 : index
    %93 = vector.load %arg6[%c1_86, %c0_87, %c0_88] : memref<2x1x128xf32, #tpu.memory_space<vmem>>, vector<1x1x128xf32>
    %94 = vector.shape_cast %93 : vector<1x1x128xf32> to vector<1x128xf32>
    %95 = vector.broadcast %94 : vector<1x128xf32> to vector<8x128xf32>
    %96 = arith.addf %92, %95 : vector<8x128xf32>
    %97 = math.tanh %96 : vector<8x128xf32>
    %c2_89 = arith.constant 2 : index
    %c0_90 = arith.constant 0 : index
    %c0_91 = arith.constant 0 : index
    %98 = vector.load %arg9[%c2_89, %c0_90, %c0_91] : memref<3x8x128xf32, #tpu.memory_space<vmem>>, vector<1x8x128xf32>
    %99 = vector.shape_cast %98 : vector<1x8x128xf32> to vector<8x128xf32>
    %100 = vector.shape_cast %97 : vector<8x128xf32> to vector<1x8x128xf32>
    tpu.vector_store %arg9[%c2_89, %c0_90, %c0_91], %100 {strides = array<i32>} : memref<3x8x128xf32, #tpu.memory_space<vmem>>, vector<1x8x128xf32>,
    %101 = arith.index_cast %c1_i32 : i32 to index
    %c0_92 = arith.constant 0 : index
    %c0_93 = arith.constant 0 : index
    %102 = vector.load %arg10[%101, %c0_92, %c0_93] : memref<8x8x128xf32, #tpu.memory_space<vmem>>, vector<1x8x128xf32>
    %103 = vector.shape_cast %102 : vector<1x8x128xf32> to vector<8x128xf32>
    %104 = vector.shape_cast %97 : vector<8x128xf32> to vector<1x8x128xf32>
    tpu.vector_store %arg10[%101, %c0_92, %c0_93], %104 {strides = array<i32>} : memref<8x8x128xf32, #tpu.memory_space<vmem>>, vector<1x8x128xf32>,
    %c2_i32 = arith.constant 2 : i32
    %105 = arith.index_cast %c2_i32 : i32 to index
    %c0_94 = arith.constant 0 : index
    %c0_95 = arith.constant 0 : index
    %106 = vector.load %arg2[%105, %c0_94, %c0_95] : memref<8x8x128xf32, #tpu.memory_space<vmem>>, vector<1x8x128xf32>
    %107 = vector.shape_cast %106 : vector<1x8x128xf32> to vector<8x128xf32>
    %c0_96 = arith.constant 0 : index
    %c0_97 = arith.constant 0 : index
    %c0_98 = arith.constant 0 : index
    %108 = vector.load %arg9[%c0_96, %c0_97, %c0_98] : memref<3x8x128xf32, #tpu.memory_space<vmem>>, vector<1x8x128xf32>
    %109 = vector.shape_cast %108 : vector<1x8x128xf32> to vector<8x128xf32>
    %c0_99 = arith.constant 0 : index
    %c0_100 = arith.constant 0 : index
    %c0_101 = arith.constant 0 : index
    %110 = vector.load %arg5[%c0_99, %c0_100, %c0_101] : memref<3x128x128xf32, #tpu.memory_space<vmem>>, vector<1x128x128xf32>
    %111 = vector.shape_cast %110 : vector<1x128x128xf32> to vector<128x128xf32>
    %cst_102 = arith.constant dense<0.000000e+00> : vector<8x128xf32>
    %112 = tpu.matmul %109, %111, %cst_102 {dimension_numbers = #tpu.dot_dimension_numbers<[1], [0], [0], [1], [0, 0, 1, 1], [], []>} : vector<8x128xf32>, vector<128x128xf32>, vector<8x128xf32> -> vector<8x128xf32>
    %113 = arith.addf %107, %112 : vector<8x128xf32>
    %114 = math.tanh %113 : vector<8x128xf32>
    %c0_103 = arith.constant 0 : index
    %c0_104 = arith.constant 0 : index
    %c0_105 = arith.constant 0 : index
    %115 = vector.load %arg9[%c0_103, %c0_104, %c0_105] : memref<3x8x128xf32, #tpu.memory_space<vmem>>, vector<1x8x128xf32>
    %116 = vector.shape_cast %115 : vector<1x8x128xf32> to vector<8x128xf32>
    %117 = vector.shape_cast %114 : vector<8x128xf32> to vector<1x8x128xf32>
    tpu.vector_store %arg9[%c0_103, %c0_104, %c0_105], %117 {strides = array<i32>} : memref<3x8x128xf32, #tpu.memory_space<vmem>>, vector<1x8x128xf32>,
    %c0_106 = arith.constant 0 : index
    %c0_107 = arith.constant 0 : index
    %c0_108 = arith.constant 0 : index
    %118 = vector.load %arg4[%c0_106, %c0_107, %c0_108] : memref<2x128x128xf32, #tpu.memory_space<vmem>>, vector<1x128x128xf32>
    %119 = vector.shape_cast %118 : vector<1x128x128xf32> to vector<128x128xf32>
    %cst_109 = arith.constant dense<0.000000e+00> : vector<8x128xf32>
    %120 = tpu.matmul %114, %119, %cst_109 {dimension_numbers = #tpu.dot_dimension_numbers<[1], [0], [0], [1], [0, 0, 1, 1], [], []>} : vector<8x128xf32>, vector<128x128xf32>, vector<8x128xf32> -> vector<8x128xf32>
    %c1_110 = arith.constant 1 : index
    %c0_111 = arith.constant 0 : index
    %c0_112 = arith.constant 0 : index
    %121 = vector.load %arg9[%c1_110, %c0_111, %c0_112] : memref<3x8x128xf32, #tpu.memory_space<vmem>>, vector<1x8x128xf32>
    %122 = vector.shape_cast %121 : vector<1x8x128xf32> to vector<8x128xf32>
    %c1_113 = arith.constant 1 : index
    %c0_114 = arith.constant 0 : index
    %c0_115 = arith.constant 0 : index
    %123 = vector.load %arg5[%c1_113, %c0_114, %c0_115] : memref<3x128x128xf32, #tpu.memory_space<vmem>>, vector<1x128x128xf32>
    %124 = vector.shape_cast %123 : vector<1x128x128xf32> to vector<128x128xf32>
    %cst_116 = arith.constant dense<0.000000e+00> : vector<8x128xf32>
    %125 = tpu.matmul %122, %124, %cst_116 {dimension_numbers = #tpu.dot_dimension_numbers<[1], [0], [0], [1], [0, 0, 1, 1], [], []>} : vector<8x128xf32>, vector<128x128xf32>, vector<8x128xf32> -> vector<8x128xf32>
    %126 = arith.addf %120, %125 : vector<8x128xf32>
    %c0_117 = arith.constant 0 : index
    %c0_118 = arith.constant 0 : index
    %c0_119 = arith.constant 0 : index
    %127 = vector.load %arg6[%c0_117, %c0_118, %c0_119] : memref<2x1x128xf32, #tpu.memory_space<vmem>>, vector<1x1x128xf32>
    %128 = vector.shape_cast %127 : vector<1x1x128xf32> to vector<1x128xf32>
    %129 = vector.broadcast %128 : vector<1x128xf32> to vector<8x128xf32>
    %130 = arith.addf %126, %129 : vector<8x128xf32>
    %131 = math.tanh %130 : vector<8x128xf32>
    %c1_120 = arith.constant 1 : index
    %c0_121 = arith.constant 0 : index
    %c0_122 = arith.constant 0 : index
    %132 = vector.load %arg9[%c1_120, %c0_121, %c0_122] : memref<3x8x128xf32, #tpu.memory_space<vmem>>, vector<1x8x128xf32>
    %133 = vector.shape_cast %132 : vector<1x8x128xf32> to vector<8x128xf32>
    %134 = vector.shape_cast %131 : vector<8x128xf32> to vector<1x8x128xf32>
    tpu.vector_store %arg9[%c1_120, %c0_121, %c0_122], %134 {strides = array<i32>} : memref<3x8x128xf32, #tpu.memory_space<vmem>>, vector<1x8x128xf32>,
    %c1_123 = arith.constant 1 : index
    %c0_124 = arith.constant 0 : index
    %c0_125 = arith.constant 0 : index
    %135 = vector.load %arg4[%c1_123, %c0_124, %c0_125] : memref<2x128x128xf32, #tpu.memory_space<vmem>>, vector<1x128x128xf32>
    %136 = vector.shape_cast %135 : vector<1x128x128xf32> to vector<128x128xf32>
    %cst_126 = arith.constant dense<0.000000e+00> : vector<8x128xf32>
    %137 = tpu.matmul %131, %136, %cst_126 {dimension_numbers = #tpu.dot_dimension_numbers<[1], [0], [0], [1], [0, 0, 1, 1], [], []>} : vector<8x128xf32>, vector<128x128xf32>, vector<8x128xf32> -> vector<8x128xf32>
    %c2_127 = arith.constant 2 : index
    %c0_128 = arith.constant 0 : index
    %c0_129 = arith.constant 0 : index
    %138 = vector.load %arg9[%c2_127, %c0_128, %c0_129] : memref<3x8x128xf32, #tpu.memory_space<vmem>>, vector<1x8x128xf32>
    %139 = vector.shape_cast %138 : vector<1x8x128xf32> to vector<8x128xf32>
    %c2_130 = arith.constant 2 : index
    %c0_131 = arith.constant 0 : index
    %c0_132 = arith.constant 0 : index
    %140 = vector.load %arg5[%c2_130, %c0_131, %c0_132] : memref<3x128x128xf32, #tpu.memory_space<vmem>>, vector<1x128x128xf32>
    %141 = vector.shape_cast %140 : vector<1x128x128xf32> to vector<128x128xf32>
    %cst_133 = arith.constant dense<0.000000e+00> : vector<8x128xf32>
    %142 = tpu.matmul %139, %141, %cst_133 {dimension_numbers = #tpu.dot_dimension_numbers<[1], [0], [0], [1], [0, 0, 1, 1], [], []>} : vector<8x128xf32>, vector<128x128xf32>, vector<8x128xf32> -> vector<8x128xf32>
    %143 = arith.addf %137, %142 : vector<8x128xf32>
    %c1_134 = arith.constant 1 : index
    %c0_135 = arith.constant 0 : index
    %c0_136 = arith.constant 0 : index
    %144 = vector.load %arg6[%c1_134, %c0_135, %c0_136] : memref<2x1x128xf32, #tpu.memory_space<vmem>>, vector<1x1x128xf32>
    %145 = vector.shape_cast %144 : vector<1x1x128xf32> to vector<1x128xf32>
    %146 = vector.broadcast %145 : vector<1x128xf32> to vector<8x128xf32>
    %147 = arith.addf %143, %146 : vector<8x128xf32>
    %148 = math.tanh %147 : vector<8x128xf32>
    %c2_137 = arith.constant 2 : index
    %c0_138 = arith.constant 0 : index
    %c0_139 = arith.constant 0 : index
    %149 = vector.load %arg9[%c2_137, %c0_138, %c0_139] : memref<3x8x128xf32, #tpu.memory_space<vmem>>, vector<1x8x128xf32>
    %150 = vector.shape_cast %149 : vector<1x8x128xf32> to vector<8x128xf32>
    %151 = vector.shape_cast %148 : vector<8x128xf32> to vector<1x8x128xf32>
    tpu.vector_store %arg9[%c2_137, %c0_138, %c0_139], %151 {strides = array<i32>} : memref<3x8x128xf32, #tpu.memory_space<vmem>>, vector<1x8x128xf32>,
    %152 = arith.index_cast %c2_i32 : i32 to index
    %c0_140 = arith.constant 0 : index
    %c0_141 = arith.constant 0 : index
    %153 = vector.load %arg10[%152, %c0_140, %c0_141] : memref<8x8x128xf32, #tpu.memory_space<vmem>>, vector<1x8x128xf32>
    %154 = vector.shape_cast %153 : vector<1x8x128xf32> to vector<8x128xf32>
    %155 = vector.shape_cast %148 : vector<8x128xf32> to vector<1x8x128xf32>
    tpu.vector_store %arg10[%152, %c0_140, %c0_141], %155 {strides = array<i32>} : memref<8x8x128xf32, #tpu.memory_space<vmem>>, vector<1x8x128xf32>,
    %c3_i32 = arith.constant 3 : i32
    %156 = arith.index_cast %c3_i32 : i32 to index
    %c0_142 = arith.constant 0 : index
    %c0_143 = arith.constant 0 : index
    %157 = vector.load %arg2[%156, %c0_142, %c0_143] : memref<8x8x128xf32, #tpu.memory_space<vmem>>, vector<1x8x128xf32>
    %158 = vector.shape_cast %157 : vector<1x8x128xf32> to vector<8x128xf32>
    %c0_144 = arith.constant 0 : index
    %c0_145 = arith.constant 0 : index
    %c0_146 = arith.constant 0 : index
    %159 = vector.load %arg9[%c0_144, %c0_145, %c0_146] : memref<3x8x128xf32, #tpu.memory_space<vmem>>, vector<1x8x128xf32>
    %160 = vector.shape_cast %159 : vector<1x8x128xf32> to vector<8x128xf32>
    %c0_147 = arith.constant 0 : index
    %c0_148 = arith.constant 0 : index
    %c0_149 = arith.constant 0 : index
    %161 = vector.load %arg5[%c0_147, %c0_148, %c0_149] : memref<3x128x128xf32, #tpu.memory_space<vmem>>, vector<1x128x128xf32>
    %162 = vector.shape_cast %161 : vector<1x128x128xf32> to vector<128x128xf32>
    %cst_150 = arith.constant dense<0.000000e+00> : vector<8x128xf32>
    %163 = tpu.matmul %160, %162, %cst_150 {dimension_numbers = #tpu.dot_dimension_numbers<[1], [0], [0], [1], [0, 0, 1, 1], [], []>} : vector<8x128xf32>, vector<128x128xf32>, vector<8x128xf32> -> vector<8x128xf32>
    %164 = arith.addf %158, %163 : vector<8x128xf32>
    %165 = math.tanh %164 : vector<8x128xf32>
    %c0_151 = arith.constant 0 : index
    %c0_152 = arith.constant 0 : index
    %c0_153 = arith.constant 0 : index
    %166 = vector.load %arg9[%c0_151, %c0_152, %c0_153] : memref<3x8x128xf32, #tpu.memory_space<vmem>>, vector<1x8x128xf32>
    %167 = vector.shape_cast %166 : vector<1x8x128xf32> to vector<8x128xf32>
    %168 = vector.shape_cast %165 : vector<8x128xf32> to vector<1x8x128xf32>
    tpu.vector_store %arg9[%c0_151, %c0_152, %c0_153], %168 {strides = array<i32>} : memref<3x8x128xf32, #tpu.memory_space<vmem>>, vector<1x8x128xf32>,
    %c0_154 = arith.constant 0 : index
    %c0_155 = arith.constant 0 : index
    %c0_156 = arith.constant 0 : index
    %169 = vector.load %arg4[%c0_154, %c0_155, %c0_156] : memref<2x128x128xf32, #tpu.memory_space<vmem>>, vector<1x128x128xf32>
    %170 = vector.shape_cast %169 : vector<1x128x128xf32> to vector<128x128xf32>
    %cst_157 = arith.constant dense<0.000000e+00> : vector<8x128xf32>
    %171 = tpu.matmul %165, %170, %cst_157 {dimension_numbers = #tpu.dot_dimension_numbers<[1], [0], [0], [1], [0, 0, 1, 1], [], []>} : vector<8x128xf32>, vector<128x128xf32>, vector<8x128xf32> -> vector<8x128xf32>
    %c1_158 = arith.constant 1 : index
    %c0_159 = arith.constant 0 : index
    %c0_160 = arith.constant 0 : index
    %172 = vector.load %arg9[%c1_158, %c0_159, %c0_160] : memref<3x8x128xf32, #tpu.memory_space<vmem>>, vector<1x8x128xf32>
    %173 = vector.shape_cast %172 : vector<1x8x128xf32> to vector<8x128xf32>
    %c1_161 = arith.constant 1 : index
    %c0_162 = arith.constant 0 : index
    %c0_163 = arith.constant 0 : index
    %174 = vector.load %arg5[%c1_161, %c0_162, %c0_163] : memref<3x128x128xf32, #tpu.memory_space<vmem>>, vector<1x128x128xf32>
    %175 = vector.shape_cast %174 : vector<1x128x128xf32> to vector<128x128xf32>
    %cst_164 = arith.constant dense<0.000000e+00> : vector<8x128xf32>
    %176 = tpu.matmul %173, %175, %cst_164 {dimension_numbers = #tpu.dot_dimension_numbers<[1], [0], [0], [1], [0, 0, 1, 1], [], []>} : vector<8x128xf32>, vector<128x128xf32>, vector<8x128xf32> -> vector<8x128xf32>
    %177 = arith.addf %171, %176 : vector<8x128xf32>
    %c0_165 = arith.constant 0 : index
    %c0_166 = arith.constant 0 : index
    %c0_167 = arith.constant 0 : index
    %178 = vector.load %arg6[%c0_165, %c0_166, %c0_167] : memref<2x1x128xf32, #tpu.memory_space<vmem>>, vector<1x1x128xf32>
    %179 = vector.shape_cast %178 : vector<1x1x128xf32> to vector<1x128xf32>
    %180 = vector.broadcast %179 : vector<1x128xf32> to vector<8x128xf32>
    %181 = arith.addf %177, %180 : vector<8x128xf32>
    %182 = math.tanh %181 : vector<8x128xf32>
    %c1_168 = arith.constant 1 : index
    %c0_169 = arith.constant 0 : index
    %c0_170 = arith.constant 0 : index
    %183 = vector.load %arg9[%c1_168, %c0_169, %c0_170] : memref<3x8x128xf32, #tpu.memory_space<vmem>>, vector<1x8x128xf32>
    %184 = vector.shape_cast %183 : vector<1x8x128xf32> to vector<8x128xf32>
    %185 = vector.shape_cast %182 : vector<8x128xf32> to vector<1x8x128xf32>
    tpu.vector_store %arg9[%c1_168, %c0_169, %c0_170], %185 {strides = array<i32>} : memref<3x8x128xf32, #tpu.memory_space<vmem>>, vector<1x8x128xf32>,
    %c1_171 = arith.constant 1 : index
    %c0_172 = arith.constant 0 : index
    %c0_173 = arith.constant 0 : index
    %186 = vector.load %arg4[%c1_171, %c0_172, %c0_173] : memref<2x128x128xf32, #tpu.memory_space<vmem>>, vector<1x128x128xf32>
    %187 = vector.shape_cast %186 : vector<1x128x128xf32> to vector<128x128xf32>
    %cst_174 = arith.constant dense<0.000000e+00> : vector<8x128xf32>
    %188 = tpu.matmul %182, %187, %cst_174 {dimension_numbers = #tpu.dot_dimension_numbers<[1], [0], [0], [1], [0, 0, 1, 1], [], []>} : vector<8x128xf32>, vector<128x128xf32>, vector<8x128xf32> -> vector<8x128xf32>
    %c2_175 = arith.constant 2 : index
    %c0_176 = arith.constant 0 : index
    %c0_177 = arith.constant 0 : index
    %189 = vector.load %arg9[%c2_175, %c0_176, %c0_177] : memref<3x8x128xf32, #tpu.memory_space<vmem>>, vector<1x8x128xf32>
    %190 = vector.shape_cast %189 : vector<1x8x128xf32> to vector<8x128xf32>
    %c2_178 = arith.constant 2 : index
    %c0_179 = arith.constant 0 : index
    %c0_180 = arith.constant 0 : index
    %191 = vector.load %arg5[%c2_178, %c0_179, %c0_180] : memref<3x128x128xf32, #tpu.memory_space<vmem>>, vector<1x128x128xf32>
    %192 = vector.shape_cast %191 : vector<1x128x128xf32> to vector<128x128xf32>
    %cst_181 = arith.constant dense<0.000000e+00> : vector<8x128xf32>
    %193 = tpu.matmul %190, %192, %cst_181 {dimension_numbers = #tpu.dot_dimension_numbers<[1], [0], [0], [1], [0, 0, 1, 1], [], []>} : vector<8x128xf32>, vector<128x128xf32>, vector<8x128xf32> -> vector<8x128xf32>
    %194 = arith.addf %188, %193 : vector<8x128xf32>
    %c1_182 = arith.constant 1 : index
    %c0_183 = arith.constant 0 : index
    %c0_184 = arith.constant 0 : index
    %195 = vector.load %arg6[%c1_182, %c0_183, %c0_184] : memref<2x1x128xf32, #tpu.memory_space<vmem>>, vector<1x1x128xf32>
    %196 = vector.shape_cast %195 : vector<1x1x128xf32> to vector<1x128xf32>
    %197 = vector.broadcast %196 : vector<1x128xf32> to vector<8x128xf32>
    %198 = arith.addf %194, %197 : vector<8x128xf32>
    %199 = math.tanh %198 : vector<8x128xf32>
    %c2_185 = arith.constant 2 : index
    %c0_186 = arith.constant 0 : index
    %c0_187 = arith.constant 0 : index
    %200 = vector.load %arg9[%c2_185, %c0_186, %c0_187] : memref<3x8x128xf32, #tpu.memory_space<vmem>>, vector<1x8x128xf32>
    %201 = vector.shape_cast %200 : vector<1x8x128xf32> to vector<8x128xf32>
    %202 = vector.shape_cast %199 : vector<8x128xf32> to vector<1x8x128xf32>
    tpu.vector_store %arg9[%c2_185, %c0_186, %c0_187], %202 {strides = array<i32>} : memref<3x8x128xf32, #tpu.memory_space<vmem>>, vector<1x8x128xf32>,
    %203 = arith.index_cast %c3_i32 : i32 to index
    %c0_188 = arith.constant 0 : index
    %c0_189 = arith.constant 0 : index
    %204 = vector.load %arg10[%203, %c0_188, %c0_189] : memref<8x8x128xf32, #tpu.memory_space<vmem>>, vector<1x8x128xf32>
    %205 = vector.shape_cast %204 : vector<1x8x128xf32> to vector<8x128xf32>
    %206 = vector.shape_cast %199 : vector<8x128xf32> to vector<1x8x128xf32>
    tpu.vector_store %arg10[%203, %c0_188, %c0_189], %206 {strides = array<i32>} : memref<8x8x128xf32, #tpu.memory_space<vmem>>, vector<1x8x128xf32>,
    %c4_i32 = arith.constant 4 : i32
    %207 = arith.index_cast %c4_i32 : i32 to index
    %c0_190 = arith.constant 0 : index
    %c0_191 = arith.constant 0 : index
    %208 = vector.load %arg2[%207, %c0_190, %c0_191] : memref<8x8x128xf32, #tpu.memory_space<vmem>>, vector<1x8x128xf32>
    %209 = vector.shape_cast %208 : vector<1x8x128xf32> to vector<8x128xf32>
    %c0_192 = arith.constant 0 : index
    %c0_193 = arith.constant 0 : index
    %c0_194 = arith.constant 0 : index
    %210 = vector.load %arg9[%c0_192, %c0_193, %c0_194] : memref<3x8x128xf32, #tpu.memory_space<vmem>>, vector<1x8x128xf32>
    %211 = vector.shape_cast %210 : vector<1x8x128xf32> to vector<8x128xf32>
    %c0_195 = arith.constant 0 : index
    %c0_196 = arith.constant 0 : index
    %c0_197 = arith.constant 0 : index
    %212 = vector.load %arg5[%c0_195, %c0_196, %c0_197] : memref<3x128x128xf32, #tpu.memory_space<vmem>>, vector<1x128x128xf32>
    %213 = vector.shape_cast %212 : vector<1x128x128xf32> to vector<128x128xf32>
    %cst_198 = arith.constant dense<0.000000e+00> : vector<8x128xf32>
    %214 = tpu.matmul %211, %213, %cst_198 {dimension_numbers = #tpu.dot_dimension_numbers<[1], [0], [0], [1], [0, 0, 1, 1], [], []>} : vector<8x128xf32>, vector<128x128xf32>, vector<8x128xf32> -> vector<8x128xf32>
    %215 = arith.addf %209, %214 : vector<8x128xf32>
    %216 = math.tanh %215 : vector<8x128xf32>
    %c0_199 = arith.constant 0 : index
    %c0_200 = arith.constant 0 : index
    %c0_201 = arith.constant 0 : index
    %217 = vector.load %arg9[%c0_199, %c0_200, %c0_201] : memref<3x8x128xf32, #tpu.memory_space<vmem>>, vector<1x8x128xf32>
    %218 = vector.shape_cast %217 : vector<1x8x128xf32> to vector<8x128xf32>
    %219 = vector.shape_cast %216 : vector<8x128xf32> to vector<1x8x128xf32>
    tpu.vector_store %arg9[%c0_199, %c0_200, %c0_201], %219 {strides = array<i32>} : memref<3x8x128xf32, #tpu.memory_space<vmem>>, vector<1x8x128xf32>,
    %c0_202 = arith.constant 0 : index
    %c0_203 = arith.constant 0 : index
    %c0_204 = arith.constant 0 : index
    %220 = vector.load %arg4[%c0_202, %c0_203, %c0_204] : memref<2x128x128xf32, #tpu.memory_space<vmem>>, vector<1x128x128xf32>
    %221 = vector.shape_cast %220 : vector<1x128x128xf32> to vector<128x128xf32>
    %cst_205 = arith.constant dense<0.000000e+00> : vector<8x128xf32>
    %222 = tpu.matmul %216, %221, %cst_205 {dimension_numbers = #tpu.dot_dimension_numbers<[1], [0], [0], [1], [0, 0, 1, 1], [], []>} : vector<8x128xf32>, vector<128x128xf32>, vector<8x128xf32> -> vector<8x128xf32>
    %c1_206 = arith.constant 1 : index
    %c0_207 = arith.constant 0 : index
    %c0_208 = arith.constant 0 : index
    %223 = vector.load %arg9[%c1_206, %c0_207, %c0_208] : memref<3x8x128xf32, #tpu.memory_space<vmem>>, vector<1x8x128xf32>
    %224 = vector.shape_cast %223 : vector<1x8x128xf32> to vector<8x128xf32>
    %c1_209 = arith.constant 1 : index
    %c0_210 = arith.constant 0 : index
    %c0_211 = arith.constant 0 : index
    %225 = vector.load %arg5[%c1_209, %c0_210, %c0_211] : memref<3x128x128xf32, #tpu.memory_space<vmem>>, vector<1x128x128xf32>
    %226 = vector.shape_cast %225 : vector<1x128x128xf32> to vector<128x128xf32>
    %cst_212 = arith.constant dense<0.000000e+00> : vector<8x128xf32>
    %227 = tpu.matmul %224, %226, %cst_212 {dimension_numbers = #tpu.dot_dimension_numbers<[1], [0], [0], [1], [0, 0, 1, 1], [], []>} : vector<8x128xf32>, vector<128x128xf32>, vector<8x128xf32> -> vector<8x128xf32>
    %228 = arith.addf %222, %227 : vector<8x128xf32>
    %c0_213 = arith.constant 0 : index
    %c0_214 = arith.constant 0 : index
    %c0_215 = arith.constant 0 : index
    %229 = vector.load %arg6[%c0_213, %c0_214, %c0_215] : memref<2x1x128xf32, #tpu.memory_space<vmem>>, vector<1x1x128xf32>
    %230 = vector.shape_cast %229 : vector<1x1x128xf32> to vector<1x128xf32>
    %231 = vector.broadcast %230 : vector<1x128xf32> to vector<8x128xf32>
    %232 = arith.addf %228, %231 : vector<8x128xf32>
    %233 = math.tanh %232 : vector<8x128xf32>
    %c1_216 = arith.constant 1 : index
    %c0_217 = arith.constant 0 : index
    %c0_218 = arith.constant 0 : index
    %234 = vector.load %arg9[%c1_216, %c0_217, %c0_218] : memref<3x8x128xf32, #tpu.memory_space<vmem>>, vector<1x8x128xf32>
    %235 = vector.shape_cast %234 : vector<1x8x128xf32> to vector<8x128xf32>
    %236 = vector.shape_cast %233 : vector<8x128xf32> to vector<1x8x128xf32>
    tpu.vector_store %arg9[%c1_216, %c0_217, %c0_218], %236 {strides = array<i32>} : memref<3x8x128xf32, #tpu.memory_space<vmem>>, vector<1x8x128xf32>,
    %c1_219 = arith.constant 1 : index
    %c0_220 = arith.constant 0 : index
    %c0_221 = arith.constant 0 : index
    %237 = vector.load %arg4[%c1_219, %c0_220, %c0_221] : memref<2x128x128xf32, #tpu.memory_space<vmem>>, vector<1x128x128xf32>
    %238 = vector.shape_cast %237 : vector<1x128x128xf32> to vector<128x128xf32>
    %cst_222 = arith.constant dense<0.000000e+00> : vector<8x128xf32>
    %239 = tpu.matmul %233, %238, %cst_222 {dimension_numbers = #tpu.dot_dimension_numbers<[1], [0], [0], [1], [0, 0, 1, 1], [], []>} : vector<8x128xf32>, vector<128x128xf32>, vector<8x128xf32> -> vector<8x128xf32>
    %c2_223 = arith.constant 2 : index
    %c0_224 = arith.constant 0 : index
    %c0_225 = arith.constant 0 : index
    %240 = vector.load %arg9[%c2_223, %c0_224, %c0_225] : memref<3x8x128xf32, #tpu.memory_space<vmem>>, vector<1x8x128xf32>
    %241 = vector.shape_cast %240 : vector<1x8x128xf32> to vector<8x128xf32>
    %c2_226 = arith.constant 2 : index
    %c0_227 = arith.constant 0 : index
    %c0_228 = arith.constant 0 : index
    %242 = vector.load %arg5[%c2_226, %c0_227, %c0_228] : memref<3x128x128xf32, #tpu.memory_space<vmem>>, vector<1x128x128xf32>
    %243 = vector.shape_cast %242 : vector<1x128x128xf32> to vector<128x128xf32>
    %cst_229 = arith.constant dense<0.000000e+00> : vector<8x128xf32>
    %244 = tpu.matmul %241, %243, %cst_229 {dimension_numbers = #tpu.dot_dimension_numbers<[1], [0], [0], [1], [0, 0, 1, 1], [], []>} : vector<8x128xf32>, vector<128x128xf32>, vector<8x128xf32> -> vector<8x128xf32>
    %245 = arith.addf %239, %244 : vector<8x128xf32>
    %c1_230 = arith.constant 1 : index
    %c0_231 = arith.constant 0 : index
    %c0_232 = arith.constant 0 : index
    %246 = vector.load %arg6[%c1_230, %c0_231, %c0_232] : memref<2x1x128xf32, #tpu.memory_space<vmem>>, vector<1x1x128xf32>
    %247 = vector.shape_cast %246 : vector<1x1x128xf32> to vector<1x128xf32>
    %248 = vector.broadcast %247 : vector<1x128xf32> to vector<8x128xf32>
    %249 = arith.addf %245, %248 : vector<8x128xf32>
    %250 = math.tanh %249 : vector<8x128xf32>
    %c2_233 = arith.constant 2 : index
    %c0_234 = arith.constant 0 : index
    %c0_235 = arith.constant 0 : index
    %251 = vector.load %arg9[%c2_233, %c0_234, %c0_235] : memref<3x8x128xf32, #tpu.memory_space<vmem>>, vector<1x8x128xf32>
    %252 = vector.shape_cast %251 : vector<1x8x128xf32> to vector<8x128xf32>
    %253 = vector.shape_cast %250 : vector<8x128xf32> to vector<1x8x128xf32>
    tpu.vector_store %arg9[%c2_233, %c0_234, %c0_235], %253 {strides = array<i32>} : memref<3x8x128xf32, #tpu.memory_space<vmem>>, vector<1x8x128xf32>,
    %254 = arith.index_cast %c4_i32 : i32 to index
    %c0_236 = arith.constant 0 : index
    %c0_237 = arith.constant 0 : index
    %255 = vector.load %arg10[%254, %c0_236, %c0_237] : memref<8x8x128xf32, #tpu.memory_space<vmem>>, vector<1x8x128xf32>
    %256 = vector.shape_cast %255 : vector<1x8x128xf32> to vector<8x128xf32>
    %257 = vector.shape_cast %250 : vector<8x128xf32> to vector<1x8x128xf32>
    tpu.vector_store %arg10[%254, %c0_236, %c0_237], %257 {strides = array<i32>} : memref<8x8x128xf32, #tpu.memory_space<vmem>>, vector<1x8x128xf32>,
    %c5_i32 = arith.constant 5 : i32
    %258 = arith.index_cast %c5_i32 : i32 to index
    %c0_238 = arith.constant 0 : index
    %c0_239 = arith.constant 0 : index
    %259 = vector.load %arg2[%258, %c0_238, %c0_239] : memref<8x8x128xf32, #tpu.memory_space<vmem>>, vector<1x8x128xf32>
    %260 = vector.shape_cast %259 : vector<1x8x128xf32> to vector<8x128xf32>
    %c0_240 = arith.constant 0 : index
    %c0_241 = arith.constant 0 : index
    %c0_242 = arith.constant 0 : index
    %261 = vector.load %arg9[%c0_240, %c0_241, %c0_242] : memref<3x8x128xf32, #tpu.memory_space<vmem>>, vector<1x8x128xf32>
    %262 = vector.shape_cast %261 : vector<1x8x128xf32> to vector<8x128xf32>
    %c0_243 = arith.constant 0 : index
    %c0_244 = arith.constant 0 : index
    %c0_245 = arith.constant 0 : index
    %263 = vector.load %arg5[%c0_243, %c0_244, %c0_245] : memref<3x128x128xf32, #tpu.memory_space<vmem>>, vector<1x128x128xf32>
    %264 = vector.shape_cast %263 : vector<1x128x128xf32> to vector<128x128xf32>
    %cst_246 = arith.constant dense<0.000000e+00> : vector<8x128xf32>
    %265 = tpu.matmul %262, %264, %cst_246 {dimension_numbers = #tpu.dot_dimension_numbers<[1], [0], [0], [1], [0, 0, 1, 1], [], []>} : vector<8x128xf32>, vector<128x128xf32>, vector<8x128xf32> -> vector<8x128xf32>
    %266 = arith.addf %260, %265 : vector<8x128xf32>
    %267 = math.tanh %266 : vector<8x128xf32>
    %c0_247 = arith.constant 0 : index
    %c0_248 = arith.constant 0 : index
    %c0_249 = arith.constant 0 : index
    %268 = vector.load %arg9[%c0_247, %c0_248, %c0_249] : memref<3x8x128xf32, #tpu.memory_space<vmem>>, vector<1x8x128xf32>
    %269 = vector.shape_cast %268 : vector<1x8x128xf32> to vector<8x128xf32>
    %270 = vector.shape_cast %267 : vector<8x128xf32> to vector<1x8x128xf32>
    tpu.vector_store %arg9[%c0_247, %c0_248, %c0_249], %270 {strides = array<i32>} : memref<3x8x128xf32, #tpu.memory_space<vmem>>, vector<1x8x128xf32>,
    %c0_250 = arith.constant 0 : index
    %c0_251 = arith.constant 0 : index
    %c0_252 = arith.constant 0 : index
    %271 = vector.load %arg4[%c0_250, %c0_251, %c0_252] : memref<2x128x128xf32, #tpu.memory_space<vmem>>, vector<1x128x128xf32>
    %272 = vector.shape_cast %271 : vector<1x128x128xf32> to vector<128x128xf32>
    %cst_253 = arith.constant dense<0.000000e+00> : vector<8x128xf32>
    %273 = tpu.matmul %267, %272, %cst_253 {dimension_numbers = #tpu.dot_dimension_numbers<[1], [0], [0], [1], [0, 0, 1, 1], [], []>} : vector<8x128xf32>, vector<128x128xf32>, vector<8x128xf32> -> vector<8x128xf32>
    %c1_254 = arith.constant 1 : index
    %c0_255 = arith.constant 0 : index
    %c0_256 = arith.constant 0 : index
    %274 = vector.load %arg9[%c1_254, %c0_255, %c0_256] : memref<3x8x128xf32, #tpu.memory_space<vmem>>, vector<1x8x128xf32>
    %275 = vector.shape_cast %274 : vector<1x8x128xf32> to vector<8x128xf32>
    %c1_257 = arith.constant 1 : index
    %c0_258 = arith.constant 0 : index
    %c0_259 = arith.constant 0 : index
    %276 = vector.load %arg5[%c1_257, %c0_258, %c0_259] : memref<3x128x128xf32, #tpu.memory_space<vmem>>, vector<1x128x128xf32>
    %277 = vector.shape_cast %276 : vector<1x128x128xf32> to vector<128x128xf32>
    %cst_260 = arith.constant dense<0.000000e+00> : vector<8x128xf32>
    %278 = tpu.matmul %275, %277, %cst_260 {dimension_numbers = #tpu.dot_dimension_numbers<[1], [0], [0], [1], [0, 0, 1, 1], [], []>} : vector<8x128xf32>, vector<128x128xf32>, vector<8x128xf32> -> vector<8x128xf32>
    %279 = arith.addf %273, %278 : vector<8x128xf32>
    %c0_261 = arith.constant 0 : index
    %c0_262 = arith.constant 0 : index
    %c0_263 = arith.constant 0 : index
    %280 = vector.load %arg6[%c0_261, %c0_262, %c0_263] : memref<2x1x128xf32, #tpu.memory_space<vmem>>, vector<1x1x128xf32>
    %281 = vector.shape_cast %280 : vector<1x1x128xf32> to vector<1x128xf32>
    %282 = vector.broadcast %281 : vector<1x128xf32> to vector<8x128xf32>
    %283 = arith.addf %279, %282 : vector<8x128xf32>
    %284 = math.tanh %283 : vector<8x128xf32>
    %c1_264 = arith.constant 1 : index
    %c0_265 = arith.constant 0 : index
    %c0_266 = arith.constant 0 : index
    %285 = vector.load %arg9[%c1_264, %c0_265, %c0_266] : memref<3x8x128xf32, #tpu.memory_space<vmem>>, vector<1x8x128xf32>
    %286 = vector.shape_cast %285 : vector<1x8x128xf32> to vector<8x128xf32>
    %287 = vector.shape_cast %284 : vector<8x128xf32> to vector<1x8x128xf32>
    tpu.vector_store %arg9[%c1_264, %c0_265, %c0_266], %287 {strides = array<i32>} : memref<3x8x128xf32, #tpu.memory_space<vmem>>, vector<1x8x128xf32>,
    %c1_267 = arith.constant 1 : index
    %c0_268 = arith.constant 0 : index
    %c0_269 = arith.constant 0 : index
    %288 = vector.load %arg4[%c1_267, %c0_268, %c0_269] : memref<2x128x128xf32, #tpu.memory_space<vmem>>, vector<1x128x128xf32>
    %289 = vector.shape_cast %288 : vector<1x128x128xf32> to vector<128x128xf32>
    %cst_270 = arith.constant dense<0.000000e+00> : vector<8x128xf32>
    %290 = tpu.matmul %284, %289, %cst_270 {dimension_numbers = #tpu.dot_dimension_numbers<[1], [0], [0], [1], [0, 0, 1, 1], [], []>} : vector<8x128xf32>, vector<128x128xf32>, vector<8x128xf32> -> vector<8x128xf32>
    %c2_271 = arith.constant 2 : index
    %c0_272 = arith.constant 0 : index
    %c0_273 = arith.constant 0 : index
    %291 = vector.load %arg9[%c2_271, %c0_272, %c0_273] : memref<3x8x128xf32, #tpu.memory_space<vmem>>, vector<1x8x128xf32>
    %292 = vector.shape_cast %291 : vector<1x8x128xf32> to vector<8x128xf32>
    %c2_274 = arith.constant 2 : index
    %c0_275 = arith.constant 0 : index
    %c0_276 = arith.constant 0 : index
    %293 = vector.load %arg5[%c2_274, %c0_275, %c0_276] : memref<3x128x128xf32, #tpu.memory_space<vmem>>, vector<1x128x128xf32>
    %294 = vector.shape_cast %293 : vector<1x128x128xf32> to vector<128x128xf32>
    %cst_277 = arith.constant dense<0.000000e+00> : vector<8x128xf32>
    %295 = tpu.matmul %292, %294, %cst_277 {dimension_numbers = #tpu.dot_dimension_numbers<[1], [0], [0], [1], [0, 0, 1, 1], [], []>} : vector<8x128xf32>, vector<128x128xf32>, vector<8x128xf32> -> vector<8x128xf32>
    %296 = arith.addf %290, %295 : vector<8x128xf32>
    %c1_278 = arith.constant 1 : index
    %c0_279 = arith.constant 0 : index
    %c0_280 = arith.constant 0 : index
    %297 = vector.load %arg6[%c1_278, %c0_279, %c0_280] : memref<2x1x128xf32, #tpu.memory_space<vmem>>, vector<1x1x128xf32>
    %298 = vector.shape_cast %297 : vector<1x1x128xf32> to vector<1x128xf32>
    %299 = vector.broadcast %298 : vector<1x128xf32> to vector<8x128xf32>
    %300 = arith.addf %296, %299 : vector<8x128xf32>
    %301 = math.tanh %300 : vector<8x128xf32>
    %c2_281 = arith.constant 2 : index
    %c0_282 = arith.constant 0 : index
    %c0_283 = arith.constant 0 : index
    %302 = vector.load %arg9[%c2_281, %c0_282, %c0_283] : memref<3x8x128xf32, #tpu.memory_space<vmem>>, vector<1x8x128xf32>
    %303 = vector.shape_cast %302 : vector<1x8x128xf32> to vector<8x128xf32>
    %304 = vector.shape_cast %301 : vector<8x128xf32> to vector<1x8x128xf32>
    tpu.vector_store %arg9[%c2_281, %c0_282, %c0_283], %304 {strides = array<i32>} : memref<3x8x128xf32, #tpu.memory_space<vmem>>, vector<1x8x128xf32>,
    %305 = arith.index_cast %c5_i32 : i32 to index
    %c0_284 = arith.constant 0 : index
    %c0_285 = arith.constant 0 : index
    %306 = vector.load %arg10[%305, %c0_284, %c0_285] : memref<8x8x128xf32, #tpu.memory_space<vmem>>, vector<1x8x128xf32>
    %307 = vector.shape_cast %306 : vector<1x8x128xf32> to vector<8x128xf32>
    %308 = vector.shape_cast %301 : vector<8x128xf32> to vector<1x8x128xf32>
    tpu.vector_store %arg10[%305, %c0_284, %c0_285], %308 {strides = array<i32>} : memref<8x8x128xf32, #tpu.memory_space<vmem>>, vector<1x8x128xf32>,
    %c6_i32 = arith.constant 6 : i32
    %309 = arith.index_cast %c6_i32 : i32 to index
    %c0_286 = arith.constant 0 : index
    %c0_287 = arith.constant 0 : index
    %310 = vector.load %arg2[%309, %c0_286, %c0_287] : memref<8x8x128xf32, #tpu.memory_space<vmem>>, vector<1x8x128xf32>
    %311 = vector.shape_cast %310 : vector<1x8x128xf32> to vector<8x128xf32>
    %c0_288 = arith.constant 0 : index
    %c0_289 = arith.constant 0 : index
    %c0_290 = arith.constant 0 : index
    %312 = vector.load %arg9[%c0_288, %c0_289, %c0_290] : memref<3x8x128xf32, #tpu.memory_space<vmem>>, vector<1x8x128xf32>
    %313 = vector.shape_cast %312 : vector<1x8x128xf32> to vector<8x128xf32>
    %c0_291 = arith.constant 0 : index
    %c0_292 = arith.constant 0 : index
    %c0_293 = arith.constant 0 : index
    %314 = vector.load %arg5[%c0_291, %c0_292, %c0_293] : memref<3x128x128xf32, #tpu.memory_space<vmem>>, vector<1x128x128xf32>
    %315 = vector.shape_cast %314 : vector<1x128x128xf32> to vector<128x128xf32>
    %cst_294 = arith.constant dense<0.000000e+00> : vector<8x128xf32>
    %316 = tpu.matmul %313, %315, %cst_294 {dimension_numbers = #tpu.dot_dimension_numbers<[1], [0], [0], [1], [0, 0, 1, 1], [], []>} : vector<8x128xf32>, vector<128x128xf32>, vector<8x128xf32> -> vector<8x128xf32>
    %317 = arith.addf %311, %316 : vector<8x128xf32>
    %318 = math.tanh %317 : vector<8x128xf32>
    %c0_295 = arith.constant 0 : index
    %c0_296 = arith.constant 0 : index
    %c0_297 = arith.constant 0 : index
    %319 = vector.load %arg9[%c0_295, %c0_296, %c0_297] : memref<3x8x128xf32, #tpu.memory_space<vmem>>, vector<1x8x128xf32>
    %320 = vector.shape_cast %319 : vector<1x8x128xf32> to vector<8x128xf32>
    %321 = vector.shape_cast %318 : vector<8x128xf32> to vector<1x8x128xf32>
    tpu.vector_store %arg9[%c0_295, %c0_296, %c0_297], %321 {strides = array<i32>} : memref<3x8x128xf32, #tpu.memory_space<vmem>>, vector<1x8x128xf32>,
    %c0_298 = arith.constant 0 : index
    %c0_299 = arith.constant 0 : index
    %c0_300 = arith.constant 0 : index
    %322 = vector.load %arg4[%c0_298, %c0_299, %c0_300] : memref<2x128x128xf32, #tpu.memory_space<vmem>>, vector<1x128x128xf32>
    %323 = vector.shape_cast %322 : vector<1x128x128xf32> to vector<128x128xf32>
    %cst_301 = arith.constant dense<0.000000e+00> : vector<8x128xf32>
    %324 = tpu.matmul %318, %323, %cst_301 {dimension_numbers = #tpu.dot_dimension_numbers<[1], [0], [0], [1], [0, 0, 1, 1], [], []>} : vector<8x128xf32>, vector<128x128xf32>, vector<8x128xf32> -> vector<8x128xf32>
    %c1_302 = arith.constant 1 : index
    %c0_303 = arith.constant 0 : index
    %c0_304 = arith.constant 0 : index
    %325 = vector.load %arg9[%c1_302, %c0_303, %c0_304] : memref<3x8x128xf32, #tpu.memory_space<vmem>>, vector<1x8x128xf32>
    %326 = vector.shape_cast %325 : vector<1x8x128xf32> to vector<8x128xf32>
    %c1_305 = arith.constant 1 : index
    %c0_306 = arith.constant 0 : index
    %c0_307 = arith.constant 0 : index
    %327 = vector.load %arg5[%c1_305, %c0_306, %c0_307] : memref<3x128x128xf32, #tpu.memory_space<vmem>>, vector<1x128x128xf32>
    %328 = vector.shape_cast %327 : vector<1x128x128xf32> to vector<128x128xf32>
    %cst_308 = arith.constant dense<0.000000e+00> : vector<8x128xf32>
    %329 = tpu.matmul %326, %328, %cst_308 {dimension_numbers = #tpu.dot_dimension_numbers<[1], [0], [0], [1], [0, 0, 1, 1], [], []>} : vector<8x128xf32>, vector<128x128xf32>, vector<8x128xf32> -> vector<8x128xf32>
    %330 = arith.addf %324, %329 : vector<8x128xf32>
    %c0_309 = arith.constant 0 : index
    %c0_310 = arith.constant 0 : index
    %c0_311 = arith.constant 0 : index
    %331 = vector.load %arg6[%c0_309, %c0_310, %c0_311] : memref<2x1x128xf32, #tpu.memory_space<vmem>>, vector<1x1x128xf32>
    %332 = vector.shape_cast %331 : vector<1x1x128xf32> to vector<1x128xf32>
    %333 = vector.broadcast %332 : vector<1x128xf32> to vector<8x128xf32>
    %334 = arith.addf %330, %333 : vector<8x128xf32>
    %335 = math.tanh %334 : vector<8x128xf32>
    %c1_312 = arith.constant 1 : index
    %c0_313 = arith.constant 0 : index
    %c0_314 = arith.constant 0 : index
    %336 = vector.load %arg9[%c1_312, %c0_313, %c0_314] : memref<3x8x128xf32, #tpu.memory_space<vmem>>, vector<1x8x128xf32>
    %337 = vector.shape_cast %336 : vector<1x8x128xf32> to vector<8x128xf32>
    %338 = vector.shape_cast %335 : vector<8x128xf32> to vector<1x8x128xf32>
    tpu.vector_store %arg9[%c1_312, %c0_313, %c0_314], %338 {strides = array<i32>} : memref<3x8x128xf32, #tpu.memory_space<vmem>>, vector<1x8x128xf32>,
    %c1_315 = arith.constant 1 : index
    %c0_316 = arith.constant 0 : index
    %c0_317 = arith.constant 0 : index
    %339 = vector.load %arg4[%c1_315, %c0_316, %c0_317] : memref<2x128x128xf32, #tpu.memory_space<vmem>>, vector<1x128x128xf32>
    %340 = vector.shape_cast %339 : vector<1x128x128xf32> to vector<128x128xf32>
    %cst_318 = arith.constant dense<0.000000e+00> : vector<8x128xf32>
    %341 = tpu.matmul %335, %340, %cst_318 {dimension_numbers = #tpu.dot_dimension_numbers<[1], [0], [0], [1], [0, 0, 1, 1], [], []>} : vector<8x128xf32>, vector<128x128xf32>, vector<8x128xf32> -> vector<8x128xf32>
    %c2_319 = arith.constant 2 : index
    %c0_320 = arith.constant 0 : index
    %c0_321 = arith.constant 0 : index
    %342 = vector.load %arg9[%c2_319, %c0_320, %c0_321] : memref<3x8x128xf32, #tpu.memory_space<vmem>>, vector<1x8x128xf32>
    %343 = vector.shape_cast %342 : vector<1x8x128xf32> to vector<8x128xf32>
    %c2_322 = arith.constant 2 : index
    %c0_323 = arith.constant 0 : index
    %c0_324 = arith.constant 0 : index
    %344 = vector.load %arg5[%c2_322, %c0_323, %c0_324] : memref<3x128x128xf32, #tpu.memory_space<vmem>>, vector<1x128x128xf32>
    %345 = vector.shape_cast %344 : vector<1x128x128xf32> to vector<128x128xf32>
    %cst_325 = arith.constant dense<0.000000e+00> : vector<8x128xf32>
    %346 = tpu.matmul %343, %345, %cst_325 {dimension_numbers = #tpu.dot_dimension_numbers<[1], [0], [0], [1], [0, 0, 1, 1], [], []>} : vector<8x128xf32>, vector<128x128xf32>, vector<8x128xf32> -> vector<8x128xf32>
    %347 = arith.addf %341, %346 : vector<8x128xf32>
    %c1_326 = arith.constant 1 : index
    %c0_327 = arith.constant 0 : index
    %c0_328 = arith.constant 0 : index
    %348 = vector.load %arg6[%c1_326, %c0_327, %c0_328] : memref<2x1x128xf32, #tpu.memory_space<vmem>>, vector<1x1x128xf32>
    %349 = vector.shape_cast %348 : vector<1x1x128xf32> to vector<1x128xf32>
    %350 = vector.broadcast %349 : vector<1x128xf32> to vector<8x128xf32>
    %351 = arith.addf %347, %350 : vector<8x128xf32>
    %352 = math.tanh %351 : vector<8x128xf32>
    %c2_329 = arith.constant 2 : index
    %c0_330 = arith.constant 0 : index
    %c0_331 = arith.constant 0 : index
    %353 = vector.load %arg9[%c2_329, %c0_330, %c0_331] : memref<3x8x128xf32, #tpu.memory_space<vmem>>, vector<1x8x128xf32>
    %354 = vector.shape_cast %353 : vector<1x8x128xf32> to vector<8x128xf32>
    %355 = vector.shape_cast %352 : vector<8x128xf32> to vector<1x8x128xf32>
    tpu.vector_store %arg9[%c2_329, %c0_330, %c0_331], %355 {strides = array<i32>} : memref<3x8x128xf32, #tpu.memory_space<vmem>>, vector<1x8x128xf32>,
    %356 = arith.index_cast %c6_i32 : i32 to index
    %c0_332 = arith.constant 0 : index
    %c0_333 = arith.constant 0 : index
    %357 = vector.load %arg10[%356, %c0_332, %c0_333] : memref<8x8x128xf32, #tpu.memory_space<vmem>>, vector<1x8x128xf32>
    %358 = vector.shape_cast %357 : vector<1x8x128xf32> to vector<8x128xf32>
    %359 = vector.shape_cast %352 : vector<8x128xf32> to vector<1x8x128xf32>
    tpu.vector_store %arg10[%356, %c0_332, %c0_333], %359 {strides = array<i32>} : memref<8x8x128xf32, #tpu.memory_space<vmem>>, vector<1x8x128xf32>,
    %c7_i32 = arith.constant 7 : i32
    %360 = arith.index_cast %c7_i32 : i32 to index
    %c0_334 = arith.constant 0 : index
    %c0_335 = arith.constant 0 : index
    %361 = vector.load %arg2[%360, %c0_334, %c0_335] : memref<8x8x128xf32, #tpu.memory_space<vmem>>, vector<1x8x128xf32>
    %362 = vector.shape_cast %361 : vector<1x8x128xf32> to vector<8x128xf32>
    %c0_336 = arith.constant 0 : index
    %c0_337 = arith.constant 0 : index
    %c0_338 = arith.constant 0 : index
    %363 = vector.load %arg9[%c0_336, %c0_337, %c0_338] : memref<3x8x128xf32, #tpu.memory_space<vmem>>, vector<1x8x128xf32>
    %364 = vector.shape_cast %363 : vector<1x8x128xf32> to vector<8x128xf32>
    %c0_339 = arith.constant 0 : index
    %c0_340 = arith.constant 0 : index
    %c0_341 = arith.constant 0 : index
    %365 = vector.load %arg5[%c0_339, %c0_340, %c0_341] : memref<3x128x128xf32, #tpu.memory_space<vmem>>, vector<1x128x128xf32>
    %366 = vector.shape_cast %365 : vector<1x128x128xf32> to vector<128x128xf32>
    %cst_342 = arith.constant dense<0.000000e+00> : vector<8x128xf32>
    %367 = tpu.matmul %364, %366, %cst_342 {dimension_numbers = #tpu.dot_dimension_numbers<[1], [0], [0], [1], [0, 0, 1, 1], [], []>} : vector<8x128xf32>, vector<128x128xf32>, vector<8x128xf32> -> vector<8x128xf32>
    %368 = arith.addf %362, %367 : vector<8x128xf32>
    %369 = math.tanh %368 : vector<8x128xf32>
    %c0_343 = arith.constant 0 : index
    %c0_344 = arith.constant 0 : index
    %c0_345 = arith.constant 0 : index
    %370 = vector.load %arg9[%c0_343, %c0_344, %c0_345] : memref<3x8x128xf32, #tpu.memory_space<vmem>>, vector<1x8x128xf32>
    %371 = vector.shape_cast %370 : vector<1x8x128xf32> to vector<8x128xf32>
    %372 = vector.shape_cast %369 : vector<8x128xf32> to vector<1x8x128xf32>
    tpu.vector_store %arg9[%c0_343, %c0_344, %c0_345], %372 {strides = array<i32>} : memref<3x8x128xf32, #tpu.memory_space<vmem>>, vector<1x8x128xf32>,
    %c0_346 = arith.constant 0 : index
    %c0_347 = arith.constant 0 : index
    %c0_348 = arith.constant 0 : index
    %373 = vector.load %arg4[%c0_346, %c0_347, %c0_348] : memref<2x128x128xf32, #tpu.memory_space<vmem>>, vector<1x128x128xf32>
    %374 = vector.shape_cast %373 : vector<1x128x128xf32> to vector<128x128xf32>
    %cst_349 = arith.constant dense<0.000000e+00> : vector<8x128xf32>
    %375 = tpu.matmul %369, %374, %cst_349 {dimension_numbers = #tpu.dot_dimension_numbers<[1], [0], [0], [1], [0, 0, 1, 1], [], []>} : vector<8x128xf32>, vector<128x128xf32>, vector<8x128xf32> -> vector<8x128xf32>
    %c1_350 = arith.constant 1 : index
    %c0_351 = arith.constant 0 : index
    %c0_352 = arith.constant 0 : index
    %376 = vector.load %arg9[%c1_350, %c0_351, %c0_352] : memref<3x8x128xf32, #tpu.memory_space<vmem>>, vector<1x8x128xf32>
    %377 = vector.shape_cast %376 : vector<1x8x128xf32> to vector<8x128xf32>
    %c1_353 = arith.constant 1 : index
    %c0_354 = arith.constant 0 : index
    %c0_355 = arith.constant 0 : index
    %378 = vector.load %arg5[%c1_353, %c0_354, %c0_355] : memref<3x128x128xf32, #tpu.memory_space<vmem>>, vector<1x128x128xf32>
    %379 = vector.shape_cast %378 : vector<1x128x128xf32> to vector<128x128xf32>
    %cst_356 = arith.constant dense<0.000000e+00> : vector<8x128xf32>
    %380 = tpu.matmul %377, %379, %cst_356 {dimension_numbers = #tpu.dot_dimension_numbers<[1], [0], [0], [1], [0, 0, 1, 1], [], []>} : vector<8x128xf32>, vector<128x128xf32>, vector<8x128xf32> -> vector<8x128xf32>
    %381 = arith.addf %375, %380 : vector<8x128xf32>
    %c0_357 = arith.constant 0 : index
    %c0_358 = arith.constant 0 : index
    %c0_359 = arith.constant 0 : index
    %382 = vector.load %arg6[%c0_357, %c0_358, %c0_359] : memref<2x1x128xf32, #tpu.memory_space<vmem>>, vector<1x1x128xf32>
    %383 = vector.shape_cast %382 : vector<1x1x128xf32> to vector<1x128xf32>
    %384 = vector.broadcast %383 : vector<1x128xf32> to vector<8x128xf32>
    %385 = arith.addf %381, %384 : vector<8x128xf32>
    %386 = math.tanh %385 : vector<8x128xf32>
    %c1_360 = arith.constant 1 : index
    %c0_361 = arith.constant 0 : index
    %c0_362 = arith.constant 0 : index
    %387 = vector.load %arg9[%c1_360, %c0_361, %c0_362] : memref<3x8x128xf32, #tpu.memory_space<vmem>>, vector<1x8x128xf32>
    %388 = vector.shape_cast %387 : vector<1x8x128xf32> to vector<8x128xf32>
    %389 = vector.shape_cast %386 : vector<8x128xf32> to vector<1x8x128xf32>
    tpu.vector_store %arg9[%c1_360, %c0_361, %c0_362], %389 {strides = array<i32>} : memref<3x8x128xf32, #tpu.memory_space<vmem>>, vector<1x8x128xf32>,
    %c1_363 = arith.constant 1 : index
    %c0_364 = arith.constant 0 : index
    %c0_365 = arith.constant 0 : index
    %390 = vector.load %arg4[%c1_363, %c0_364, %c0_365] : memref<2x128x128xf32, #tpu.memory_space<vmem>>, vector<1x128x128xf32>
    %391 = vector.shape_cast %390 : vector<1x128x128xf32> to vector<128x128xf32>
    %cst_366 = arith.constant dense<0.000000e+00> : vector<8x128xf32>
    %392 = tpu.matmul %386, %391, %cst_366 {dimension_numbers = #tpu.dot_dimension_numbers<[1], [0], [0], [1], [0, 0, 1, 1], [], []>} : vector<8x128xf32>, vector<128x128xf32>, vector<8x128xf32> -> vector<8x128xf32>
    %c2_367 = arith.constant 2 : index
    %c0_368 = arith.constant 0 : index
    %c0_369 = arith.constant 0 : index
    %393 = vector.load %arg9[%c2_367, %c0_368, %c0_369] : memref<3x8x128xf32, #tpu.memory_space<vmem>>, vector<1x8x128xf32>
    %394 = vector.shape_cast %393 : vector<1x8x128xf32> to vector<8x128xf32>
    %c2_370 = arith.constant 2 : index
    %c0_371 = arith.constant 0 : index
    %c0_372 = arith.constant 0 : index
    %395 = vector.load %arg5[%c2_370, %c0_371, %c0_372] : memref<3x128x128xf32, #tpu.memory_space<vmem>>, vector<1x128x128xf32>
    %396 = vector.shape_cast %395 : vector<1x128x128xf32> to vector<128x128xf32>
    %cst_373 = arith.constant dense<0.000000e+00> : vector<8x128xf32>
    %397 = tpu.matmul %394, %396, %cst_373 {dimension_numbers = #tpu.dot_dimension_numbers<[1], [0], [0], [1], [0, 0, 1, 1], [], []>} : vector<8x128xf32>, vector<128x128xf32>, vector<8x128xf32> -> vector<8x128xf32>
    %398 = arith.addf %392, %397 : vector<8x128xf32>
    %c1_374 = arith.constant 1 : index
    %c0_375 = arith.constant 0 : index
    %c0_376 = arith.constant 0 : index
    %399 = vector.load %arg6[%c1_374, %c0_375, %c0_376] : memref<2x1x128xf32, #tpu.memory_space<vmem>>, vector<1x1x128xf32>
    %400 = vector.shape_cast %399 : vector<1x1x128xf32> to vector<1x128xf32>
    %401 = vector.broadcast %400 : vector<1x128xf32> to vector<8x128xf32>
    %402 = arith.addf %398, %401 : vector<8x128xf32>
    %403 = math.tanh %402 : vector<8x128xf32>
    %c2_377 = arith.constant 2 : index
    %c0_378 = arith.constant 0 : index
    %c0_379 = arith.constant 0 : index
    %404 = vector.load %arg9[%c2_377, %c0_378, %c0_379] : memref<3x8x128xf32, #tpu.memory_space<vmem>>, vector<1x8x128xf32>
    %405 = vector.shape_cast %404 : vector<1x8x128xf32> to vector<8x128xf32>
    %406 = vector.shape_cast %403 : vector<8x128xf32> to vector<1x8x128xf32>
    tpu.vector_store %arg9[%c2_377, %c0_378, %c0_379], %406 {strides = array<i32>} : memref<3x8x128xf32, #tpu.memory_space<vmem>>, vector<1x8x128xf32>,
    %407 = arith.index_cast %c7_i32 : i32 to index
    %c0_380 = arith.constant 0 : index
    %c0_381 = arith.constant 0 : index
    %408 = vector.load %arg10[%407, %c0_380, %c0_381] : memref<8x8x128xf32, #tpu.memory_space<vmem>>, vector<1x8x128xf32>
    %409 = vector.shape_cast %408 : vector<1x8x128xf32> to vector<8x128xf32>
    %410 = vector.shape_cast %403 : vector<8x128xf32> to vector<1x8x128xf32>
    tpu.vector_store %arg10[%407, %c0_380, %c0_381], %410 {strides = array<i32>} : memref<8x8x128xf32, #tpu.memory_space<vmem>>, vector<1x8x128xf32>,
    %c8_i32 = arith.constant 8 : i32
    %c0_382 = arith.constant 0 : index
    %c0_383 = arith.constant 0 : index
    %c0_384 = arith.constant 0 : index
    %411 = vector.load %arg10[%c0_382, %c0_383, %c0_384] : memref<8x8x128xf32, #tpu.memory_space<vmem>>, vector<1x8x128xf32>
    %412 = vector.shape_cast %411 : vector<1x8x128xf32> to vector<8x128xf32>
    %c0_385 = arith.constant 0 : index
    %c0_386 = arith.constant 0 : index
    %c0_387 = arith.constant 0 : index
    %413 = vector.load %arg7[%c0_385, %c0_386, %c0_387] : memref<8x8x128xf32, #tpu.memory_space<vmem>>, vector<8x1x128xf32>
    %414 = vector.shape_cast %413 : vector<8x1x128xf32> to vector<8x128xf32>
    %415 = vector.shape_cast %412 : vector<8x128xf32> to vector<8x1x128xf32>
    tpu.vector_store %arg7[%c0_385, %c0_386, %c0_387], %415 {strides = array<i32>} : memref<8x8x128xf32, #tpu.memory_space<vmem>>, vector<8x1x128xf32>,
    %c1_388 = arith.constant 1 : index
    %c0_389 = arith.constant 0 : index
    %c0_390 = arith.constant 0 : index
    %416 = vector.load %arg10[%c1_388, %c0_389, %c0_390] : memref<8x8x128xf32, #tpu.memory_space<vmem>>, vector<1x8x128xf32>
    %417 = vector.shape_cast %416 : vector<1x8x128xf32> to vector<8x128xf32>
    %c0_391 = arith.constant 0 : index
    %c1_392 = arith.constant 1 : index
    %c0_393 = arith.constant 0 : index
    %418 = vector.load %arg7[%c0_391, %c1_392, %c0_393] : memref<8x8x128xf32, #tpu.memory_space<vmem>>, vector<8x1x128xf32>
    %419 = vector.shape_cast %418 : vector<8x1x128xf32> to vector<8x128xf32>
    %420 = vector.shape_cast %417 : vector<8x128xf32> to vector<8x1x128xf32>
    tpu.vector_store %arg7[%c0_391, %c1_392, %c0_393], %420 {strides = array<i32>} : memref<8x8x128xf32, #tpu.memory_space<vmem>>, vector<8x1x128xf32>,
    %c2_394 = arith.constant 2 : index
    %c0_395 = arith.constant 0 : index
    %c0_396 = arith.constant 0 : index
    %421 = vector.load %arg10[%c2_394, %c0_395, %c0_396] : memref<8x8x128xf32, #tpu.memory_space<vmem>>, vector<1x8x128xf32>
    %422 = vector.shape_cast %421 : vector<1x8x128xf32> to vector<8x128xf32>
    %c0_397 = arith.constant 0 : index
    %c2_398 = arith.constant 2 : index
    %c0_399 = arith.constant 0 : index
    %423 = vector.load %arg7[%c0_397, %c2_398, %c0_399] : memref<8x8x128xf32, #tpu.memory_space<vmem>>, vector<8x1x128xf32>
    %424 = vector.shape_cast %423 : vector<8x1x128xf32> to vector<8x128xf32>
    %425 = vector.shape_cast %422 : vector<8x128xf32> to vector<8x1x128xf32>
    tpu.vector_store %arg7[%c0_397, %c2_398, %c0_399], %425 {strides = array<i32>} : memref<8x8x128xf32, #tpu.memory_space<vmem>>, vector<8x1x128xf32>,
    %c3 = arith.constant 3 : index
    %c0_400 = arith.constant 0 : index
    %c0_401 = arith.constant 0 : index
    %426 = vector.load %arg10[%c3, %c0_400, %c0_401] : memref<8x8x128xf32, #tpu.memory_space<vmem>>, vector<1x8x128xf32>
    %427 = vector.shape_cast %426 : vector<1x8x128xf32> to vector<8x128xf32>
    %c0_402 = arith.constant 0 : index
    %c3_403 = arith.constant 3 : index
    %c0_404 = arith.constant 0 : index
    %428 = vector.load %arg7[%c0_402, %c3_403, %c0_404] : memref<8x8x128xf32, #tpu.memory_space<vmem>>, vector<8x1x128xf32>
    %429 = vector.shape_cast %428 : vector<8x1x128xf32> to vector<8x128xf32>
    %430 = vector.shape_cast %427 : vector<8x128xf32> to vector<8x1x128xf32>
    tpu.vector_store %arg7[%c0_402, %c3_403, %c0_404], %430 {strides = array<i32>} : memref<8x8x128xf32, #tpu.memory_space<vmem>>, vector<8x1x128xf32>,
    %c4 = arith.constant 4 : index
    %c0_405 = arith.constant 0 : index
    %c0_406 = arith.constant 0 : index
    %431 = vector.load %arg10[%c4, %c0_405, %c0_406] : memref<8x8x128xf32, #tpu.memory_space<vmem>>, vector<1x8x128xf32>
    %432 = vector.shape_cast %431 : vector<1x8x128xf32> to vector<8x128xf32>
    %c0_407 = arith.constant 0 : index
    %c4_408 = arith.constant 4 : index
    %c0_409 = arith.constant 0 : index
    %433 = vector.load %arg7[%c0_407, %c4_408, %c0_409] : memref<8x8x128xf32, #tpu.memory_space<vmem>>, vector<8x1x128xf32>
    %434 = vector.shape_cast %433 : vector<8x1x128xf32> to vector<8x128xf32>
    %435 = vector.shape_cast %432 : vector<8x128xf32> to vector<8x1x128xf32>
    tpu.vector_store %arg7[%c0_407, %c4_408, %c0_409], %435 {strides = array<i32>} : memref<8x8x128xf32, #tpu.memory_space<vmem>>, vector<8x1x128xf32>,
    %c5 = arith.constant 5 : index
    %c0_410 = arith.constant 0 : index
    %c0_411 = arith.constant 0 : index
    %436 = vector.load %arg10[%c5, %c0_410, %c0_411] : memref<8x8x128xf32, #tpu.memory_space<vmem>>, vector<1x8x128xf32>
    %437 = vector.shape_cast %436 : vector<1x8x128xf32> to vector<8x128xf32>
    %c0_412 = arith.constant 0 : index
    %c5_413 = arith.constant 5 : index
    %c0_414 = arith.constant 0 : index
    %438 = vector.load %arg7[%c0_412, %c5_413, %c0_414] : memref<8x8x128xf32, #tpu.memory_space<vmem>>, vector<8x1x128xf32>
    %439 = vector.shape_cast %438 : vector<8x1x128xf32> to vector<8x128xf32>
    %440 = vector.shape_cast %437 : vector<8x128xf32> to vector<8x1x128xf32>
    tpu.vector_store %arg7[%c0_412, %c5_413, %c0_414], %440 {strides = array<i32>} : memref<8x8x128xf32, #tpu.memory_space<vmem>>, vector<8x1x128xf32>,
    %c6 = arith.constant 6 : index
    %c0_415 = arith.constant 0 : index
    %c0_416 = arith.constant 0 : index
    %441 = vector.load %arg10[%c6, %c0_415, %c0_416] : memref<8x8x128xf32, #tpu.memory_space<vmem>>, vector<1x8x128xf32>
    %442 = vector.shape_cast %441 : vector<1x8x128xf32> to vector<8x128xf32>
    %c0_417 = arith.constant 0 : index
    %c6_418 = arith.constant 6 : index
    %c0_419 = arith.constant 0 : index
    %443 = vector.load %arg7[%c0_417, %c6_418, %c0_419] : memref<8x8x128xf32, #tpu.memory_space<vmem>>, vector<8x1x128xf32>
    %444 = vector.shape_cast %443 : vector<8x1x128xf32> to vector<8x128xf32>
    %445 = vector.shape_cast %442 : vector<8x128xf32> to vector<8x1x128xf32>
    tpu.vector_store %arg7[%c0_417, %c6_418, %c0_419], %445 {strides = array<i32>} : memref<8x8x128xf32, #tpu.memory_space<vmem>>, vector<8x1x128xf32>,
    %c7 = arith.constant 7 : index
    %c0_420 = arith.constant 0 : index
    %c0_421 = arith.constant 0 : index
    %446 = vector.load %arg10[%c7, %c0_420, %c0_421] : memref<8x8x128xf32, #tpu.memory_space<vmem>>, vector<1x8x128xf32>
    %447 = vector.shape_cast %446 : vector<1x8x128xf32> to vector<8x128xf32>
    %c0_422 = arith.constant 0 : index
    %c7_423 = arith.constant 7 : index
    %c0_424 = arith.constant 0 : index
    %448 = vector.load %arg7[%c0_422, %c7_423, %c0_424] : memref<8x8x128xf32, #tpu.memory_space<vmem>>, vector<8x1x128xf32>
    %449 = vector.shape_cast %448 : vector<8x1x128xf32> to vector<8x128xf32>
    %450 = vector.shape_cast %447 : vector<8x128xf32> to vector<8x1x128xf32>
    tpu.vector_store %arg7[%c0_422, %c7_423, %c0_424], %450 {strides = array<i32>} : memref<8x8x128xf32, #tpu.memory_space<vmem>>, vector<8x1x128xf32>,
    %c4_i32_425 = arith.constant 4 : i32
    %451 = arith.cmpi eq, %arg1, %c4_i32_425 : i32
    %452 = arith.extui %451 : i1 to i32
    %c0_i32_426 = arith.constant 0 : i32
    %453 = arith.cmpi ne, %452, %c0_i32_426 : i32
    scf.if %453 {
      %c0_427 = arith.constant 0 : index
      %c0_428 = arith.constant 0 : index
      %c0_429 = arith.constant 0 : index
      %454 = vector.load %arg9[%c0_427, %c0_428, %c0_429] : memref<3x8x128xf32, #tpu.memory_space<vmem>>, vector<3x8x128xf32>
      %c0_430 = arith.constant 0 : index
      %c0_431 = arith.constant 0 : index
      %c0_432 = arith.constant 0 : index
      %455 = vector.load %arg8[%c0_430, %c0_431, %c0_432] : memref<3x8x128xf32, #tpu.memory_space<vmem>>, vector<3x8x128xf32>
      tpu.vector_store %arg8[%c0_430, %c0_431, %c0_432], %454 {strides = array<i32>} : memref<3x8x128xf32, #tpu.memory_space<vmem>>, vector<3x8x128xf32>,
    } else {
    }
    return
  }
  func.func @transform_0(%arg0: i32, %arg1: i32) -> (i32, i32, i32) {
    %c0_i32 = arith.constant 0 : i32
    %c0_i32_0 = arith.constant 0 : i32
    return %arg1, %arg0, %c0_i32 : i32, i32, i32
  }
  func.func @transform_1(%arg0: i32, %arg1: i32) -> (i32, i32, i32) {
    %c0_i32 = arith.constant 0 : i32
    %c0_i32_0 = arith.constant 0 : i32
    %c0_i32_1 = arith.constant 0 : i32
    return %c0_i32, %arg0, %c0_i32_0 : i32, i32, i32
  }
  func.func @transform_2(%arg0: i32, %arg1: i32) -> (i32, i32, i32) {
    %c0_i32 = arith.constant 0 : i32
    %c0_i32_0 = arith.constant 0 : i32
    %c0_i32_1 = arith.constant 0 : i32
    %c0_i32_2 = arith.constant 0 : i32
    return %c0_i32, %c0_i32_0, %c0_i32_1 : i32, i32, i32
  }
  func.func @transform_3(%arg0: i32, %arg1: i32) -> (i32, i32, i32) {
    %c0_i32 = arith.constant 0 : i32
    %c0_i32_0 = arith.constant 0 : i32
    %c0_i32_1 = arith.constant 0 : i32
    %c0_i32_2 = arith.constant 0 : i32
    return %c0_i32, %c0_i32_0, %c0_i32_1 : i32, i32, i32
  }
  func.func @transform_4(%arg0: i32, %arg1: i32) -> (i32, i32, i32) {
    %c0_i32 = arith.constant 0 : i32
    %c0_i32_0 = arith.constant 0 : i32
    %c0_i32_1 = arith.constant 0 : i32
    %c0_i32_2 = arith.constant 0 : i32
    return %c0_i32, %c0_i32_0, %c0_i32_1 : i32, i32, i32
  }
  func.func @transform_5(%arg0: i32, %arg1: i32) -> (i32, i32, i32) {
    %c0_i32 = arith.constant 0 : i32
    %c0_i32_0 = arith.constant 0 : i32
    return %arg0, %arg1, %c0_i32 : i32, i32, i32
  }
  func.func @transform_6(%arg0: i32, %arg1: i32) -> (i32, i32, i32) {
    %c0_i32 = arith.constant 0 : i32
    %c0_i32_0 = arith.constant 0 : i32
    %c0_i32_1 = arith.constant 0 : i32
    return %c0_i32, %arg0, %c0_i32_0 : i32, i32, i32
  }
}

module attributes {stable_mosaic.version = 11 : i64} {
  func.func @_gemm_bias_kernel(%arg0: i32, %arg1: i32, %arg2: memref<256x128xf32, #tpu.memory_space<vmem>>, %arg3: memref<128x128xf32, #tpu.memory_space<vmem>>, %arg4: memref<1x128xf32, #tpu.memory_space<vmem>>, %arg5: memref<256x128xf32, #tpu.memory_space<vmem>>) attributes {dimension_semantics = [#tpu.dimension_semantics<parallel>, #tpu.dimension_semantics<parallel>], iteration_bounds = array<i64: 2, 1>, scalar_prefetch = 0 : i64, scratch_operands = 0 : i64, tpu.core_type = #tpu.core_type<tc>, window_params = [{transform_indices = @transform_0, window_bounds = array<i64: 256, 128>}, {transform_indices = @transform_1, window_bounds = array<i64: 128, 128>}, {transform_indices = @transform_2, window_bounds = array<i64: 1, 128>}, {transform_indices = @transform_3, window_bounds = array<i64: 256, 128>}]} {
    %c0 = arith.constant 0 : index
    %c0_0 = arith.constant 0 : index
    %0 = vector.load %arg2[%c0, %c0_0] : memref<256x128xf32, #tpu.memory_space<vmem>>, vector<256x128xf32>
    %c0_1 = arith.constant 0 : index
    %c0_2 = arith.constant 0 : index
    %1 = vector.load %arg3[%c0_1, %c0_2] : memref<128x128xf32, #tpu.memory_space<vmem>>, vector<128x128xf32>
    %cst = arith.constant dense<0.000000e+00> : vector<256x128xf32>
    %2 = tpu.matmul %0, %1, %cst {dimension_numbers = #tpu.dot_dimension_numbers<[1], [0], [0], [1], [0, 0, 1, 1], [], []>} : vector<256x128xf32>, vector<128x128xf32>, vector<256x128xf32> -> vector<256x128xf32>
    %c0_3 = arith.constant 0 : index
    %c0_4 = arith.constant 0 : index
    %3 = vector.load %arg4[%c0_3, %c0_4] : memref<1x128xf32, #tpu.memory_space<vmem>>, vector<1x128xf32>
    %4 = vector.broadcast %3 : vector<1x128xf32> to vector<256x128xf32>
    %5 = arith.addf %2, %4 : vector<256x128xf32>
    %c0_5 = arith.constant 0 : index
    %c0_6 = arith.constant 0 : index
    %6 = vector.load %arg5[%c0_5, %c0_6] : memref<256x128xf32, #tpu.memory_space<vmem>>, vector<256x128xf32>
    tpu.vector_store %arg5[%c0_5, %c0_6], %5 {strides = array<i32>} : memref<256x128xf32, #tpu.memory_space<vmem>>, vector<256x128xf32>,
    return
  }
  func.func @transform_0(%arg0: i32, %arg1: i32) -> (i32, i32) {
    %c0_i32 = arith.constant 0 : i32
    %c0_i32_0 = arith.constant 0 : i32
    return %arg0, %c0_i32 : i32, i32
  }
  func.func @transform_1(%arg0: i32, %arg1: i32) -> (i32, i32) {
    %c0_i32 = arith.constant 0 : i32
    %c0_i32_0 = arith.constant 0 : i32
    return %c0_i32, %arg1 : i32, i32
  }
  func.func @transform_2(%arg0: i32, %arg1: i32) -> (i32, i32) {
    %c0_i32 = arith.constant 0 : i32
    %c0_i32_0 = arith.constant 0 : i32
    return %c0_i32, %arg1 : i32, i32
  }
  func.func @transform_3(%arg0: i32, %arg1: i32) -> (i32, i32) {
    %c0_i32 = arith.constant 0 : i32
    return %arg0, %arg1 : i32, i32
  }
}

</mosaic_0001>

<bundles_post_ra>
// kernel: rnn_module_forward.3
= control target key start
LH: loop header
LB: loop body
LE: loop exit
PB: predicated region body
PF: predicated region fallthrough
CT: control target
= control target key end

     0   :  { %s735_s12 = smov 0   ;;  %s737_s13 = smov 0   ;;  %s924_s0 = inlined_call_operand.vmem [shape: f32[512,32], index: 0, kind: input, shape index: {}]   ;;  %s925_s1 = inlined_call_operand.vmem [shape: f32[32,128], index: 1, kind: input, shape index: {}]   ;;  %s926_s2 = inlined_call_operand.vmem [shape: f32[1,128], index: 2, kind: input, shape index: {}]   ;;  %s927_s3 = inlined_call_operand.vmem [shape: f32[512,128], index: 3, kind: output, shape index: {}]  }
   0x1   :  { %s739_s14 = smov 0  }
   0x2 LB: > { %s25_s15 = sadd.s32 1, %s709_s13  ;;  %p615_p0 = scmp.ge.s32.totalorder %s713_s14, 1  ;;  %s713_s14 = sphi %s739_s14, %s13_s14   ;;  %s709_s13 = sphi %s737_s13, %s929_s13   ;;  %s705_s12 = sphi %s735_s12, %s928_s12  }
   0x3   : > { %p27_p1 = scmp.ge.s32.totalorder %s25_s15, 2  ;;  %p169_p2 = scmp.lt.s32.totalorder %s713_s14, 3 }
   0x5   : > { %s931_s15 = smov (%p27_p1, %s25_s15), 0  ;;  %p170_p3 = pnand %p615_p0, %p169_p2 }
   0x6   : > { %s616_s20 = sshll.u32 (!%p170_p3), %s705_s12, 5 }
   0x7   : > { %173 = sbr.rel (%p170_p3) target bundleno = 212 (0xd4), region = 32  ;;  %p204_p4 = scmp.lt.s32.totalorder (!%p170_p3), %s616_s20, 63 }
   0xc   : > { %v260_v0 = vld [vmem:[%s925_s1 + $0x18] sm:$0xff]  ;;  %v259_v1 = vld [vmem:[%s925_s1 + $0x10] sm:$0xff]  ;;  %v258_v2 = vld [vmem:[%s925_s1 + $0x8] sm:$0xff]  ;;  %s933_s20 = smov (!%p204_p4, %s616_s20), 63  ;;  %vm265_vm0 = vcmask 261120  }
   0xd   : > { %655 = vmatpush.msra.mxu2 %v260_v0  ;;  %656 = vmatpush.msra.mxu3 %v260_v0  ;;  %v257_v3 = vld [vmem:[%s925_s1] sm:$0xff]  ;;  %s617_s25 = sshll.u32 %s933_s20, 3 }
   0xe   : > { %374 = vmatpush.msra.mxu0 %v260_v0  ;;  %654 = vmatpush.msra.mxu1 %v260_v0  ;;  %s773_s28 = scalar_lea.vmem %s924_s0, %s617_s25  ;;  %v842_v36 = vld [vmem:[%s926_s2] ss:$0 sm:$0xff]  ;;  %s849_s6 = scalar_lea.vmem %s927_s3, %s617_s25 }
   0xf   : > { %658 = vmatpush.msra.mxu2 %v259_v1  ;;  %659 = vmatpush.msra.mxu3 %v259_v1  ;;  %v241_v4 = vld [vmem:[%s773_s28 + $0x80] sm:$0xff]  ;;  %v242_v8 = vld [vmem:[%s773_s28 + $0x88] sm:$0xff]  ;;  %v243_v12 = vld [vmem:[%s773_s28 + $0x90] sm:$0xff] }
  0x10   : > { %375 = vmatpush.msra.mxu0 %v259_v1  ;;  %657 = vmatpush.msra.mxu1 %v259_v1  ;;  %v249_v5 = vld [vmem:[%s773_s28 + $0xc0] sm:$0xff]  ;;  %v250_v9 = vld [vmem:[%s773_s28 + $0xc8] sm:$0xff]  ;;  %v251_v13 = vld [vmem:[%s773_s28 + $0xd0] sm:$0xff] }
  0x11   : > { %661 = vmatpush.msra.mxu2 %v258_v2  ;;  %662 = vmatpush.msra.mxu3 %v258_v2  ;;  %v225_v6 = vld [vmem:[%s773_s28] sm:$0xff]  ;;  %v226_v10 = vld [vmem:[%s773_s28 + $0x8] sm:$0xff]  ;;  %v227_v14 = vld [vmem:[%s773_s28 + $0x10] sm:$0xff] }
  0x12   : > { %376 = vmatpush.msra.mxu0 %v258_v2  ;;  %660 = vmatpush.msra.mxu1 %v258_v2  ;;  %v233_v7 = vld [vmem:[%s773_s28 + $0x40] sm:$0xff]  ;;  %v234_v11 = vld [vmem:[%s773_s28 + $0x48] sm:$0xff]  ;;  %v235_v15 = vld [vmem:[%s773_s28 + $0x50] sm:$0xff] }
  0x13   : > { %664 = vmatpush.msra.mxu2 %v257_v3  ;;  %665 = vmatpush.msra.mxu3 %v257_v3  ;;  %v244_v16 = vld [vmem:[%s773_s28 + $0x98] sm:$0xff]  ;;  %v245_v20 = vld [vmem:[%s773_s28 + $0xa0] sm:$0xff]  ;;  %v246_v24 = vld [vmem:[%s773_s28 + $0xa8] sm:$0xff] }
  0x14   : > { %636 = vmatmul.msk.f32.vlgmr.msra.gmra.mxu2 %vm265_vm0, %v241_v4  ;;  %644 = vmatmul.msk.f32.vlgmr.msra.gmra.mxu3 %vm265_vm0, %v249_v5  ;;  %v252_v17 = vld [vmem:[%s773_s28 + $0xd8] sm:$0xff]  ;;  %v253_v21 = vld [vmem:[%s773_s28 + $0xe0] sm:$0xff]  ;;  %v254_v25 = vld [vmem:[%s773_s28 + $0xe8] sm:$0xff] }
  0x15   : > { %377 = vmatpush.msra.mxu0 %v257_v3  ;;  %663 = vmatpush.msra.mxu1 %v257_v3  ;;  %v228_v18 = vld [vmem:[%s773_s28 + $0x18] sm:$0xff]  ;;  %v229_v22 = vld [vmem:[%s773_s28 + $0x20] sm:$0xff]  ;;  %v230_v26 = vld [vmem:[%s773_s28 + $0x28] sm:$0xff] }
  0x16   : > { %620 = vmatmul.msk.f32.vlgmr.msra.gmra.mxu0 %vm265_vm0, %v225_v6  ;;  %628 = vmatmul.msk.f32.vlgmr.msra.gmra.mxu1 %vm265_vm0, %v233_v7  ;;  %v236_v19 = vld [vmem:[%s773_s28 + $0x58] sm:$0xff]  ;;  %v237_v23 = vld [vmem:[%s773_s28 + $0x60] sm:$0xff]  ;;  %v238_v27 = vld [vmem:[%s773_s28 + $0x68] sm:$0xff] }
  0x17   : > { %v247_v28 = vld [vmem:[%s773_s28 + $0xb0] sm:$0xff]  ;;  %v248_v32 = vld [vmem:[%s773_s28 + $0xb8] sm:$0xff] }
  0x18   : > { %v255_v29 = vld [vmem:[%s773_s28 + $0xf0] sm:$0xff]  ;;  %v256_v33 = vld [vmem:[%s773_s28 + $0xf8] sm:$0xff] }
  0x19   : > { %v231_v30 = vld [vmem:[%s773_s28 + $0x30] sm:$0xff]  ;;  %v232_v34 = vld [vmem:[%s773_s28 + $0x38] sm:$0xff] }
  0x1a   : > { %v239_v31 = vld [vmem:[%s773_s28 + $0x70] sm:$0xff]  ;;  %v240_v35 = vld [vmem:[%s773_s28 + $0x78] sm:$0xff] }
  0x1c   : > { %637 = vmatmul.msk.f32.gmra.mxu2 %vm265_vm0, %v242_v8  ;;  %645 = vmatmul.msk.f32.gmra.mxu3 %vm265_vm0, %v250_v9 }
  0x1e   : > { %621 = vmatmul.msk.f32.gmra.mxu0 %vm265_vm0, %v226_v10  ;;  %629 = vmatmul.msk.f32.gmra.mxu1 %vm265_vm0, %v234_v11 }
  0x24   : > { %638 = vmatmul.msk.f32.gmra.mxu2 %vm265_vm0, %v243_v12  ;;  %646 = vmatmul.msk.f32.gmra.mxu3 %vm265_vm0, %v251_v13 }
  0x26   : > { %622 = vmatmul.msk.f32.gmra.mxu0 %vm265_vm0, %v227_v14  ;;  %630 = vmatmul.msk.f32.gmra.mxu1 %vm265_vm0, %v235_v15 }
  0x2c   : > { %639 = vmatmul.msk.f32.gmra.mxu2 %vm265_vm0, %v244_v16  ;;  %647 = vmatmul.msk.f32.gmra.mxu3 %vm265_vm0, %v252_v17 }
  0x2e   : > { %623 = vmatmul.msk.f32.gmra.mxu0 %vm265_vm0, %v228_v18  ;;  %631 = vmatmul.msk.f32.gmra.mxu1 %vm265_vm0, %v236_v19 }
  0x34   : > { %640 = vmatmul.msk.f32.gmra.mxu2 %vm265_vm0, %v245_v20  ;;  %648 = vmatmul.msk.f32.gmra.mxu3 %vm265_vm0, %v253_v21 }
  0x36   : > { %624 = vmatmul.msk.f32.gmra.mxu0 %vm265_vm0, %v229_v22  ;;  %632 = vmatmul.msk.f32.gmra.mxu1 %vm265_vm0, %v237_v23 }
  0x3c   : > { %641 = vmatmul.msk.f32.gmra.mxu2 %vm265_vm0, %v246_v24  ;;  %649 = vmatmul.msk.f32.gmra.mxu3 %vm265_vm0, %v254_v25 }
  0x3e   : > { %625 = vmatmul.msk.f32.gmra.mxu0 %vm265_vm0, %v230_v26  ;;  %633 = vmatmul.msk.f32.gmra.mxu1 %vm265_vm0, %v238_v27 }
  0x44   : > { %642 = vmatmul.msk.f32.gmra.mxu2 %vm265_vm0, %v247_v28  ;;  %650 = vmatmul.msk.f32.gmra.mxu3 %vm265_vm0, %v255_v29 }
  0x46   : > { %626 = vmatmul.msk.f32.gmra.mxu0 %vm265_vm0, %v231_v30  ;;  %634 = vmatmul.msk.f32.gmra.mxu1 %vm265_vm0, %v239_v31 }
  0x4c   : > { %643 = vmatmul.msk.f32.gmra.mxu2 %vm265_vm0, %v248_v32  ;;  %651 = vmatmul.msk.f32.gmra.mxu3 %vm265_vm0, %v256_v33 }
  0x4e   : > { %627 = vmatmul.msk.f32.gmra.mxu0 %vm265_vm0, %v232_v34  ;;  %635 = vmatmul.msk.f32.gmra.mxu1 %vm265_vm0, %v240_v35 }
  0x93   : > { %v379_v37 = vpop.f32.mrf.mxu0  ;;  %v403_v38 = vpop.f32.mrf.mxu1 }
  0x94   : > { %v380_v39 = vadd.f32 %v842_v36, %v379_v37  ;;  %v404_v40 = vadd.f32 %v842_v36, %v403_v38 }
  0x96   : > { %475 = vst [vmem:[%s849_s6] sm:$0xff] %v380_v39 }
  0x97   : > { %483 = vst [vmem:[%s849_s6 + $0x40] sm:$0xff] %v404_v40  ;;  %v427_v41 = vpop.f32.mrf.mxu2  ;;  %v451_v42 = vpop.f32.mrf.mxu3 }
  0x98   : > { %v428_v43 = vadd.f32 %v842_v36, %v427_v41  ;;  %v452_v44 = vadd.f32 %v842_v36, %v451_v42 }
  0x9a   : > { %491 = vst [vmem:[%s849_s6 + $0x80] sm:$0xff] %v428_v43 }
  0x9b   : > { %499 = vst [vmem:[%s849_s6 + $0xc0] sm:$0xff] %v452_v44  ;;  %v382_v45 = vpop.f32.mrf.mxu0  ;;  %v406_v46 = vpop.f32.mrf.mxu1 }
  0x9c   : > { %v383_v47 = vadd.f32 %v842_v36, %v382_v45  ;;  %v407_v48 = vadd.f32 %v842_v36, %v406_v46 }
  0x9e   : > { %476 = vst [vmem:[%s849_s6 + $0x8] sm:$0xff] %v383_v47 }
  0x9f   : > { %484 = vst [vmem:[%s849_s6 + $0x48] sm:$0xff] %v407_v48  ;;  %v430_v49 = vpop.f32.mrf.mxu2  ;;  %v454_v50 = vpop.f32.mrf.mxu3 }
  0xa0   : > { %v431_v51 = vadd.f32 %v842_v36, %v430_v49  ;;  %v455_v52 = vadd.f32 %v842_v36, %v454_v50 }
  0xa2   : > { %492 = vst [vmem:[%s849_s6 + $0x88] sm:$0xff] %v431_v51 }
  0xa3   : > { %500 = vst [vmem:[%s849_s6 + $0xc8] sm:$0xff] %v455_v52  ;;  %v385_v53 = vpop.f32.mrf.mxu0  ;;  %v409_v54 = vpop.f32.mrf.mxu1 }
  0xa4   : > { %v386_v55 = vadd.f32 %v842_v36, %v385_v53  ;;  %v410_v56 = vadd.f32 %v842_v36, %v409_v54 }
  0xa6   : > { %477 = vst [vmem:[%s849_s6 + $0x10] sm:$0xff] %v386_v55 }
  0xa7   : > { %485 = vst [vmem:[%s849_s6 + $0x50] sm:$0xff] %v410_v56  ;;  %v433_v57 = vpop.f32.mrf.mxu2  ;;  %v457_v58 = vpop.f32.mrf.mxu3 }
  0xa8   : > { %v434_v59 = vadd.f32 %v842_v36, %v433_v57  ;;  %v458_v60 = vadd.f32 %v842_v36, %v457_v58 }
  0xaa   : > { %493 = vst [vmem:[%s849_s6 + $0x90] sm:$0xff] %v434_v59 }
  0xab   : > { %501 = vst [vmem:[%s849_s6 + $0xd0] sm:$0xff] %v458_v60  ;;  %v388_v61 = vpop.f32.mrf.mxu0  ;;  %v412_v62 = vpop.f32.mrf.mxu1 }
  0xac   : > { %v389_v63 = vadd.f32 %v842_v36, %v388_v61  ;;  %v413_v0 = vadd.f32 %v842_v36, %v412_v62 }
  0xae   : > { %478 = vst [vmem:[%s849_s6 + $0x18] sm:$0xff] %v389_v63 }
  0xaf   : > { %486 = vst [vmem:[%s849_s6 + $0x58] sm:$0xff] %v413_v0  ;;  %v436_v1 = vpop.f32.mrf.mxu2  ;;  %v460_v2 = vpop.f32.mrf.mxu3 }
  0xb0   : > { %v437_v3 = vadd.f32 %v842_v36, %v436_v1  ;;  %v461_v4 = vadd.f32 %v842_v36, %v460_v2 }
  0xb2   : > { %494 = vst [vmem:[%s849_s6 + $0x98] sm:$0xff] %v437_v3 }
  0xb3   : > { %502 = vst [vmem:[%s849_s6 + $0xd8] sm:$0xff] %v461_v4  ;;  %v391_v5 = vpop.f32.mrf.mxu0  ;;  %v415_v6 = vpop.f32.mrf.mxu1 }
  0xb4   : > { %v392_v7 = vadd.f32 %v842_v36, %v391_v5  ;;  %v416_v8 = vadd.f32 %v842_v36, %v415_v6 }
  0xb6   : > { %479 = vst [vmem:[%s849_s6 + $0x20] sm:$0xff] %v392_v7 }
  0xb7   : > { %487 = vst [vmem:[%s849_s6 + $0x60] sm:$0xff] %v416_v8  ;;  %v439_v9 = vpop.f32.mrf.mxu2  ;;  %v463_v10 = vpop.f32.mrf.mxu3 }
  0xb8   : > { %v440_v11 = vadd.f32 %v842_v36, %v439_v9  ;;  %v464_v12 = vadd.f32 %v842_v36, %v463_v10 }
  0xba   : > { %495 = vst [vmem:[%s849_s6 + $0xa0] sm:$0xff] %v440_v11 }
  0xbb   : > { %503 = vst [vmem:[%s849_s6 + $0xe0] sm:$0xff] %v464_v12  ;;  %v394_v13 = vpop.f32.mrf.mxu0  ;;  %v418_v14 = vpop.f32.mrf.mxu1 }
  0xbc   : > { %v395_v15 = vadd.f32 %v842_v36, %v394_v13  ;;  %v419_v16 = vadd.f32 %v842_v36, %v418_v14 }
  0xbe   : > { %480 = vst [vmem:[%s849_s6 + $0x28] sm:$0xff] %v395_v15 }
  0xbf   : > { %488 = vst [vmem:[%s849_s6 + $0x68] sm:$0xff] %v419_v16  ;;  %v442_v17 = vpop.f32.mrf.mxu2  ;;  %v466_v18 = vpop.f32.mrf.mxu3 }
  0xc0   : > { %v443_v19 = vadd.f32 %v842_v36, %v442_v17  ;;  %v467_v20 = vadd.f32 %v842_v36, %v466_v18 }
  0xc2   : > { %496 = vst [vmem:[%s849_s6 + $0xa8] sm:$0xff] %v443_v19 }
  0xc3   : > { %504 = vst [vmem:[%s849_s6 + $0xe8] sm:$0xff] %v467_v20  ;;  %v397_v21 = vpop.f32.mrf.mxu0  ;;  %v421_v22 = vpop.f32.mrf.mxu1 }
  0xc4   : > { %v398_v23 = vadd.f32 %v842_v36, %v397_v21  ;;  %v422_v24 = vadd.f32 %v842_v36, %v421_v22 }
  0xc6   : > { %481 = vst [vmem:[%s849_s6 + $0x30] sm:$0xff] %v398_v23 }
  0xc7   : > { %489 = vst [vmem:[%s849_s6 + $0x70] sm:$0xff] %v422_v24  ;;  %v445_v25 = vpop.f32.mrf.mxu2  ;;  %v469_v26 = vpop.f32.mrf.mxu3 }
  0xc8   : > { %v446_v27 = vadd.f32 %v842_v36, %v445_v25  ;;  %v470_v28 = vadd.f32 %v842_v36, %v469_v26 }
  0xca   : > { %497 = vst [vmem:[%s849_s6 + $0xb0] sm:$0xff] %v446_v27 }
  0xcb   : > { %505 = vst [vmem:[%s849_s6 + $0xf0] sm:$0xff] %v470_v28  ;;  %v400_v29 = vpop.f32.mrf.mxu0  ;;  %v424_v30 = vpop.f32.mrf.mxu1 }
  0xcc   : > { %v401_v31 = vadd.f32 %v842_v36, %v400_v29  ;;  %v425_v32 = vadd.f32 %v842_v36, %v424_v30 }
  0xce   : > { %482 = vst [vmem:[%s849_s6 + $0x38] sm:$0xff] %v401_v31 }
  0xcf   : > { %490 = vst [vmem:[%s849_s6 + $0x78] sm:$0xff] %v425_v32  ;;  %v448_v33 = vpop.f32.mrf.mxu2  ;;  %v472_v34 = vpop.f32.mrf.mxu3 }
  0xd0   : > { %v449_v35 = vadd.f32 %v842_v36, %v448_v33  ;;  %v473_v37 = vadd.f32 %v842_v36, %v472_v34 }
  0xd2   : > { %498 = vst [vmem:[%s849_s6 + $0xb8] sm:$0xff] %v449_v35 }
  0xd3   : > { %506 = vst [vmem:[%s849_s6 + $0xf8] sm:$0xff] %v473_v37 }
  0xd4 PF: > { %s13_s14 = sadd.s32 1, %s713_s14   ;;  %s928_s12 = smov %s709_s13 }
  0xd5   : > { %p10_p5 = scmp.ge.s32.totalorder %s13_s14, 4   ;;  %s929_s13 = smov %s931_s15 }
  0xd7   :  { %12 = sbr.rel (!%p10_p5) target bundleno = 2 (0x2), region = 68 }

// kernel: rnn_module_forward.5
= control target key start
LH: loop header
LB: loop body
LE: loop exit
PB: predicated region body
PF: predicated region fallthrough
CT: control target
= control target key end

     0   :  { %s654_s12 = smov 0   ;;  %s656_s13 = smov 0   ;;  %s850_s0 = inlined_call_operand.vmem [shape: f32[512,128], index: 0, kind: input, shape index: {}]   ;;  %s851_s1 = inlined_call_operand.vmem [shape: f32[128,128], index: 1, kind: input, shape index: {}]   ;;  %s852_s2 = inlined_call_operand.vmem [shape: f32[1,128], index: 2, kind: input, shape index: {}]   ;;  %s853_s3 = inlined_call_operand.vmem [shape: f32[512,128], index: 3, kind: output, shape index: {}]  }
   0x1   :  { %s658_s14 = smov 0  }
   0x2 LB: > { %s25_s15 = sadd.s32 1, %s628_s13  ;;  %p530_p0 = scmp.ge.s32.totalorder %s632_s14, 1  ;;  %s632_s14 = sphi %s658_s14, %s13_s14   ;;  %s628_s13 = sphi %s656_s13, %s855_s13   ;;  %s624_s12 = sphi %s654_s12, %s854_s12  }
   0x3   : > { %p27_p1 = scmp.ge.s32.totalorder %s25_s15, 2  ;;  %p169_p2 = scmp.lt.s32.totalorder %s632_s14, 3 }
   0x5   : > { %s857_s15 = smov (%p27_p1, %s25_s15), 0  ;;  %p170_p3 = pnand %p530_p0, %p169_p2 }
   0x6   : > { %s531_s5 = sshll.u32 (!%p170_p3), %s624_s12, 5 }
   0x7   : > { %173 = sbr.rel (%p170_p3) target bundleno = 236 (0xec), region = 32  ;;  %p204_p4 = scmp.lt.s32.totalorder (!%p170_p3), %s531_s5, 63 }
   0xc   : > { %v272_v0 = vld [vmem:[%s851_s1 + $0x78] sm:$0xff]  ;;  %v271_v1 = vld [vmem:[%s851_s1 + $0x70] sm:$0xff]  ;;  %v270_v2 = vld [vmem:[%s851_s1 + $0x68] sm:$0xff]  ;;  %s859_s5 = smov (!%p204_p4, %s531_s5), 63 }
   0xd   : > { %538 = vmatpush.msra.mxu2 %v272_v0  ;;  %539 = vmatpush.msra.mxu3 %v272_v0  ;;  %v269_v3 = vld [vmem:[%s851_s1 + $0x60] sm:$0xff]  ;;  %v268_v4 = vld [vmem:[%s851_s1 + $0x58] sm:$0xff]  ;;  %v267_v5 = vld [vmem:[%s851_s1 + $0x50] sm:$0xff]  ;;  %s532_s19 = sshll.u32 %s859_s5, 3 }
   0xe   : > { %277 = vmatpush.msra.mxu0 %v272_v0  ;;  %537 = vmatpush.msra.mxu1 %v272_v0  ;;  %v266_v6 = vld [vmem:[%s851_s1 + $0x48] sm:$0xff]  ;;  %v265_v7 = vld [vmem:[%s851_s1 + $0x40] sm:$0xff]  ;;  %v264_v8 = vld [vmem:[%s851_s1 + $0x38] sm:$0xff]  ;;  %s728_s26 = scalar_lea.vmem %s850_s0, %s532_s19  ;;  %s775_s7 = scalar_lea.vmem %s853_s3, %s532_s19 }
   0xf   : > { %541 = vmatpush.msra.mxu2 %v271_v1  ;;  %542 = vmatpush.msra.mxu3 %v271_v1  ;;  %v263_v9 = vld [vmem:[%s851_s1 + $0x30] sm:$0xff]  ;;  %v262_v10 = vld [vmem:[%s851_s1 + $0x28] sm:$0xff]  ;;  %v261_v11 = vld [vmem:[%s851_s1 + $0x20] sm:$0xff] }
  0x10   : > { %278 = vmatpush.msra.mxu0 %v271_v1  ;;  %540 = vmatpush.msra.mxu1 %v271_v1  ;;  %v260_v12 = vld [vmem:[%s851_s1 + $0x18] sm:$0xff]  ;;  %v259_v13 = vld [vmem:[%s851_s1 + $0x10] sm:$0xff]  ;;  %v258_v14 = vld [vmem:[%s851_s1 + $0x8] sm:$0xff] }
  0x11   : > { %544 = vmatpush.msra.mxu2 %v270_v2  ;;  %545 = vmatpush.msra.mxu3 %v270_v2  ;;  %v257_v15 = vld [vmem:[%s851_s1] sm:$0xff]  ;;  %v242_v20 = vld [vmem:[%s728_s26 + $0x88] sm:$0xff]  ;;  %v243_v24 = vld [vmem:[%s728_s26 + $0x90] sm:$0xff] }
  0x12   : > { %279 = vmatpush.msra.mxu0 %v270_v2  ;;  %543 = vmatpush.msra.mxu1 %v270_v2  ;;  %v241_v16 = vld [vmem:[%s728_s26 + $0x80] sm:$0xff]  ;;  %v250_v21 = vld [vmem:[%s728_s26 + $0xc8] sm:$0xff]  ;;  %v251_v25 = vld [vmem:[%s728_s26 + $0xd0] sm:$0xff] }
  0x13   : > { %547 = vmatpush.msra.mxu2 %v269_v3  ;;  %548 = vmatpush.msra.mxu3 %v269_v3  ;;  %v249_v17 = vld [vmem:[%s728_s26 + $0xc0] sm:$0xff]  ;;  %v226_v22 = vld [vmem:[%s728_s26 + $0x8] sm:$0xff]  ;;  %v227_v26 = vld [vmem:[%s728_s26 + $0x10] sm:$0xff] }
  0x14   : > { %280 = vmatpush.msra.mxu0 %v269_v3  ;;  %546 = vmatpush.msra.mxu1 %v269_v3  ;;  %v225_v18 = vld [vmem:[%s728_s26] sm:$0xff]  ;;  %v234_v23 = vld [vmem:[%s728_s26 + $0x48] sm:$0xff]  ;;  %v235_v27 = vld [vmem:[%s728_s26 + $0x50] sm:$0xff] }
  0x15   : > { %550 = vmatpush.msra.mxu2 %v268_v4  ;;  %551 = vmatpush.msra.mxu3 %v268_v4  ;;  %v233_v19 = vld [vmem:[%s728_s26 + $0x40] sm:$0xff]  ;;  %v244_v28 = vld [vmem:[%s728_s26 + $0x98] sm:$0xff]  ;;  %v246_v36 = vld [vmem:[%s728_s26 + $0xa8] sm:$0xff] }
  0x16   : > { %281 = vmatpush.msra.mxu0 %v268_v4  ;;  %549 = vmatpush.msra.mxu1 %v268_v4  ;;  %v252_v29 = vld [vmem:[%s728_s26 + $0xd8] sm:$0xff]  ;;  %v245_v32 = vld [vmem:[%s728_s26 + $0xa0] sm:$0xff]  ;;  %v254_v37 = vld [vmem:[%s728_s26 + $0xe8] sm:$0xff] }
  0x17   : > { %553 = vmatpush.msra.mxu2 %v267_v5  ;;  %554 = vmatpush.msra.mxu3 %v267_v5  ;;  %v228_v30 = vld [vmem:[%s728_s26 + $0x18] sm:$0xff]  ;;  %v253_v33 = vld [vmem:[%s728_s26 + $0xe0] sm:$0xff]  ;;  %v230_v38 = vld [vmem:[%s728_s26 + $0x28] sm:$0xff] }
  0x18   : > { %282 = vmatpush.msra.mxu0 %v267_v5  ;;  %552 = vmatpush.msra.mxu1 %v267_v5  ;;  %v236_v31 = vld [vmem:[%s728_s26 + $0x58] sm:$0xff]  ;;  %v229_v34 = vld [vmem:[%s728_s26 + $0x20] sm:$0xff]  ;;  %v238_v39 = vld [vmem:[%s728_s26 + $0x68] sm:$0xff] }
  0x19   : > { %556 = vmatpush.msra.mxu2 %v266_v6  ;;  %557 = vmatpush.msra.mxu3 %v266_v6  ;;  %v237_v35 = vld [vmem:[%s728_s26 + $0x60] sm:$0xff]  ;;  %v247_v40 = vld [vmem:[%s728_s26 + $0xb0] sm:$0xff]  ;;  %v248_v44 = vld [vmem:[%s728_s26 + $0xb8] sm:$0xff] }
  0x1a   : > { %283 = vmatpush.msra.mxu0 %v266_v6  ;;  %555 = vmatpush.msra.mxu1 %v266_v6  ;;  %v255_v41 = vld [vmem:[%s728_s26 + $0xf0] sm:$0xff]  ;;  %v256_v45 = vld [vmem:[%s728_s26 + $0xf8] sm:$0xff]  ;;  %v768_v48 = vld [vmem:[%s852_s2] ss:$0 sm:$0xff] }
  0x1b   : > { %559 = vmatpush.msra.mxu2 %v265_v7  ;;  %560 = vmatpush.msra.mxu3 %v265_v7  ;;  %v231_v42 = vld [vmem:[%s728_s26 + $0x30] sm:$0xff]  ;;  %v232_v46 = vld [vmem:[%s728_s26 + $0x38] sm:$0xff] }
  0x1c   : > { %284 = vmatpush.msra.mxu0 %v265_v7  ;;  %558 = vmatpush.msra.mxu1 %v265_v7  ;;  %v239_v43 = vld [vmem:[%s728_s26 + $0x70] sm:$0xff]  ;;  %v240_v47 = vld [vmem:[%s728_s26 + $0x78] sm:$0xff] }
  0x1d   : > { %562 = vmatpush.msra.mxu2 %v264_v8  ;;  %563 = vmatpush.msra.mxu3 %v264_v8 }
  0x1e   : > { %285 = vmatpush.msra.mxu0 %v264_v8  ;;  %561 = vmatpush.msra.mxu1 %v264_v8 }
  0x1f   : > { %565 = vmatpush.msra.mxu2 %v263_v9  ;;  %566 = vmatpush.msra.mxu3 %v263_v9 }
  0x20   : > { %286 = vmatpush.msra.mxu0 %v263_v9  ;;  %564 = vmatpush.msra.mxu1 %v263_v9 }
  0x21   : > { %568 = vmatpush.msra.mxu2 %v262_v10  ;;  %569 = vmatpush.msra.mxu3 %v262_v10 }
  0x22   : > { %287 = vmatpush.msra.mxu0 %v262_v10  ;;  %567 = vmatpush.msra.mxu1 %v262_v10 }
  0x23   : > { %571 = vmatpush.msra.mxu2 %v261_v11  ;;  %572 = vmatpush.msra.mxu3 %v261_v11 }
  0x24   : > { %288 = vmatpush.msra.mxu0 %v261_v11  ;;  %570 = vmatpush.msra.mxu1 %v261_v11 }
  0x25   : > { %574 = vmatpush.msra.mxu2 %v260_v12  ;;  %575 = vmatpush.msra.mxu3 %v260_v12 }
  0x26   : > { %289 = vmatpush.msra.mxu0 %v260_v12  ;;  %573 = vmatpush.msra.mxu1 %v260_v12 }
  0x27   : > { %577 = vmatpush.msra.mxu2 %v259_v13  ;;  %578 = vmatpush.msra.mxu3 %v259_v13 }
  0x28   : > { %290 = vmatpush.msra.mxu0 %v259_v13  ;;  %576 = vmatpush.msra.mxu1 %v259_v13 }
  0x29   : > { %580 = vmatpush.msra.mxu2 %v258_v14  ;;  %581 = vmatpush.msra.mxu3 %v258_v14 }
  0x2a   : > { %291 = vmatpush.msra.mxu0 %v258_v14  ;;  %579 = vmatpush.msra.mxu1 %v258_v14 }
  0x2b   : > { %583 = vmatpush.msra.mxu2 %v257_v15  ;;  %584 = vmatpush.msra.mxu3 %v257_v15 }
  0x2c   : > { %341 = vmatmul.f32.vlgmr.msra.gmra.mxu2 %v241_v16  ;;  %365 = vmatmul.f32.vlgmr.msra.gmra.mxu3 %v249_v17 }
  0x2d   : > { %292 = vmatpush.msra.mxu0 %v257_v15  ;;  %582 = vmatpush.msra.mxu1 %v257_v15 }
  0x2e   : > { %293 = vmatmul.f32.vlgmr.msra.gmra.mxu0 %v225_v18  ;;  %317 = vmatmul.f32.vlgmr.msra.gmra.mxu1 %v233_v19 }
  0x34   : > { %344 = vmatmul.f32.gmra.mxu2 %v242_v20  ;;  %368 = vmatmul.f32.gmra.mxu3 %v250_v21 }
  0x36   : > { %296 = vmatmul.f32.gmra.mxu0 %v226_v22  ;;  %320 = vmatmul.f32.gmra.mxu1 %v234_v23 }
  0x3c   : > { %347 = vmatmul.f32.gmra.mxu2 %v243_v24  ;;  %371 = vmatmul.f32.gmra.mxu3 %v251_v25 }
  0x3e   : > { %299 = vmatmul.f32.gmra.mxu0 %v227_v26  ;;  %323 = vmatmul.f32.gmra.mxu1 %v235_v27 }
  0x44   : > { %350 = vmatmul.f32.gmra.mxu2 %v244_v28  ;;  %374 = vmatmul.f32.gmra.mxu3 %v252_v29 }
  0x46   : > { %302 = vmatmul.f32.gmra.mxu0 %v228_v30  ;;  %326 = vmatmul.f32.gmra.mxu1 %v236_v31 }
  0x4c   : > { %353 = vmatmul.f32.gmra.mxu2 %v245_v32  ;;  %377 = vmatmul.f32.gmra.mxu3 %v253_v33 }
  0x4e   : > { %305 = vmatmul.f32.gmra.mxu0 %v229_v34  ;;  %329 = vmatmul.f32.gmra.mxu1 %v237_v35 }
  0x54   : > { %356 = vmatmul.f32.gmra.mxu2 %v246_v36  ;;  %380 = vmatmul.f32.gmra.mxu3 %v254_v37 }
  0x56   : > { %308 = vmatmul.f32.gmra.mxu0 %v230_v38  ;;  %332 = vmatmul.f32.gmra.mxu1 %v238_v39 }
  0x5c   : > { %359 = vmatmul.f32.gmra.mxu2 %v247_v40  ;;  %383 = vmatmul.f32.gmra.mxu3 %v255_v41 }
  0x5e   : > { %311 = vmatmul.f32.gmra.mxu0 %v231_v42  ;;  %335 = vmatmul.f32.gmra.mxu1 %v239_v43 }
  0x64   : > { %362 = vmatmul.f32.gmra.mxu2 %v248_v44  ;;  %386 = vmatmul.f32.gmra.mxu3 %v256_v45 }
  0x66   : > { %314 = vmatmul.f32.gmra.mxu0 %v232_v46  ;;  %338 = vmatmul.f32.gmra.mxu1 %v240_v47 }
  0xab   : > { %v294_v49 = vpop.f32.mrf.mxu0  ;;  %v318_v50 = vpop.f32.mrf.mxu1 }
  0xac   : > { %v295_v51 = vadd.f32 %v768_v48, %v294_v49  ;;  %v319_v52 = vadd.f32 %v768_v48, %v318_v50 }
  0xae   : > { %390 = vst [vmem:[%s775_s7] sm:$0xff] %v295_v51 }
  0xaf   : > { %398 = vst [vmem:[%s775_s7 + $0x40] sm:$0xff] %v319_v52  ;;  %v342_v53 = vpop.f32.mrf.mxu2  ;;  %v366_v54 = vpop.f32.mrf.mxu3 }
  0xb0   : > { %v343_v55 = vadd.f32 %v768_v48, %v342_v53  ;;  %v367_v56 = vadd.f32 %v768_v48, %v366_v54 }
  0xb2   : > { %406 = vst [vmem:[%s775_s7 + $0x80] sm:$0xff] %v343_v55 }
  0xb3   : > { %414 = vst [vmem:[%s775_s7 + $0xc0] sm:$0xff] %v367_v56  ;;  %v297_v57 = vpop.f32.mrf.mxu0  ;;  %v321_v58 = vpop.f32.mrf.mxu1 }
  0xb4   : > { %v298_v59 = vadd.f32 %v768_v48, %v297_v57  ;;  %v322_v60 = vadd.f32 %v768_v48, %v321_v58 }
  0xb6   : > { %391 = vst [vmem:[%s775_s7 + $0x8] sm:$0xff] %v298_v59 }
  0xb7   : > { %399 = vst [vmem:[%s775_s7 + $0x48] sm:$0xff] %v322_v60  ;;  %v345_v61 = vpop.f32.mrf.mxu2  ;;  %v369_v62 = vpop.f32.mrf.mxu3 }
  0xb8   : > { %v346_v63 = vadd.f32 %v768_v48, %v345_v61  ;;  %v370_v0 = vadd.f32 %v768_v48, %v369_v62 }
  0xba   : > { %407 = vst [vmem:[%s775_s7 + $0x88] sm:$0xff] %v346_v63 }
  0xbb   : > { %415 = vst [vmem:[%s775_s7 + $0xc8] sm:$0xff] %v370_v0  ;;  %v300_v1 = vpop.f32.mrf.mxu0  ;;  %v324_v2 = vpop.f32.mrf.mxu1 }
  0xbc   : > { %v301_v3 = vadd.f32 %v768_v48, %v300_v1  ;;  %v325_v4 = vadd.f32 %v768_v48, %v324_v2 }
  0xbe   : > { %392 = vst [vmem:[%s775_s7 + $0x10] sm:$0xff] %v301_v3 }
  0xbf   : > { %400 = vst [vmem:[%s775_s7 + $0x50] sm:$0xff] %v325_v4  ;;  %v348_v5 = vpop.f32.mrf.mxu2  ;;  %v372_v6 = vpop.f32.mrf.mxu3 }
  0xc0   : > { %v349_v7 = vadd.f32 %v768_v48, %v348_v5  ;;  %v373_v8 = vadd.f32 %v768_v48, %v372_v6 }
  0xc2   : > { %408 = vst [vmem:[%s775_s7 + $0x90] sm:$0xff] %v349_v7 }
  0xc3   : > { %416 = vst [vmem:[%s775_s7 + $0xd0] sm:$0xff] %v373_v8  ;;  %v303_v9 = vpop.f32.mrf.mxu0  ;;  %v327_v10 = vpop.f32.mrf.mxu1 }
  0xc4   : > { %v304_v11 = vadd.f32 %v768_v48, %v303_v9  ;;  %v328_v12 = vadd.f32 %v768_v48, %v327_v10 }
  0xc6   : > { %393 = vst [vmem:[%s775_s7 + $0x18] sm:$0xff] %v304_v11 }
  0xc7   : > { %401 = vst [vmem:[%s775_s7 + $0x58] sm:$0xff] %v328_v12  ;;  %v351_v13 = vpop.f32.mrf.mxu2  ;;  %v375_v14 = vpop.f32.mrf.mxu3 }
  0xc8   : > { %v352_v15 = vadd.f32 %v768_v48, %v351_v13  ;;  %v376_v16 = vadd.f32 %v768_v48, %v375_v14 }
  0xca   : > { %409 = vst [vmem:[%s775_s7 + $0x98] sm:$0xff] %v352_v15 }
  0xcb   : > { %417 = vst [vmem:[%s775_s7 + $0xd8] sm:$0xff] %v376_v16  ;;  %v306_v17 = vpop.f32.mrf.mxu0  ;;  %v330_v18 = vpop.f32.mrf.mxu1 }
  0xcc   : > { %v307_v19 = vadd.f32 %v768_v48, %v306_v17  ;;  %v331_v20 = vadd.f32 %v768_v48, %v330_v18 }
  0xce   : > { %394 = vst [vmem:[%s775_s7 + $0x20] sm:$0xff] %v307_v19 }
  0xcf   : > { %402 = vst [vmem:[%s775_s7 + $0x60] sm:$0xff] %v331_v20  ;;  %v354_v21 = vpop.f32.mrf.mxu2  ;;  %v378_v22 = vpop.f32.mrf.mxu3 }
  0xd0   : > { %v355_v23 = vadd.f32 %v768_v48, %v354_v21  ;;  %v379_v24 = vadd.f32 %v768_v48, %v378_v22 }
  0xd2   : > { %410 = vst [vmem:[%s775_s7 + $0xa0] sm:$0xff] %v355_v23 }
  0xd3   : > { %418 = vst [vmem:[%s775_s7 + $0xe0] sm:$0xff] %v379_v24  ;;  %v309_v25 = vpop.f32.mrf.mxu0  ;;  %v333_v26 = vpop.f32.mrf.mxu1 }
  0xd4   : > { %v310_v27 = vadd.f32 %v768_v48, %v309_v25  ;;  %v334_v28 = vadd.f32 %v768_v48, %v333_v26 }
  0xd6   : > { %395 = vst [vmem:[%s775_s7 + $0x28] sm:$0xff] %v310_v27 }
  0xd7   : > { %403 = vst [vmem:[%s775_s7 + $0x68] sm:$0xff] %v334_v28  ;;  %v357_v29 = vpop.f32.mrf.mxu2  ;;  %v381_v30 = vpop.f32.mrf.mxu3 }
  0xd8   : > { %v358_v31 = vadd.f32 %v768_v48, %v357_v29  ;;  %v382_v32 = vadd.f32 %v768_v48, %v381_v30 }
  0xda   : > { %411 = vst [vmem:[%s775_s7 + $0xa8] sm:$0xff] %v358_v31 }
  0xdb   : > { %419 = vst [vmem:[%s775_s7 + $0xe8] sm:$0xff] %v382_v32  ;;  %v312_v33 = vpop.f32.mrf.mxu0  ;;  %v336_v34 = vpop.f32.mrf.mxu1 }
  0xdc   : > { %v313_v35 = vadd.f32 %v768_v48, %v312_v33  ;;  %v337_v36 = vadd.f32 %v768_v48, %v336_v34 }
  0xde   : > { %396 = vst [vmem:[%s775_s7 + $0x30] sm:$0xff] %v313_v35 }
  0xdf   : > { %404 = vst [vmem:[%s775_s7 + $0x70] sm:$0xff] %v337_v36  ;;  %v360_v37 = vpop.f32.mrf.mxu2  ;;  %v384_v38 = vpop.f32.mrf.mxu3 }
  0xe0   : > { %v361_v39 = vadd.f32 %v768_v48, %v360_v37  ;;  %v385_v40 = vadd.f32 %v768_v48, %v384_v38 }
  0xe2   : > { %412 = vst [vmem:[%s775_s7 + $0xb0] sm:$0xff] %v361_v39 }
  0xe3   : > { %420 = vst [vmem:[%s775_s7 + $0xf0] sm:$0xff] %v385_v40  ;;  %v315_v41 = vpop.f32.mrf.mxu0  ;;  %v339_v42 = vpop.f32.mrf.mxu1 }
  0xe4   : > { %v316_v43 = vadd.f32 %v768_v48, %v315_v41  ;;  %v340_v44 = vadd.f32 %v768_v48, %v339_v42 }
  0xe6   : > { %397 = vst [vmem:[%s775_s7 + $0x38] sm:$0xff] %v316_v43 }
  0xe7   : > { %405 = vst [vmem:[%s775_s7 + $0x78] sm:$0xff] %v340_v44  ;;  %v363_v45 = vpop.f32.mrf.mxu2  ;;  %v387_v46 = vpop.f32.mrf.mxu3 }
  0xe8   : > { %v364_v47 = vadd.f32 %v768_v48, %v363_v45  ;;  %v388_v49 = vadd.f32 %v768_v48, %v387_v46 }
  0xea   : > { %413 = vst [vmem:[%s775_s7 + $0xb8] sm:$0xff] %v364_v47 }
  0xeb   : > { %421 = vst [vmem:[%s775_s7 + $0xf8] sm:$0xff] %v388_v49 }
  0xec PF: > { %s13_s14 = sadd.s32 1, %s632_s14   ;;  %s854_s12 = smov %s628_s13 }
  0xed   : > { %p10_p5 = scmp.ge.s32.totalorder %s13_s14, 4   ;;  %s855_s13 = smov %s857_s15 }
  0xef   :  { %12 = sbr.rel (!%p10_p5) target bundleno = 2 (0x2), region = 68 }

// kernel: rnn_module_forward.4
= control target key start
LH: loop header
LB: loop body
LE: loop exit
PB: predicated region body
PF: predicated region fallthrough
CT: control target
= control target key end

     0   :  { %s2924_s21 = smov 0   ;;  %s2926_s22 = smov 0   ;;  %s4858_s0 = inlined_call_operand.vmem [shape: f32[40,8,128], index: 0, kind: input, shape index: {}]   ;;  %s4859_s1 = inlined_call_operand.vmem [shape: f32[3,8,128], index: 1, kind: input, shape index: {}]   ;;  %s4860_s2 = inlined_call_operand.vmem [shape: f32[2,128,128], index: 2, kind: input, shape index: {}]   ;;  %s4861_s3 = inlined_call_operand.vmem [shape: f32[3,128,128], index: 3, kind: input, shape index: {}]   ;;  %s4862_s4 = inlined_call_operand.vmem [shape: f32[2,1,128], index: 4, kind: input, shape index: {}]   ;;  %s4863_s5 = inlined_call_operand.vmem [shape: f32[8,40,128], index: 5, kind: output, shape index: {0}]   ;;  %s4864_s6 = inlined_call_operand.vmem [shape: f32[3,8,128], index: 6, kind: output, shape index: {1}]  }
   0x1   :  { %s2928_s23 = smov 0   ;;  %s2930_s24 = smov 0  }
   0x2   :  { %s2932_s25 = smov 0  }
   0x3 LB: > { %s2330_s26 = sadd.s32 4294967295, %s2887_s25   ;;  %s26_s27 = sadd.s32 1, %s2883_s24  ;;  %s2887_s25 = sphi %s2932_s25, %s17_s25   ;;  %s2883_s24 = sphi %s2930_s24, %s5009_s24   ;;  %s2879_s23 = sphi %s2928_s23, %s5008_s23   ;;  %s2875_s22 = sphi %s2926_s22, %s5007_s22   ;;  %s2871_s21 = sphi %s2924_s21, %s5006_s21  }
   0x4   : > { %p27_p0 = scmp.ge.s32.totalorder %s26_s27, 5  ;;  %s155_s28 = sadd.s32 1, %s2875_s22 }
   0x5   : > { %p165_p1 = scmp.ne.s32.totalorder %s2875_s22, %s2871_s21  ;;  %p166_p2 = scmp.eq.s32.totalorder %s2330_s26, 4 }
   0x6   : > { %s5011_s27 = smov (%p27_p0, %s26_s27), 0  ;;  %p2335_p4 = scmp.ge.s32.totalorder %s2887_s25, 1 }
   0x7   : > { %p2953_p3 = por %p166_p2, %p165_p1  ;;  %s151_s30 = ssub.s32 %s2883_s24, %s5011_s27 }
   0x8   : > { %p244_p5 = scmp.lt.s32.totalorder %s2887_s25, 6  ;;  %p153_p6 = scmp.eq.s32.totalorder %s151_s30, 0 }
   0xa   : > { %p245_p7 = pnand %p2335_p4, %p244_p5 }
   0xb   : > { %s2962_s7 = scalar_select %p153_p6, %s2875_s22, %s155_s28  }
   0xc   : > { %248 = sbr.rel (%p245_p7) target bundleno = 1518 (0x5ee), region = 40 }
  0x11   : > { %s275_s8 = sand.u32 1, %s2871_s21   ;;  %s2965_s9 = sshll.u32 %s2879_s23, 3 }
  0x12   : > { %s2336_s10 = sshll.u32 %s275_s8, 6  ;;  %p285_p8 = scmp.lt.s32.totalorder %s2965_s9, 39 }
  0x13   : > { %s2974_s16 = scalar_lea.vmem [#allocation4], %s2336_s10  ;;  %p2339_p9 = scmp.ne.s32.totalorder %s2879_s23, 0 }
  0x14   : > { %s286_s11 = scalar_select %p285_p8, %s2965_s9, 39 }
  0x15   : > { %305 = sbr.rel (%p2339_p9) target bundleno = 30 (0x1e), region = 44 }
  0x16   : > { %s2338_s12 = sshll.u32 %s286_s11, 3 }
  0x17   : > { %s2972_s15 = scalar_lea.vmem %s4858_s0, %s2338_s12 }
  0x1a   : > { %v306_v0 = vld [vmem:[%s4859_s1] sm:$0xff]  ;;  %v307_v1 = vld [vmem:[%s4859_s1 + $0x8] sm:$0xff]  ;;  %v308_v2 = vld [vmem:[%s4859_s1 + $0x10] sm:$0xff] }
  0x1b   : > { %309 = vst [vmem:[#allocation2 + $0x10] sm:$0xff] %v306_v0 }
  0x1c   : > { %310 = vst [vmem:[#allocation2] sm:$0xff] %v307_v1 }
  0x1d   : > { %311 = vst [vmem:[#allocation2 + $0x8] sm:$0xff] %v308_v2 }
  0x1e PF: > { %v2989_v3 = vld [vmem:[%s4861_s3 + $0x78] sm:$0xff]  ;;  %v2994_v4 = vld [vmem:[%s4861_s3 + $0x70] sm:$0xff]  ;;  %v3000_v5 = vld [vmem:[%s4861_s3 + $0x68] sm:$0xff]  ;;  %p2739_p10 = scmp.ne.s32.totalorder %s2879_s23, 4 }
  0x1f   : > { %330 = vmatpush.msra.mxu0 %v2989_v3  ;;  %v3006_v6 = vld [vmem:[%s4861_s3 + $0x60] sm:$0xff]  ;;  %v3012_v7 = vld [vmem:[%s4861_s3 + $0xf8] sm:$0xff]  ;;  %v3023_v9 = vld [vmem:[%s4861_s3 + $0xf0] sm:$0xff] }
  0x20   : > { %v3017_v8 = vld [vmem:[%s4861_s3 + $0x58] sm:$0xff]  ;;  %388 = vmatpush.msra.mxu1 %v3012_v7  ;;  %4919 = vst [vmem:[#allocation5_spill] sm:$0xff] %v3023_v9  ;;  %v3029_v10 = vld [vmem:[%s4861_s3 + $0xe8] sm:$0xff]  ;;  %v3034_v11 = vld [vmem:[%s4861_s3 + $0x50] sm:$0xff] }
  0x21   : > { %331 = vmatpush.msra.mxu0 %v2994_v4  ;;  %4920 = vst [vmem:[#allocation6_spill] sm:$0xff] %v3029_v10  ;;  %v3041_v12 = vld [vmem:[%s4861_s3 + $0xe0] sm:$0xff]  ;;  %v3046_v13 = vld [vmem:[%s4860_s2 + $0x78] sm:$0xff]  ;;  %v3051_v14 = vld [vmem:[%s4861_s3 + $0x48] sm:$0xff] }
  0x22   : > { %389 = vmatpush.msra.mxu1 %v3023_v9  ;;  %4921 = vst [vmem:[#allocation7_spill] sm:$0xff] %v3041_v12  ;;  %408 = vmatpush.msra.mxu2 %v3046_v13  ;;  %v3058_v15 = vld [vmem:[%s4860_s2 + $0x70] sm:$0xff]  ;;  %v3064_v16 = vld [vmem:[%s4861_s3 + $0xd8] sm:$0xff]  ;;  %v3069_v17 = vld [vmem:[%s4860_s2 + $0x68] sm:$0xff] }
  0x23   : > { %332 = vmatpush.msra.mxu0 %v3000_v5  ;;  %v3074_v18 = vld [vmem:[%s4861_s3 + $0x40] sm:$0xff]  ;;  %v3079_v19 = vld [vmem:[%s4861_s3 + $0x38] sm:$0xff]  ;;  %v3087_v20 = vld [vmem:[%s4861_s3 + $0xd0] sm:$0xff] }
  0x24   : > { %390 = vmatpush.msra.mxu1 %v3029_v10  ;;  %409 = vmatpush.msra.mxu2 %v3058_v15  ;;  %v3092_v21 = vld [vmem:[%s4861_s3 + $0xc8] sm:$0xff]  ;;  %v3097_v22 = vld [vmem:[%s4860_s2 + $0x60] sm:$0xff]  ;;  %v3102_v23 = vld [vmem:[%s4861_s3 + $0x30] sm:$0xff] }
  0x25   : > { %333 = vmatpush.msra.mxu0 %v3006_v6  ;;  %v3109_v24 = vld [vmem:[%s4860_s2 + $0x58] sm:$0xff]  ;;  %v3115_v25 = vld [vmem:[%s4861_s3 + $0xc0] sm:$0xff]  ;;  %v3120_v26 = vld [vmem:[%s4860_s2 + $0x50] sm:$0xff] }
  0x26   : > { %391 = vmatpush.msra.mxu1 %v3041_v12  ;;  %410 = vmatpush.msra.mxu2 %v3069_v17  ;;  %v3125_v27 = vld [vmem:[%s4861_s3 + $0x28] sm:$0xff]  ;;  %v3133_v28 = vld [vmem:[%s4861_s3 + $0xb8] sm:$0xff]  ;;  %v3146_v30 = vld [vmem:[%s4861_s3 + $0x20] sm:$0xff] }
  0x27   : > { %334 = vmatpush.msra.mxu0 %v3017_v8  ;;  %v3138_v29 = vld [vmem:[%s4860_s2 + $0x48] sm:$0xff]  ;;  %v3154_v31 = vld [vmem:[%s4861_s3 + $0xb0] sm:$0xff]  ;;  %v3159_v32 = vld [vmem:[%s4860_s2 + $0x40] sm:$0xff] }
  0x28   : > { %392 = vmatpush.msra.mxu1 %v3064_v16  ;;  %411 = vmatpush.msra.mxu2 %v3097_v22  ;;  %v3164_v33 = vld [vmem:[%s4861_s3 + $0x18] sm:$0xff]  ;;  %v3172_v34 = vld [vmem:[%s4861_s3 + $0xa8] sm:$0xff]  ;;  %v3182_v36 = vld [vmem:[%s4861_s3 + $0x10] sm:$0xff] }
  0x29   : > { %335 = vmatpush.msra.mxu0 %v3034_v11  ;;  %v3177_v35 = vld [vmem:[%s4860_s2 + $0x38] sm:$0xff]  ;;  %v3190_v37 = vld [vmem:[%s4861_s3 + $0xa0] sm:$0xff]  ;;  %v3195_v38 = vld [vmem:[%s4860_s2 + $0x30] sm:$0xff] }
  0x2a   : > { %393 = vmatpush.msra.mxu1 %v3087_v20  ;;  %412 = vmatpush.msra.mxu2 %v3109_v24  ;;  %v3200_v39 = vld [vmem:[%s4861_s3 + $0x8] sm:$0xff]  ;;  %v3208_v40 = vld [vmem:[%s4861_s3 + $0x98] sm:$0xff]  ;;  %v3218_v42 = vld [vmem:[%s4861_s3] sm:$0xff] }
  0x2b   : > { %336 = vmatpush.msra.mxu0 %v3051_v14  ;;  %v3213_v41 = vld [vmem:[%s4860_s2 + $0x28] sm:$0xff]  ;;  %v313_v43 = vld [vmem:[#allocation2 + $0x10] sm:$0xff]  ;;  %v3240_v46 = vld [vmem:[%s4861_s3 + $0x80] sm:$0xff] }
  0x2c   : > { %394 = vmatpush.msra.mxu1 %v3092_v21  ;;  %413 = vmatpush.msra.mxu2 %v3120_v26  ;;  %v3226_v44 = vld [vmem:[%s4861_s3 + $0x90] sm:$0xff]  ;;  %v3234_v45 = vld [vmem:[%s4861_s3 + $0x88] sm:$0xff]  ;;  %v3263_v47 = vld [vmem:[%s4860_s2 + $0x20] sm:$0xff] }
  0x2d   : > { %337 = vmatpush.msra.mxu0 %v3074_v18  ;;  %v370_v48 = vld [vmem:[#allocation2] sm:$0xff]  ;;  %v3269_v49 = vld [vmem:[%s4860_s2 + $0x18] sm:$0xff]  ;;  %v3275_v50 = vld [vmem:[%s4860_s2 + $0x10] sm:$0xff] }
  0x2e   : > { %395 = vmatpush.msra.mxu1 %v3115_v25  ;;  %414 = vmatpush.msra.mxu2 %v3138_v29  ;;  %4922 = vst [vmem:[#allocation8_spill] sm:$0xff] %v3269_v49  ;;  %v3280_v51 = vld [vmem:[%s4860_s2 + $0x8] sm:$0xff]  ;;  %v3286_v52 = vld [vmem:[%s4860_s2] sm:$0xff]  ;;  %v3293_v53 = vld [vmem:[%s4861_s3 + $0x178] sm:$0xff] }
  0x2f   : > { %338 = vmatpush.msra.mxu0 %v3079_v19  ;;  %4923 = vst [vmem:[#allocation9_spill] sm:$0xff] %v3275_v50  ;;  %v3298_v54 = vld [vmem:[%s4861_s3 + $0x170] sm:$0xff]  ;;  %471 = vmatpush.msra.mxu3 %v3293_v53  ;;  %v3305_v55 = vld [vmem:[%s4861_s3 + $0x168] sm:$0xff]  ;;  %v3312_v56 = vld [vmem:[%s4861_s3 + $0x160] sm:$0xff] }
  0x30   : > { %396 = vmatpush.msra.mxu1 %v3133_v28  ;;  %415 = vmatpush.msra.mxu2 %v3159_v32  ;;  %4924 = vst [vmem:[#allocation10_spill] sm:$0xff] %v3280_v51  ;;  %v3319_v57 = vld [vmem:[%s4860_s2 + $0xf8] sm:$0xff]  ;;  %v3324_v58 = vld [vmem:[%s4860_s2 + $0xf0] sm:$0xff]  ;;  %v3337_v60 = vld [vmem:[%s4860_s2 + $0xe8] sm:$0xff] }
  0x31   : > { %339 = vmatpush.msra.mxu0 %v3102_v23  ;;  %4925 = vst [vmem:[#allocation11_spill] sm:$0xff] %v3286_v52  ;;  %472 = vmatpush.msra.mxu3 %v3298_v54  ;;  %v3329_v59 = vld [vmem:[%s4861_s3 + $0x158] sm:$0xff]  ;;  %v3343_v61 = vld [vmem:[%s4861_s3 + $0x150] sm:$0xff]  ;;  %v3351_v62 = vld [vmem:[%s4860_s2 + $0xe0] sm:$0xff] }
  0x32   : > { %397 = vmatpush.msra.mxu1 %v3154_v31  ;;  %416 = vmatpush.msra.mxu2 %v3177_v35  ;;  %4926 = vst [vmem:[#allocation12_spill] sm:$0xff] %v3319_v57  ;;  %v3357_v63 = vld [vmem:[%s4861_s3 + $0x148] sm:$0xff]  ;;  %v3365_v0 = vld [vmem:[%s4860_s2 + $0xd8] sm:$0xff]  ;;  %v3371_v1 = vld [vmem:[%s4861_s3 + $0x140] sm:$0xff] }
  0x33   : > { %340 = vmatpush.msra.mxu0 %v3125_v27  ;;  %473 = vmatpush.msra.mxu3 %v3305_v55  ;;  %4927 = vst [vmem:[#allocation13_spill] sm:$0xff] %v3324_v58  ;;  %v3379_v2 = vld [vmem:[%s4860_s2 + $0xd0] sm:$0xff] }
  0x34   : > { %398 = vmatpush.msra.mxu1 %v3172_v34  ;;  %417 = vmatpush.msra.mxu2 %v3195_v38  ;;  %4928 = vst [vmem:[#allocation14_spill] sm:$0xff] %v3337_v60 }
  0x35   : > { %341 = vmatpush.msra.mxu0 %v3146_v30  ;;  %474 = vmatpush.msra.mxu3 %v3312_v56  ;;  %4929 = vst [vmem:[#allocation15_spill] sm:$0xff] %v3351_v62 }
  0x36   : > { %399 = vmatpush.msra.mxu1 %v3190_v37  ;;  %418 = vmatpush.msra.mxu2 %v3213_v41  ;;  %4930 = vst [vmem:[#allocation16_spill] sm:$0xff] %v3365_v0 }
  0x37   : > { %342 = vmatpush.msra.mxu0 %v3164_v33  ;;  %475 = vmatpush.msra.mxu3 %v3329_v59  ;;  %4931 = vst [vmem:[#allocation17_spill] sm:$0xff] %v3379_v2 }
  0x38   : > { %400 = vmatpush.msra.mxu1 %v3208_v40  ;;  %419 = vmatpush.msra.mxu2 %v3263_v47 }
  0x39   : > { %343 = vmatpush.msra.mxu0 %v3182_v36  ;;  %476 = vmatpush.msra.mxu3 %v3343_v61 }
  0x3a   : > { %401 = vmatpush.msra.mxu1 %v3226_v44  ;;  %420 = vmatpush.msra.mxu2 %v3269_v49 }
  0x3b   : > { %344 = vmatpush.msra.mxu0 %v3200_v39  ;;  %477 = vmatpush.msra.mxu3 %v3357_v63 }
  0x3c   : > { %402 = vmatpush.msra.mxu1 %v3234_v45  ;;  %421 = vmatpush.msra.mxu2 %v3275_v50 }
  0x3d   : > { %345 = vmatpush.msra.mxu0 %v3218_v42  ;;  %478 = vmatpush.msra.mxu3 %v3371_v1 }
  0x3e   : > { %346 = vmatmul.f32.vlgmr.msra.gmra.mxu0 %v313_v43  ;;  %403 = vmatpush.msra.mxu1 %v3240_v46  ;;  %v3385_v43 = vld [vmem:[%s4861_s3 + $0x138] sm:$0xff] }
  0x3f   : > { %404 = vmatmul.f32.vlgmr.msra.gmra.mxu1 %v370_v48  ;;  %422 = vmatpush.msra.mxu2 %v3280_v51  ;;  %v3393_v48 = vld [vmem:[%s4860_s2 + $0xc8] sm:$0xff] }
  0x40   : > { %539 = vmatpush.msrb.mxu1 %v2989_v3  ;;  %491 = vmatpush.msrb.mxu0 %v3319_v57  ;;  %4932 = vst [vmem:[#allocation18_spill] sm:$0xff] %v3393_v48 }
  0x41   : > { %423 = vmatpush.msra.mxu2 %v3286_v52  ;;  %479 = vmatpush.msra.mxu3 %v3385_v43 }
  0x42   : > { %540 = vmatpush.msrb.mxu1 %v2994_v4  ;;  %492 = vmatpush.msrb.mxu0 %v3324_v58 }
  0x43   : > { %595 = vmatpush.msrb.mxu2 %v3012_v7 }
  0x44   : > { %541 = vmatpush.msrb.mxu1 %v3000_v5  ;;  %493 = vmatpush.msrb.mxu0 %v3337_v60 }
  0x45   : > { %596 = vmatpush.msrb.mxu2 %v3023_v9 }
  0x46   : > { %542 = vmatpush.msrb.mxu1 %v3006_v6  ;;  %494 = vmatpush.msrb.mxu0 %v3351_v62 }
  0x47   : > { %597 = vmatpush.msrb.mxu2 %v3029_v10 }
  0x48   : > { %543 = vmatpush.msrb.mxu1 %v3017_v8  ;;  %495 = vmatpush.msrb.mxu0 %v3365_v0 }
  0x49   : > { %598 = vmatpush.msrb.mxu2 %v3041_v12 }
  0x4a   : > { %544 = vmatpush.msrb.mxu1 %v3034_v11  ;;  %496 = vmatpush.msrb.mxu0 %v3379_v2 }
  0x4b   : > { %599 = vmatpush.msrb.mxu2 %v3064_v16 }
  0x4c   : > { %545 = vmatpush.msrb.mxu1 %v3051_v14  ;;  %497 = vmatpush.msrb.mxu0 %v3393_v48 }
  0x4d   : > { %600 = vmatpush.msrb.mxu2 %v3087_v20 }
  0x4e   : > { %546 = vmatpush.msrb.mxu1 %v3074_v18 }
  0x4f   : > { %601 = vmatpush.msrb.mxu2 %v3092_v21 }
  0x50   : > { %547 = vmatpush.msrb.mxu1 %v3079_v19 }
  0x51   : > { %602 = vmatpush.msrb.mxu2 %v3115_v25 }
  0x52   : > { %548 = vmatpush.msrb.mxu1 %v3102_v23 }
  0x53   : > { %603 = vmatpush.msrb.mxu2 %v3133_v28 }
  0x54   : > { %549 = vmatpush.msrb.mxu1 %v3125_v27 }
  0x55   : > { %604 = vmatpush.msrb.mxu2 %v3154_v31 }
  0x56   : > { %550 = vmatpush.msrb.mxu1 %v3146_v30 }
  0x57   : > { %605 = vmatpush.msrb.mxu2 %v3172_v34 }
  0x58   : > { %551 = vmatpush.msrb.mxu1 %v3164_v33 }
  0x59   : > { %606 = vmatpush.msrb.mxu2 %v3190_v37 }
  0x5a   : > { %552 = vmatpush.msrb.mxu1 %v3182_v36 }
  0x5b   : > { %607 = vmatpush.msrb.mxu2 %v3208_v40 }
  0x5c   : > { %553 = vmatpush.msrb.mxu1 %v3200_v39 }
  0x5d   : > { %608 = vmatpush.msrb.mxu2 %v3226_v44 }
  0x5e   : > { %554 = vmatpush.msrb.mxu1 %v3218_v42 }
  0x5f   : > { %609 = vmatpush.msrb.mxu2 %v3234_v45 }
  0x60   : > { %695 = vmatpush.msra.mxu1 %v3319_v57  ;;  %v3425_v57 = vld [vmem:[%s4861_s3 + $0x118] sm:$0xff] }
  0x61   : > { %610 = vmatpush.msrb.mxu2 %v3240_v46 }
  0x62   : > { %696 = vmatpush.msra.mxu1 %v3324_v58  ;;  %v3418_v58 = vld [vmem:[%s4861_s3 + $0x120] sm:$0xff] }
  0x64   : > { %697 = vmatpush.msra.mxu1 %v3337_v60  ;;  %v3408_v60 = vld [vmem:[%s4861_s3 + $0x128] sm:$0xff] }
  0x65   : > { %4934 = vst [vmem:[#allocation20_spill] sm:$0xff] %v3408_v60 }
  0x66   : > { %698 = vmatpush.msra.mxu1 %v3351_v62  ;;  %v3399_v62 = vld [vmem:[%s4861_s3 + $0x130] sm:$0xff] }
  0x67   : > { %4933 = vst [vmem:[#allocation19_spill] sm:$0xff] %v3399_v62  ;;  %480 = vmatpush.msra.mxu3 %v3399_v62 }
  0x68   : > { %699 = vmatpush.msra.mxu1 %v3365_v0  ;;  %v312_v0 = vld [vmem:[%s2972_s15] sm:$0xff] }
  0x69   : > { %481 = vmatpush.msra.mxu3 %v3408_v60  ;;  %v3439_v60 = vld [vmem:[%s4861_s3 + $0x108] sm:$0xff] }
  0x6a   : > { %700 = vmatpush.msra.mxu1 %v3379_v2 }
  0x6b   : > { %482 = vmatpush.msra.mxu3 %v3418_v58 }
  0x6c   : > { %701 = vmatpush.msra.mxu1 %v3393_v48  ;;  %v3432_v48 = vld [vmem:[%s4861_s3 + $0x110] sm:$0xff] }
  0x6d   : > { %483 = vmatpush.msra.mxu3 %v3425_v57 }
  0x6f   : > { %484 = vmatpush.msra.mxu3 %v3432_v48 }
  0x71   : > { %485 = vmatpush.msra.mxu3 %v3439_v60 }
  0xbb   : > { %v347_v2 = vpop.f32.mrf.mxu0 }
  0xbc   : > { %v350_v62 = vadd.f32 %v347_v2, %v312_v0  ;;  %v3446_v0 = vld [vmem:[%s4861_s3 + $0x100] sm:$0xff] }
  0xbd   : > { %486 = vmatpush.msra.mxu3 %v3446_v0  ;;  %v3487_v2 = vld [vmem:[%s4860_s2 + $0xc0] sm:$0xff] }
  0xbe   : > { %2801 = vtanh.f32 %v350_v62  ;;  %498 = vmatpush.msrb.mxu0 %v3487_v2  ;;  %702 = vmatpush.msra.mxu1 %v3487_v2 }
  0xbf   : > { %615 = vmatpush.msrb.mxu3 %v3046_v13 }
  0xc1   : > { %616 = vmatpush.msrb.mxu3 %v3058_v15 }
  0xc3   : > { %617 = vmatpush.msrb.mxu3 %v3069_v17 }
  0xc4   : > { %v2802_v62 = vpop.eup %2801 }
  0xc5   : > { %424 = vmatmul.f32.vlgmr.msra.gmra.mxu2 %v2802_v62  ;;  %555 = vmatmul.f32.vlgmr.msrb.gmra.mxu1 %v2802_v62  ;;  %v3492_v62 = vld [vmem:[%s4860_s2 + $0xb8] sm:$0xff] }
  0xc6   : > { %743 = vmatpush.msra.mxu2 %v2989_v3  ;;  %618 = vmatpush.msrb.mxu3 %v3097_v22 }
  0xc7   : > { %499 = vmatpush.msrb.mxu0 %v3492_v62  ;;  %703 = vmatpush.msra.mxu1 %v3492_v62 }
  0xc8   : > { %744 = vmatpush.msra.mxu2 %v2994_v4  ;;  %619 = vmatpush.msrb.mxu3 %v3109_v24 }
  0xca   : > { %745 = vmatpush.msra.mxu2 %v3000_v5  ;;  %620 = vmatpush.msrb.mxu3 %v3120_v26 }
  0xcc   : > { %746 = vmatpush.msra.mxu2 %v3006_v6  ;;  %621 = vmatpush.msrb.mxu3 %v3138_v29 }
  0xce   : > { %747 = vmatpush.msra.mxu2 %v3017_v8  ;;  %622 = vmatpush.msrb.mxu3 %v3159_v32 }
  0xd0   : > { %748 = vmatpush.msra.mxu2 %v3034_v11  ;;  %623 = vmatpush.msrb.mxu3 %v3177_v35 }
  0xd2   : > { %749 = vmatpush.msra.mxu2 %v3051_v14  ;;  %624 = vmatpush.msrb.mxu3 %v3195_v38 }
  0xd4   : > { %750 = vmatpush.msra.mxu2 %v3074_v18  ;;  %625 = vmatpush.msrb.mxu3 %v3213_v41 }
  0xd6   : > { %751 = vmatpush.msra.mxu2 %v3079_v19  ;;  %626 = vmatpush.msrb.mxu3 %v3263_v47 }
  0xd8   : > { %752 = vmatpush.msra.mxu2 %v3102_v23  ;;  %627 = vmatpush.msrb.mxu3 %v3269_v49  ;;  %v3517_v49 = vld [vmem:[%s4860_s2 + $0xa0] sm:$0xff] }
  0xda   : > { %753 = vmatpush.msra.mxu2 %v3125_v27  ;;  %628 = vmatpush.msrb.mxu3 %v3275_v50  ;;  %v3510_v50 = vld [vmem:[%s4860_s2 + $0xa8] sm:$0xff] }
  0xdc   : > { %754 = vmatpush.msra.mxu2 %v3146_v30  ;;  %629 = vmatpush.msrb.mxu3 %v3280_v51  ;;  %v453_v51 = vld [vmem:[#allocation2 + $0x8] sm:$0xff] }
  0xdd   : > { %487 = vmatmul.f32.vlgmr.msra.gmra.mxu3 %v453_v51  ;;  %v3525_v51 = vld [vmem:[%s4860_s2 + $0x98] sm:$0xff] }
  0xde   : > { %755 = vmatpush.msra.mxu2 %v3164_v33  ;;  %630 = vmatpush.msrb.mxu3 %v3286_v52  ;;  %v3499_v52 = vld [vmem:[%s4860_s2 + $0xb0] sm:$0xff] }
  0xdf   : > { %500 = vmatpush.msrb.mxu0 %v3499_v52  ;;  %704 = vmatpush.msra.mxu1 %v3499_v52 }
  0xe0   : > { %756 = vmatpush.msra.mxu2 %v3182_v36  ;;  %799 = vmatpush.msra.mxu3 %v3012_v7 }
  0xe1   : > { %501 = vmatpush.msrb.mxu0 %v3510_v50  ;;  %705 = vmatpush.msra.mxu1 %v3510_v50 }
  0xe2   : > { %757 = vmatpush.msra.mxu2 %v3200_v39  ;;  %800 = vmatpush.msra.mxu3 %v3023_v9  ;;  %v3546_v9 = vld [vmem:[%s4860_s2 + $0x80] sm:$0xff] }
  0xe3   : > { %502 = vmatpush.msrb.mxu0 %v3517_v49  ;;  %706 = vmatpush.msra.mxu1 %v3517_v49 }
  0xe4   : > { %758 = vmatpush.msra.mxu2 %v3218_v42  ;;  %801 = vmatpush.msra.mxu3 %v3029_v10  ;;  %v3532_v10 = vld [vmem:[%s4860_s2 + $0x90] sm:$0xff] }
  0xe5   : > { %503 = vmatpush.msrb.mxu0 %v3525_v51  ;;  %707 = vmatpush.msra.mxu1 %v3525_v51 }
  0xe6   : > { %802 = vmatpush.msra.mxu3 %v3041_v12  ;;  %v3538_v12 = vld [vmem:[%s4860_s2 + $0x88] sm:$0xff] }
  0xe7   : > { %504 = vmatpush.msrb.mxu0 %v3532_v10  ;;  %708 = vmatpush.msra.mxu1 %v3532_v10 }
  0xe8   : > { %803 = vmatpush.msra.mxu3 %v3064_v16 }
  0xe9   : > { %505 = vmatpush.msrb.mxu0 %v3538_v12  ;;  %709 = vmatpush.msra.mxu1 %v3538_v12 }
  0xea   : > { %804 = vmatpush.msra.mxu3 %v3087_v20  ;;  %v405_v20 = vpop.f32.mrf.mxu1 }
  0xeb   : > { %506 = vmatpush.msrb.mxu0 %v3546_v9  ;;  %710 = vmatpush.msra.mxu1 %v3546_v9 }
  0xec   : > { %805 = vmatpush.msra.mxu3 %v3092_v21  ;;  %v2389_v21 = vld [vmem:[%s2972_s15 + $0x8] sm:$0xff] }
  0xed   : > { %675 = vmatpush.msra.mxu0 %v3293_v53  ;;  %879 = vmatpush.msrb.mxu1 %v3293_v53 }
  0xee   : > { %806 = vmatpush.msra.mxu3 %v3115_v25 }
  0xef   : > { %676 = vmatpush.msra.mxu0 %v3298_v54  ;;  %880 = vmatpush.msrb.mxu1 %v3298_v54  ;;  %v4949_v54 = vld [vmem:[#allocation6_spill] sm:$0xff] }
  0xf0   : > { %807 = vmatpush.msra.mxu3 %v3133_v28 }
  0xf1   : > { %677 = vmatpush.msra.mxu0 %v3305_v55  ;;  %881 = vmatpush.msrb.mxu1 %v3305_v55  ;;  %v3669_v55 = vld [vmem:[%s4861_s3 + $0xd0] sm:$0xff] }
  0xf2   : > { %808 = vmatpush.msra.mxu3 %v3154_v31  ;;  %v4935_v31 = vld [vmem:[#allocation19_spill] sm:$0xff] }
  0xf3   : > { %678 = vmatpush.msra.mxu0 %v3312_v56  ;;  %882 = vmatpush.msrb.mxu1 %v3312_v56  ;;  %v3675_v56 = vld [vmem:[%s4861_s3 + $0xc8] sm:$0xff] }
  0xf4   : > { %809 = vmatpush.msra.mxu3 %v3172_v34  ;;  %v2785_v34 = vld [vmem:[%s4862_s4] ss:$0 sm:$0xff] }
  0xf5   : > { %679 = vmatpush.msra.mxu0 %v3329_v59  ;;  %883 = vmatpush.msrb.mxu1 %v3329_v59  ;;  %v3694_v59 = vld [vmem:[%s4861_s3 + $0xb0] sm:$0xff] }
  0xf6   : > { %810 = vmatpush.msra.mxu3 %v3190_v37 }
  0xf7   : > { %680 = vmatpush.msra.mxu0 %v3343_v61  ;;  %884 = vmatpush.msrb.mxu1 %v3343_v61  ;;  %v3706_v61 = vld [vmem:[%s4861_s3 + $0xa0] sm:$0xff] }
  0xf8   : > { %811 = vmatpush.msra.mxu3 %v3208_v40  ;;  %v4936_v40 = vld [vmem:[#allocation20_spill] sm:$0xff] }
  0xf9   : > { %681 = vmatpush.msra.mxu0 %v3357_v63  ;;  %885 = vmatpush.msrb.mxu1 %v3357_v63  ;;  %v3712_v63 = vld [vmem:[%s4861_s3 + $0x98] sm:$0xff] }
  0xfa   : > { %812 = vmatpush.msra.mxu3 %v3226_v44 }
  0xfb   : > { %682 = vmatpush.msra.mxu0 %v3371_v1  ;;  %886 = vmatpush.msrb.mxu1 %v3371_v1  ;;  %v3718_v1 = vld [vmem:[%s4861_s3 + $0x90] sm:$0xff] }
  0xfc   : > { %813 = vmatpush.msra.mxu3 %v3234_v45 }
  0xfd   : > { %683 = vmatpush.msra.mxu0 %v3385_v43  ;;  %887 = vmatpush.msrb.mxu1 %v3385_v43  ;;  %v3724_v43 = vld [vmem:[%s4861_s3 + $0x88] sm:$0xff] }
  0xfe   : > { %814 = vmatpush.msra.mxu3 %v3240_v46 }
  0xff   : > { %684 = vmatpush.msra.mxu0 %v4935_v31  ;;  %888 = vmatpush.msrb.mxu1 %v4935_v31  ;;  %v3783_v31 = vld [vmem:[%s4861_s3 + $0x60] sm:$0xff] }
 0x101   : > { %685 = vmatpush.msra.mxu0 %v4936_v40  ;;  %889 = vmatpush.msrb.mxu1 %v4936_v40  ;;  %v3802_v40 = vld [vmem:[%s4860_s2 + $0x48] sm:$0xff] }
 0x103   : > { %686 = vmatpush.msra.mxu0 %v3418_v58  ;;  %890 = vmatpush.msrb.mxu1 %v3418_v58  ;;  %v3682_v58 = vld [vmem:[%s4861_s3 + $0xc0] sm:$0xff] }
 0x105   : > { %687 = vmatpush.msra.mxu0 %v3425_v57  ;;  %891 = vmatpush.msrb.mxu1 %v3425_v57 }
 0x107   : > { %688 = vmatpush.msra.mxu0 %v3432_v48  ;;  %892 = vmatpush.msrb.mxu1 %v3432_v48  ;;  %v3729_v48 = vld [vmem:[%s4860_s2 + $0x78] sm:$0xff] }
 0x109   : > { %689 = vmatpush.msra.mxu0 %v3439_v60  ;;  %893 = vmatpush.msrb.mxu1 %v3439_v60  ;;  %v3700_v60 = vld [vmem:[%s4861_s3 + $0xa8] sm:$0xff] }
 0x10b   : > { %690 = vmatpush.msra.mxu0 %v3446_v0  ;;  %894 = vmatpush.msrb.mxu1 %v3446_v0  ;;  %v3736_v0 = vld [vmem:[%s4861_s3 + $0x80] sm:$0xff] }
 0x10c   : > { %4951 = vst [vmem:[#allocation19_spill] sm:$0xff] %v3736_v0 }
 0x142   : > { %v556_v25 = vpop.f32.mrf.mxu1 }
 0x143   : > { %v559_v28 = vadd.f32 %v2389_v21, %v556_v25  ;;  %v3766_v21 = vld [vmem:[%s4860_s2 + $0x60] sm:$0xff]  ;;  %v3771_v25 = vld [vmem:[%s4861_s3 + $0x68] sm:$0xff] }
 0x145   : > { %2803 = vtanh.f32 %v559_v28  ;;  %v3778_v28 = vld [vmem:[%s4860_s2 + $0x58] sm:$0xff] }
 0x148   : > { %v425_v37 = vpop.f32.mrf.mxu2 }
 0x149   : > { %v426_v44 = vadd.f32 %v425_v37, %v405_v20  ;;  %v3759_v20 = vld [vmem:[%s4861_s3 + $0x70] sm:$0xff]  ;;  %v3795_v37 = vld [vmem:[%s4861_s3 + $0x58] sm:$0xff] }
 0x14b   : > { %v2804_v45 = vpop.eup %2803  ;;  %v432_v46 = vadd.f32 %v2785_v34, %v426_v44  ;;  %v3790_v34 = vld [vmem:[%s4860_s2 + $0x50] sm:$0xff] }
 0x14c   : > { %631 = vmatmul.f32.vlgmr.msrb.gmra.mxu3 %v2804_v45  ;;  %v3807_v44 = vld [vmem:[%s4861_s3 + $0x50] sm:$0xff] }
 0x14d   : > { %2805 = vtanh.f32 %v432_v46  ;;  %947 = vmatpush.msrb.mxu3 %v2989_v3  ;;  %v4937_v3 = vld [vmem:[#allocation12_spill] sm:$0xff]  ;;  %v3819_v46 = vld [vmem:[%s4861_s3 + $0x48] sm:$0xff] }
 0x14e   : > { %4953 = vst [vmem:[#allocation12_spill] sm:$0xff] %v3759_v20 }
 0x14f   : > { %948 = vmatpush.msrb.mxu3 %v2994_v4  ;;  %v4938_v4 = vld [vmem:[#allocation13_spill] sm:$0xff] }
 0x150   : > { %4954 = vst [vmem:[#allocation13_spill] sm:$0xff] %v3771_v25 }
 0x151   : > { %949 = vmatpush.msrb.mxu3 %v3000_v5  ;;  %v4939_v5 = vld [vmem:[#allocation14_spill] sm:$0xff] }
 0x152   : > { %4955 = vst [vmem:[#allocation14_spill] sm:$0xff] %v3783_v31 }
 0x153   : > { %v2806_v53 = vpop.eup %2805  ;;  %950 = vmatpush.msrb.mxu3 %v3006_v6  ;;  %v4940_v6 = vld [vmem:[#allocation15_spill] sm:$0xff] }
 0x154   : > { %507 = vmatmul.f32.vlgmr.msrb.gmra.mxu0 %v2806_v53  ;;  %611 = vmatmul.f32.vlgmr.msrb.gmra.mxu2 %v2806_v53  ;;  %4956 = vst [vmem:[#allocation15_spill] sm:$0xff] %v3795_v37  ;;  %v3826_v53 = vld [vmem:[%s4860_s2 + $0x38] sm:$0xff] }
 0x155   : > { %819 = vmatpush.msrb.mxu0 %v3046_v13  ;;  %951 = vmatpush.msrb.mxu3 %v3017_v8  ;;  %v4941_v8 = vld [vmem:[#allocation16_spill] sm:$0xff]  ;;  %v4943_v13 = vld [vmem:[#allocation18_spill] sm:$0xff] }
 0x156   : > { %899 = vmatpush.msrb.mxu2 %v4937_v3  ;;  %4957 = vst [vmem:[#allocation16_spill] sm:$0xff] %v3807_v44  ;;  %v3831_v3 = vld [vmem:[%s4861_s3 + $0x40] sm:$0xff] }
 0x157   : > { %820 = vmatpush.msrb.mxu0 %v3058_v15  ;;  %952 = vmatpush.msrb.mxu3 %v3034_v11  ;;  %v4942_v11 = vld [vmem:[#allocation17_spill] sm:$0xff]  ;;  %4959 = vst [vmem:[#allocation18_spill] sm:$0xff] %v3831_v3 }
 0x158   : > { %900 = vmatpush.msrb.mxu2 %v4938_v4  ;;  %v4945_v15 = vld [vmem:[#allocation9_spill] sm:$0xff]  ;;  %4958 = vst [vmem:[#allocation17_spill] sm:$0xff] %v3819_v46  ;;  %v3838_v4 = vld [vmem:[%s4860_s2 + $0x30] sm:$0xff] }
 0x159   : > { %821 = vmatpush.msrb.mxu0 %v3069_v17  ;;  %953 = vmatpush.msrb.mxu3 %v3051_v14  ;;  %v4944_v14 = vld [vmem:[#allocation8_spill] sm:$0xff]  ;;  %v4946_v17 = vld [vmem:[#allocation10_spill] sm:$0xff] }
 0x15a   : > { %901 = vmatpush.msrb.mxu2 %v4939_v5  ;;  %v3843_v5 = vld [vmem:[%s4861_s3 + $0x38] sm:$0xff] }
 0x15b   : > { %822 = vmatpush.msrb.mxu0 %v3097_v22  ;;  %954 = vmatpush.msrb.mxu3 %v3074_v18  ;;  %v4947_v18 = vld [vmem:[#allocation11_spill] sm:$0xff]  ;;  %v2786_v22 = vld [vmem:[%s4862_s4 + $0x1] ss:$0 sm:$0xff]  ;;  %4960 = vst [vmem:[#allocation8_spill] sm:$0xff] %v3843_v5 }
 0x15c   : > { %759 = vmatmul.f32.vlgmr.msra.gmra.mxu2 %v2804_v45  ;;  %v3814_v45 = vld [vmem:[%s4860_s2 + $0x40] sm:$0xff] }
 0x15d   : > { %823 = vmatpush.msrb.mxu0 %v3109_v24  ;;  %955 = vmatpush.msrb.mxu3 %v3079_v19 }
 0x15e   : > { %902 = vmatpush.msrb.mxu2 %v4940_v6  ;;  %v3850_v6 = vld [vmem:[%s4860_s2 + $0x28] sm:$0xff] }
 0x15f   : > { %824 = vmatpush.msrb.mxu0 %v3120_v26  ;;  %956 = vmatpush.msrb.mxu3 %v3102_v23 }
 0x160   : > { %903 = vmatpush.msrb.mxu2 %v4941_v8  ;;  %v488_v19 = vpop.f32.mrf.mxu3  ;;  %v3855_v8 = vld [vmem:[%s4861_s3 + $0x30] sm:$0xff] }
 0x161   : > { %825 = vmatpush.msrb.mxu0 %v3138_v29  ;;  %957 = vmatpush.msrb.mxu3 %v3125_v27  ;;  %4961 = vst [vmem:[#allocation9_spill] sm:$0xff] %v3855_v8 }
 0x162   : > { %904 = vmatpush.msrb.mxu2 %v4942_v11  ;;  %v3862_v11 = vld [vmem:[%s4860_s2 + $0x20] sm:$0xff] }
 0x163   : > { %826 = vmatpush.msrb.mxu0 %v3159_v32  ;;  %958 = vmatpush.msrb.mxu3 %v3146_v30 }
 0x164   : > { %905 = vmatpush.msrb.mxu2 %v4943_v13  ;;  %v3867_v13 = vld [vmem:[%s4860_s2 + $0x18] sm:$0xff] }
 0x165   : > { %827 = vmatpush.msrb.mxu0 %v3177_v35  ;;  %959 = vmatpush.msrb.mxu3 %v3164_v33 }
 0x166   : > { %906 = vmatpush.msrb.mxu2 %v3487_v2  ;;  %v3741_v2 = vld [vmem:[%s4860_s2 + $0x70] sm:$0xff] }
 0x167   : > { %828 = vmatpush.msrb.mxu0 %v3195_v38  ;;  %960 = vmatpush.msrb.mxu3 %v3182_v36  ;;  %v2439_v36 = vld [vmem:[%s2972_s15 + $0x10] sm:$0xff] }
 0x168   : > { %907 = vmatpush.msrb.mxu2 %v3492_v62  ;;  %v3747_v62 = vld [vmem:[%s4861_s3 + $0x78] sm:$0xff] }
 0x169   : > { %829 = vmatpush.msrb.mxu0 %v3213_v41  ;;  %961 = vmatpush.msrb.mxu3 %v3200_v39  ;;  %4952 = vst [vmem:[#allocation20_spill] sm:$0xff] %v3747_v62 }
 0x16a   : > { %908 = vmatpush.msrb.mxu2 %v3499_v52 }
 0x16b   : > { %830 = vmatpush.msrb.mxu0 %v3263_v47  ;;  %962 = vmatpush.msrb.mxu3 %v3218_v42 }
 0x16c   : > { %909 = vmatpush.msrb.mxu2 %v3510_v50 }
 0x16d   : > { %831 = vmatpush.msrb.mxu0 %v4944_v14  ;;  %v3873_v14 = vld [vmem:[%s4860_s2 + $0x10] sm:$0xff] }
 0x16e   : > { %910 = vmatpush.msrb.mxu2 %v3517_v49  ;;  %v4948_v49 = vld [vmem:[#allocation5_spill] sm:$0xff] }
 0x16f   : > { %832 = vmatpush.msrb.mxu0 %v4945_v15  ;;  %v3878_v15 = vld [vmem:[%s4861_s3 + $0x28] sm:$0xff] }
 0x170   : > { %911 = vmatpush.msrb.mxu2 %v3525_v51  ;;  %v3754_v51 = vld [vmem:[%s4860_s2 + $0x68] sm:$0xff]  ;;  %4962 = vst [vmem:[#allocation10_spill] sm:$0xff] %v3878_v15 }
 0x171   : > { %833 = vmatpush.msrb.mxu0 %v4946_v17  ;;  %v3883_v17 = vld [vmem:[%s4861_s3 + $0x20] sm:$0xff] }
 0x172   : > { %912 = vmatpush.msrb.mxu2 %v3532_v10  ;;  %v2787_v10 = vld [vmem:[%s4862_s4] ss:$0 sm:$0xff]  ;;  %4963 = vst [vmem:[#allocation11_spill] sm:$0xff] %v3883_v17 }
 0x173   : > { %834 = vmatpush.msrb.mxu0 %v4947_v18  ;;  %v3890_v18 = vld [vmem:[%s4860_s2 + $0x8] sm:$0xff] }
 0x174   : > { %913 = vmatpush.msrb.mxu2 %v3538_v12  ;;  %4964 = vst [vmem:[#allocation5_spill] sm:$0xff] %v3890_v18 }
 0x176   : > { %914 = vmatpush.msrb.mxu2 %v3546_v9 }
 0x1cf   : > { %v632_v27 = vpop.f32.mrf.mxu3 }
 0x1d1   : > { %v508_v23 = vpop.f32.mrf.mxu0 }
 0x1d2   : > { %v509_v24 = vadd.f32 %v508_v23, %v488_v19  ;;  %v3895_v19 = vld [vmem:[%s4861_s3 + $0x18] sm:$0xff]  ;;  %v3907_v23 = vld [vmem:[%s4861_s3 + $0x10] sm:$0xff] }
 0x1d3   : > { %4965 = vst [vmem:[#allocation6_spill] sm:$0xff] %v3895_v19 }
 0x1d4   : > { %v516_v26 = vadd.f32 %v2786_v22, %v509_v24  ;;  %v3902_v22 = vld [vmem:[%s4860_s2] sm:$0xff]  ;;  %4967 = vst [vmem:[#allocation21_spill] sm:$0xff] %v3907_v23  ;;  %v3912_v24 = vld [vmem:[%s4861_s3 + $0x178] sm:$0xff] }
 0x1d5   : > { %1083 = vmatpush.msra.mxu2 %v3912_v24 }
 0x1d6   : > { %2807 = vtanh.f32 %v516_v26  ;;  %v3919_v26 = vld [vmem:[%s4861_s3 + $0x170] sm:$0xff] }
 0x1d7   : > { %v612_v12 = vpop.f32.mrf.mxu2  ;;  %1084 = vmatpush.msra.mxu2 %v3919_v26 }
 0x1d8   : > { %v633_v29 = vadd.f32 %v632_v27, %v612_v12  ;;  %v3932_v27 = vld [vmem:[%s4861_s3 + $0x168] sm:$0xff] }
 0x1d9   : > { %1085 = vmatpush.msra.mxu2 %v3932_v27 }
 0x1da   : > { %v639_v9 = vadd.f32 %v2787_v10, %v633_v29  ;;  %v3924_v10 = vld [vmem:[%s4861_s3 + $0x8] sm:$0xff]  ;;  %v3937_v29 = vld [vmem:[%s4861_s3] sm:$0xff] }
 0x1db   : > { %4968 = vst [vmem:[#allocation22_spill] sm:$0xff] %v3924_v10 }
 0x1dc   : > { %v2808_v30 = vpop.eup %2807  ;;  %2809 = vtanh.f32 %v639_v9  ;;  %4969 = vst [vmem:[#allocation23_spill] sm:$0xff] %v3937_v29  ;;  %v3943_v9 = vld [vmem:[%s4860_s2 + $0xf8] sm:$0xff] }
 0x1dd   : > { %v1950_v32 = vrot.slane %v2808_v30, 1  ;;  %v1951_v33 = vrot.slane %v2808_v30, 2  ;;  %v1952_v35 = vrot.slane %v2808_v30, 3  ;;  %1964 = vst [vmem:[%s2974_s16] sm:$0x1] %v2808_v30  ;;  %691 = vmatmul.f32.vlgmr.msra.gmra.mxu0 %v2808_v30  ;;  %v1953_v38 = vrot.slane %v2808_v30, 4 }
 0x1de   : > { %1003 = vmatpush.msra.mxu0 %v3012_v7  ;;  %v1954_v39 = vrot.slane %v2808_v30, 5  ;;  %v1955_v42 = vrot.slane %v2808_v30, 6  ;;  %v1956_v50 = vrot.slane %v2808_v30, 7  ;;  %v4950_v7 = vld [vmem:[#allocation7_spill] sm:$0xff]  ;;  %v2788_v30 = vld [vmem:[%s4862_s4 + $0x1] ss:$0 sm:$0xff] }
 0x1df   : > { %1965 = vst [vmem:[%s2974_s16 + $0x8] sm:$0x1] %v1950_v32  ;;  %v760_v41 = vpop.f32.mrf.mxu2  ;;  %v3952_v32 = vld [vmem:[%s4861_s3 + $0x160] sm:$0xff] }
 0x1e0   : > { %1966 = vst [vmem:[%s2974_s16 + $0x10] sm:$0x1] %v1951_v33  ;;  %v763_v47 = vadd.f32 %v2439_v36, %v760_v41  ;;  %1004 = vmatpush.msra.mxu0 %v4948_v49  ;;  %v3958_v33 = vld [vmem:[%s4860_s2 + $0xf0] sm:$0xff]  ;;  %v3964_v36 = vld [vmem:[%s4860_s2 + $0xe8] sm:$0xff]  ;;  %1086 = vmatpush.msra.mxu2 %v3952_v32 }
 0x1e1   : > { %1967 = vst [vmem:[%s2974_s16 + $0x18] sm:$0x1] %v1952_v35  ;;  %v3987_v49 = vld [vmem:[%s4861_s3 + $0x148] sm:$0xff] }
 0x1e2   : > { %v2810_v52 = vpop.eup %2809  ;;  %1968 = vst [vmem:[%s2974_s16 + $0x20] sm:$0x1] %v1953_v38  ;;  %2811 = vtanh.f32 %v763_v47  ;;  %1005 = vmatpush.msra.mxu0 %v4949_v54  ;;  %v2789_v47 = vld [vmem:[%s4862_s4] ss:$0 sm:$0xff] }
 0x1e3   : > { %1969 = vst [vmem:[%s2974_s16 + $0x28] sm:$0x1] %v1954_v39  ;;  %711 = vmatmul.f32.vlgmr.msra.gmra.mxu1 %v2810_v52  ;;  %815 = vmatmul.f32.vlgmr.msra.gmra.mxu3 %v2810_v52  ;;  %v3970_v39 = vld [vmem:[%s4861_s3 + $0x158] sm:$0xff] }
 0x1e4   : > { %1970 = vst [vmem:[%s2974_s16 + $0x30] sm:$0x1] %v1955_v42  ;;  %1006 = vmatpush.msra.mxu0 %v4950_v7  ;;  %1023 = vmatpush.msra.mxu1 %v3729_v48  ;;  %v3977_v42 = vld [vmem:[%s4861_s3 + $0x150] sm:$0xff]  ;;  %v3993_v7 = vld [vmem:[%s4861_s3 + $0x140] sm:$0xff] }
 0x1e5   : > { %1971 = vst [vmem:[%s2974_s16 + $0x38] sm:$0x1] %v1956_v50  ;;  %1103 = vmatpush.msra.mxu3 %v3943_v9  ;;  %1087 = vmatpush.msra.mxu2 %v3970_v39 }
 0x1e6   : > { %1007 = vmatpush.msra.mxu0 %v3064_v16  ;;  %v3688_v16 = vld [vmem:[%s4861_s3 + $0xb8] sm:$0xff]  ;;  %1024 = vmatpush.msra.mxu1 %v3741_v2  ;;  %4966 = vst [vmem:[#allocation7_spill] sm:$0xff] %v3902_v22 }
 0x1e7   : > { %4970 = vst [vmem:[#allocation24_spill] sm:$0xff] %v3952_v32  ;;  %1104 = vmatpush.msra.mxu3 %v3958_v33  ;;  %1088 = vmatpush.msra.mxu2 %v3977_v42 }
 0x1e8   : > { %v2812_v57 = vpop.eup %2811  ;;  %1008 = vmatpush.msra.mxu0 %v3669_v55  ;;  %1025 = vmatpush.msra.mxu1 %v3754_v51  ;;  %4971 = vst [vmem:[#allocation25_spill] sm:$0xff] %v3970_v39  ;;  %v4030_v39 = vld [vmem:[%s4861_s3 + $0xe8] sm:$0xff] }
 0x1e9   : > { %835 = vmatmul.f32.vlgmr.msrb.gmra.mxu0 %v2812_v57  ;;  %4972 = vst [vmem:[#allocation26_spill] sm:$0xff] %v3977_v42  ;;  %1105 = vmatpush.msra.mxu3 %v3964_v36 }
 0x1ea   : > { %1009 = vmatpush.msra.mxu0 %v3675_v56  ;;  %1026 = vmatpush.msra.mxu1 %v3766_v21  ;;  %4973 = vst [vmem:[#allocation27_spill] sm:$0xff] %v3987_v49 }
 0x1eb   : > { %963 = vmatmul.f32.vlgmr.msrb.gmra.mxu3 %v2812_v57  ;;  %4974 = vst [vmem:[#allocation28_spill] sm:$0xff] %v3993_v7  ;;  %1089 = vmatpush.msra.mxu2 %v3987_v49 }
 0x1ec   : > { %1010 = vmatpush.msra.mxu0 %v3682_v58  ;;  %1027 = vmatpush.msra.mxu1 %v3778_v28 }
 0x1ed   : > { %1090 = vmatpush.msra.mxu2 %v3993_v7  ;;  %v4024_v7 = vld [vmem:[%s4861_s3 + $0x128] sm:$0xff] }
 0x1ee   : > { %1011 = vmatpush.msra.mxu0 %v3688_v16  ;;  %1028 = vmatpush.msra.mxu1 %v3790_v34 }
 0x1f0   : > { %1012 = vmatpush.msra.mxu0 %v3694_v59  ;;  %1029 = vmatpush.msra.mxu1 %v3802_v40 }
 0x1f2   : > { %1013 = vmatpush.msra.mxu0 %v3700_v60  ;;  %1030 = vmatpush.msra.mxu1 %v3814_v45 }
 0x1f4   : > { %1014 = vmatpush.msra.mxu0 %v3706_v61  ;;  %1031 = vmatpush.msra.mxu1 %v3826_v53 }
 0x1f6   : > { %1015 = vmatpush.msra.mxu0 %v3712_v63  ;;  %1032 = vmatpush.msra.mxu1 %v3838_v4 }
 0x1f8   : > { %1016 = vmatpush.msra.mxu0 %v3718_v1  ;;  %1033 = vmatpush.msra.mxu1 %v3850_v6 }
 0x1fa   : > { %1017 = vmatpush.msra.mxu0 %v3724_v43  ;;  %1034 = vmatpush.msra.mxu1 %v3862_v11 }
 0x1fc   : > { %1018 = vmatpush.msra.mxu0 %v3736_v0  ;;  %1035 = vmatpush.msra.mxu1 %v3867_v13 }
 0x1fe   : > { %1151 = vmatpush.msrb.mxu0 %v3747_v62  ;;  %1036 = vmatpush.msra.mxu1 %v3873_v14 }
 0x200   : > { %1152 = vmatpush.msrb.mxu0 %v3759_v20  ;;  %1037 = vmatpush.msra.mxu1 %v3890_v18 }
 0x202   : > { %1153 = vmatpush.msrb.mxu0 %v3771_v25  ;;  %1038 = vmatpush.msra.mxu1 %v3902_v22 }
 0x204   : > { %1154 = vmatpush.msrb.mxu0 %v3783_v31 }
 0x206   : > { %1155 = vmatpush.msrb.mxu0 %v3795_v37 }
 0x208   : > { %1156 = vmatpush.msrb.mxu0 %v3807_v44 }
 0x20a   : > { %1157 = vmatpush.msrb.mxu0 %v3819_v46 }
 0x20c   : > { %1158 = vmatpush.msrb.mxu0 %v3831_v3 }
 0x20e   : > { %1159 = vmatpush.msrb.mxu0 %v3843_v5 }
 0x210   : > { %1160 = vmatpush.msrb.mxu0 %v3855_v8 }
 0x212   : > { %1161 = vmatpush.msrb.mxu0 %v3878_v15 }
 0x214   : > { %1162 = vmatpush.msrb.mxu0 %v3883_v17 }
 0x216   : > { %1163 = vmatpush.msrb.mxu0 %v3895_v19 }
 0x218   : > { %1164 = vmatpush.msrb.mxu0 %v3907_v23 }
 0x21a   : > { %1165 = vmatpush.msrb.mxu0 %v3924_v10 }
 0x21c   : > { %1166 = vmatpush.msrb.mxu0 %v3937_v29 }
 0x25a   : > { %v692_v12 = vpop.f32.mrf.mxu0 }
 0x260   : > { %v712_v35 = vpop.f32.mrf.mxu1 }
 0x261   : > { %v713_v38 = vadd.f32 %v712_v35, %v692_v12  ;;  %v3999_v12 = vld [vmem:[%s4861_s3 + $0x138] sm:$0xff] }
 0x262   : > { %4975 = vst [vmem:[#allocation29_spill] sm:$0xff] %v3999_v12  ;;  %1091 = vmatpush.msra.mxu2 %v3999_v12 }
 0x263   : > { %v719_v41 = vadd.f32 %v2788_v30, %v713_v38  ;;  %v4004_v30 = vld [vmem:[%s4861_s3 + $0xf8] sm:$0xff] }
 0x264   : > { %4976 = vst [vmem:[#allocation30_spill] sm:$0xff] %v4004_v30  ;;  %v2489_v38 = vld [vmem:[%s2972_s15 + $0x18] sm:$0xff] }
 0x265   : > { %2813 = vtanh.f32 %v719_v41  ;;  %v4011_v41 = vld [vmem:[%s4861_s3 + $0x130] sm:$0xff] }
 0x266   : > { %v836_v50 = vpop.f32.mrf.mxu0  ;;  %v816_v52 = vpop.f32.mrf.mxu3  ;;  %1092 = vmatpush.msra.mxu2 %v4011_v41 }
 0x267   : > { %v837_v54 = vadd.f32 %v836_v50, %v816_v52 }
 0x268   : > { %1093 = vmatpush.msra.mxu2 %v4024_v7 }
 0x269   : > { %v843_v57 = vadd.f32 %v2789_v47, %v837_v54  ;;  %v4017_v54 = vld [vmem:[%s4861_s3 + $0xf0] sm:$0xff] }
 0x26b   : > { %v2814_v35 = vpop.eup %2813  ;;  %2815 = vtanh.f32 %v843_v57 }
 0x26c   : > { %v1974_v47 = vrot.slane %v2814_v35, 1  ;;  %v1975_v50 = vrot.slane %v2814_v35, 2  ;;  %v1976_v52 = vrot.slane %v2814_v35, 3  ;;  %1988 = vst [vmem:[%s2974_s16 + $0x1] sm:$0x1] %v2814_v35  ;;  %895 = vmatmul.f32.vlgmr.msrb.gmra.mxu1 %v2814_v35  ;;  %v1977_v57 = vrot.slane %v2814_v35, 4 }
 0x26d   : > { %1207 = vmatpush.msrb.mxu1 %v4004_v30  ;;  %v1978_v49 = vrot.slane %v2814_v35, 5  ;;  %v1979_v12 = vrot.slane %v2814_v35, 6  ;;  %v1980_v22 = vrot.slane %v2814_v35, 7  ;;  %v4109_v35 = vld [vmem:[%s4861_s3 + $0x110] sm:$0xff] }
 0x26e   : > { %1989 = vst [vmem:[%s2974_s16 + $0x9] sm:$0x1] %v1974_v47  ;;  %v964_v42 = vpop.f32.mrf.mxu3  ;;  %v4039_v47 = vld [vmem:[%s4861_s3 + $0xe0] sm:$0xff] }
 0x26f   : > { %1990 = vst [vmem:[%s2974_s16 + $0x11] sm:$0x1] %v1975_v50  ;;  %v967_v30 = vadd.f32 %v2489_v38, %v964_v42  ;;  %1208 = vmatpush.msrb.mxu1 %v4017_v54  ;;  %v4048_v42 = vld [vmem:[%s4861_s3 + $0xd8] sm:$0xff]  ;;  %v4115_v38 = vld [vmem:[%s4861_s3 + $0x108] sm:$0xff]  ;;  %v4122_v50 = vld [vmem:[%s4860_s2 + $0xd0] sm:$0xff] }
 0x270   : > { %1991 = vst [vmem:[%s2974_s16 + $0x19] sm:$0x1] %v1976_v52  ;;  %v4128_v52 = vld [vmem:[%s4861_s3 + $0x100] sm:$0xff] }
 0x271   : > { %v2816_v32 = vpop.eup %2815  ;;  %1992 = vst [vmem:[%s2974_s16 + $0x21] sm:$0x1] %v1977_v57  ;;  %2817 = vtanh.f32 %v967_v30  ;;  %1209 = vmatpush.msrb.mxu1 %v4030_v39  ;;  %v4135_v57 = vld [vmem:[%s4860_s2 + $0xc8] sm:$0xff] }
 0x272   : > { %1993 = vst [vmem:[%s2974_s16 + $0x29] sm:$0x1] %v1978_v49  ;;  %915 = vmatmul.f32.vlgmr.msrb.gmra.mxu2 %v2816_v32  ;;  %1019 = vmatmul.f32.vlgmr.msra.gmra.mxu0 %v2816_v32  ;;  %v4093_v32 = vld [vmem:[%s4861_s3 + $0x118] sm:$0xff]  ;;  %v4098_v49 = vld [vmem:[%s4860_s2 + $0xe0] sm:$0xff] }
 0x273   : > { %1994 = vst [vmem:[%s2974_s16 + $0x31] sm:$0x1] %v1979_v12  ;;  %1210 = vmatpush.msrb.mxu1 %v4039_v47  ;;  %1307 = vmatpush.msra.mxu0 %v3943_v9  ;;  %v4104_v12 = vld [vmem:[%s4860_s2 + $0xd8] sm:$0xff] }
 0x274   : > { %1995 = vst [vmem:[%s2974_s16 + $0x39] sm:$0x1] %v1980_v22  ;;  %v4087_v22 = vld [vmem:[%s4861_s3 + $0x120] sm:$0xff]  ;;  %1106 = vmatpush.msra.mxu3 %v4098_v49 }
 0x275   : > { %1211 = vmatpush.msrb.mxu1 %v4048_v42  ;;  %1308 = vmatpush.msra.mxu0 %v3958_v33 }
 0x276   : > { %1094 = vmatpush.msra.mxu2 %v4087_v22  ;;  %1107 = vmatpush.msra.mxu3 %v4104_v12 }
 0x277   : > { %v2818_v30 = vpop.eup %2817  ;;  %1212 = vmatpush.msrb.mxu1 %v3669_v55  ;;  %1309 = vmatpush.msra.mxu0 %v3964_v36 }
 0x278   : > { %1039 = vmatmul.f32.vlgmr.msra.gmra.mxu1 %v2818_v30  ;;  %1095 = vmatpush.msra.mxu2 %v4093_v32 }
 0x279   : > { %1213 = vmatpush.msrb.mxu1 %v3675_v56  ;;  %1310 = vmatpush.msra.mxu0 %v4098_v49 }
 0x27a   : > { %1167 = vmatmul.f32.vlgmr.msrb.gmra.mxu0 %v2818_v30  ;;  %1096 = vmatpush.msra.mxu2 %v4109_v35  ;;  %v4143_v30 = vld [vmem:[%s4860_s2 + $0xc0] sm:$0xff] }
 0x27b   : > { %1214 = vmatpush.msrb.mxu1 %v3682_v58  ;;  %1311 = vmatpush.msra.mxu0 %v4104_v12 }
 0x27c   : > { %1097 = vmatpush.msra.mxu2 %v4115_v38  ;;  %1108 = vmatpush.msra.mxu3 %v4122_v50 }
 0x27d   : > { %1215 = vmatpush.msrb.mxu1 %v3688_v16  ;;  %1312 = vmatpush.msra.mxu0 %v4122_v50 }
 0x27e   : > { %1098 = vmatpush.msra.mxu2 %v4128_v52  ;;  %1109 = vmatpush.msra.mxu3 %v4135_v57 }
 0x27f   : > { %1216 = vmatpush.msrb.mxu1 %v3694_v59  ;;  %1313 = vmatpush.msra.mxu0 %v4135_v57 }
 0x280   : > { %1227 = vmatpush.msrb.mxu2 %v3729_v48  ;;  %1110 = vmatpush.msra.mxu3 %v4143_v30 }
 0x281   : > { %1217 = vmatpush.msrb.mxu1 %v3700_v60  ;;  %1314 = vmatpush.msra.mxu0 %v4143_v30 }
 0x282   : > { %1228 = vmatpush.msrb.mxu2 %v3741_v2 }
 0x283   : > { %1218 = vmatpush.msrb.mxu1 %v3706_v61 }
 0x284   : > { %1229 = vmatpush.msrb.mxu2 %v3754_v51 }
 0x285   : > { %1219 = vmatpush.msrb.mxu1 %v3712_v63 }
 0x286   : > { %1230 = vmatpush.msrb.mxu2 %v3766_v21 }
 0x287   : > { %1220 = vmatpush.msrb.mxu1 %v3718_v1 }
 0x288   : > { %1231 = vmatpush.msrb.mxu2 %v3778_v28 }
 0x289   : > { %1221 = vmatpush.msrb.mxu1 %v3724_v43 }
 0x28a   : > { %1232 = vmatpush.msrb.mxu2 %v3790_v34 }
 0x28b   : > { %1222 = vmatpush.msrb.mxu1 %v3736_v0 }
 0x28c   : > { %1233 = vmatpush.msrb.mxu2 %v3802_v40 }
 0x28d   : > { %1355 = vmatpush.msra.mxu1 %v3747_v62 }
 0x28e   : > { %1234 = vmatpush.msrb.mxu2 %v3814_v45 }
 0x28f   : > { %1356 = vmatpush.msra.mxu1 %v3759_v20 }
 0x290   : > { %1235 = vmatpush.msrb.mxu2 %v3826_v53 }
 0x291   : > { %1357 = vmatpush.msra.mxu1 %v3771_v25  ;;  %v2791_v25 = vld [vmem:[%s4862_s4] ss:$0 sm:$0xff] }
 0x292   : > { %1236 = vmatpush.msrb.mxu2 %v3838_v4 }
 0x293   : > { %1358 = vmatpush.msra.mxu1 %v3783_v31  ;;  %v4981_v31 = vld [vmem:[#allocation26_spill] sm:$0xff] }
 0x294   : > { %1237 = vmatpush.msrb.mxu2 %v3850_v6 }
 0x295   : > { %1359 = vmatpush.msra.mxu1 %v3795_v37 }
 0x296   : > { %1238 = vmatpush.msrb.mxu2 %v3862_v11 }
 0x297   : > { %1360 = vmatpush.msra.mxu1 %v3807_v44  ;;  %v4979_v44 = vld [vmem:[#allocation7_spill] sm:$0xff] }
 0x298   : > { %1239 = vmatpush.msrb.mxu2 %v3867_v13 }
 0x299   : > { %1361 = vmatpush.msra.mxu1 %v3819_v46  ;;  %v4978_v46 = vld [vmem:[#allocation24_spill] sm:$0xff] }
 0x29a   : > { %1240 = vmatpush.msrb.mxu2 %v3873_v14 }
 0x29b   : > { %1362 = vmatpush.msra.mxu1 %v3831_v3 }
 0x29c   : > { %1241 = vmatpush.msrb.mxu2 %v3890_v18 }
 0x29d   : > { %1363 = vmatpush.msra.mxu1 %v3843_v5  ;;  %v4211_v5 = vld [vmem:[%s4860_s2 + $0x80] sm:$0xff] }
 0x29e   : > { %4977 = vst [vmem:[#allocation31_spill] sm:$0xff] %v4211_v5  ;;  %1242 = vmatpush.msrb.mxu2 %v4979_v44  ;;  %v4983_v44 = vld [vmem:[#allocation28_spill] sm:$0xff] }
 0x29f   : > { %1364 = vmatpush.msra.mxu1 %v3855_v8  ;;  %v4203_v8 = vld [vmem:[%s4860_s2 + $0x88] sm:$0xff] }
 0x2a1   : > { %1365 = vmatpush.msra.mxu1 %v3878_v15  ;;  %v4195_v15 = vld [vmem:[%s4860_s2 + $0x90] sm:$0xff] }
 0x2a3   : > { %1366 = vmatpush.msra.mxu1 %v3883_v17  ;;  %v4187_v17 = vld [vmem:[%s4860_s2 + $0x98] sm:$0xff] }
 0x2a5   : > { %1367 = vmatpush.msra.mxu1 %v3895_v19  ;;  %v4179_v19 = vld [vmem:[%s4860_s2 + $0xa0] sm:$0xff] }
 0x2a7   : > { %1368 = vmatpush.msra.mxu1 %v3907_v23  ;;  %v4171_v23 = vld [vmem:[%s4860_s2 + $0xa8] sm:$0xff] }
 0x2a9   : > { %1369 = vmatpush.msra.mxu1 %v3924_v10  ;;  %v4164_v10 = vld [vmem:[%s4860_s2 + $0xb0] sm:$0xff] }
 0x2ab   : > { %1370 = vmatpush.msra.mxu1 %v3937_v29  ;;  %v4150_v29 = vld [vmem:[%s4860_s2 + $0xb8] sm:$0xff] }
 0x2ac   : > { %1111 = vmatpush.msra.mxu3 %v4150_v29  ;;  %1315 = vmatpush.msra.mxu0 %v4150_v29 }
 0x2ae   : > { %1112 = vmatpush.msra.mxu3 %v4164_v10  ;;  %1316 = vmatpush.msra.mxu0 %v4164_v10 }
 0x2b0   : > { %1113 = vmatpush.msra.mxu3 %v4171_v23  ;;  %1317 = vmatpush.msra.mxu0 %v4171_v23 }
 0x2b2   : > { %1114 = vmatpush.msra.mxu3 %v4179_v19  ;;  %1318 = vmatpush.msra.mxu0 %v4179_v19 }
 0x2b4   : > { %1115 = vmatpush.msra.mxu3 %v4187_v17  ;;  %1319 = vmatpush.msra.mxu0 %v4187_v17 }
 0x2b6   : > { %1116 = vmatpush.msra.mxu3 %v4195_v15  ;;  %1320 = vmatpush.msra.mxu0 %v4195_v15 }
 0x2b8   : > { %1117 = vmatpush.msra.mxu3 %v4203_v8  ;;  %1321 = vmatpush.msra.mxu0 %v4203_v8 }
 0x2ba   : > { %1118 = vmatpush.msra.mxu3 %v4211_v5  ;;  %1322 = vmatpush.msra.mxu0 %v4211_v5 }
 0x2bc   : > { %1287 = vmatpush.msrb.mxu3 %v3912_v24  ;;  %1491 = vmatpush.msrb.mxu0 %v3912_v24  ;;  %v4980_v24 = vld [vmem:[#allocation25_spill] sm:$0xff] }
 0x2be   : > { %1288 = vmatpush.msrb.mxu3 %v3919_v26  ;;  %1492 = vmatpush.msrb.mxu0 %v3919_v26  ;;  %v4982_v26 = vld [vmem:[#allocation27_spill] sm:$0xff] }
 0x2c0   : > { %1289 = vmatpush.msrb.mxu3 %v3932_v27  ;;  %1493 = vmatpush.msrb.mxu0 %v3932_v27  ;;  %v2790_v27 = vld [vmem:[%s4862_s4 + $0x1] ss:$0 sm:$0xff] }
 0x2c2   : > { %1290 = vmatpush.msrb.mxu3 %v4978_v46  ;;  %1494 = vmatpush.msrb.mxu0 %v4978_v46 }
 0x2c4   : > { %1291 = vmatpush.msrb.mxu3 %v4980_v24  ;;  %1495 = vmatpush.msrb.mxu0 %v4980_v24 }
 0x2c6   : > { %1292 = vmatpush.msrb.mxu3 %v4981_v31  ;;  %1496 = vmatpush.msrb.mxu0 %v4981_v31  ;;  %v4984_v31 = vld [vmem:[#allocation29_spill] sm:$0xff] }
 0x2c8   : > { %1293 = vmatpush.msrb.mxu3 %v4982_v26  ;;  %1497 = vmatpush.msrb.mxu0 %v4982_v26  ;;  %v2539_v26 = vld [vmem:[%s2972_s15 + $0x20] sm:$0xff] }
 0x2ca   : > { %1294 = vmatpush.msrb.mxu3 %v4983_v44  ;;  %1498 = vmatpush.msrb.mxu0 %v4983_v44 }
 0x2cc   : > { %1295 = vmatpush.msrb.mxu3 %v4984_v31  ;;  %1499 = vmatpush.msrb.mxu0 %v4984_v31  ;;  %v4397_v31 = vld [vmem:[%s4861_s3 + $0x98] sm:$0xff] }
 0x2ce   : > { %1296 = vmatpush.msrb.mxu3 %v4011_v41  ;;  %1500 = vmatpush.msrb.mxu0 %v4011_v41 }
 0x2d0   : > { %1297 = vmatpush.msrb.mxu3 %v4024_v7  ;;  %1501 = vmatpush.msrb.mxu0 %v4024_v7 }
 0x2d2   : > { %1298 = vmatpush.msrb.mxu3 %v4087_v22  ;;  %1502 = vmatpush.msrb.mxu0 %v4087_v22 }
 0x2d4   : > { %1299 = vmatpush.msrb.mxu3 %v4093_v32  ;;  %1503 = vmatpush.msrb.mxu0 %v4093_v32 }
 0x2d6   : > { %1300 = vmatpush.msrb.mxu3 %v4109_v35  ;;  %1504 = vmatpush.msrb.mxu0 %v4109_v35 }
 0x2d8   : > { %1301 = vmatpush.msrb.mxu3 %v4115_v38  ;;  %1505 = vmatpush.msrb.mxu0 %v4115_v38 }
 0x2da   : > { %1302 = vmatpush.msrb.mxu3 %v4128_v52  ;;  %1506 = vmatpush.msrb.mxu0 %v4128_v52 }
 0x2e9   : > { %v896_v3 = vpop.f32.mrf.mxu1 }
 0x2ef   : > { %v1020_v37 = vpop.f32.mrf.mxu0 }
 0x2f5   : > { %v916_v46 = vpop.f32.mrf.mxu2  ;;  %v1040_v24 = vpop.f32.mrf.mxu1 }
 0x2f6   : > { %v917_v20 = vadd.f32 %v916_v46, %v896_v3  ;;  %v1041_v5 = vadd.f32 %v1040_v24, %v1020_v37  ;;  %v4385_v46 = vld [vmem:[%s4861_s3 + $0xa8] sm:$0xff]  ;;  %v4391_v24 = vld [vmem:[%s4861_s3 + $0xa0] sm:$0xff] }
 0x2f7   : > { %v1168_v0 = vpop.f32.mrf.mxu0 }
 0x2f8   : > { %v923_v18 = vadd.f32 %v2790_v27, %v917_v20  ;;  %v1047_v62 = vadd.f32 %v2791_v25, %v1041_v5  ;;  %v1171_v37 = vadd.f32 %v2539_v26, %v1168_v0  ;;  %v4354_v27 = vld [vmem:[%s4861_s3 + $0xd0] sm:$0xff] }
 0x2f9   : > { %v4403_v26 = vld [vmem:[%s4861_s3 + $0x90] sm:$0xff] }
 0x2fa   : > { %2819 = vtanh.f32 %v923_v18  ;;  %v4985_v18 = vld [vmem:[#allocation30_spill] sm:$0xff] }
 0x2fb   : > { %2821 = vtanh.f32 %v1047_v62 }
 0x2fc   : > { %2823 = vtanh.f32 %v1171_v37  ;;  %v4409_v37 = vld [vmem:[%s4861_s3 + $0x88] sm:$0xff] }
 0x300   : > { %v2820_v20 = vpop.eup %2819 }
 0x301   : > { %v2822_v25 = vpop.eup %2821  ;;  %v1998_v62 = vrot.slane %v2820_v20, 1  ;;  %v1999_v44 = vrot.slane %v2820_v20, 2  ;;  %v2000_v3 = vrot.slane %v2820_v20, 3  ;;  %2012 = vst [vmem:[%s2974_s16 + $0x2] sm:$0x1] %v2820_v20  ;;  %1099 = vmatmul.f32.vlgmr.msra.gmra.mxu2 %v2820_v20  ;;  %v2001_v5 = vrot.slane %v2820_v20, 4 }
 0x302   : > { %1119 = vmatmul.f32.vlgmr.msra.gmra.mxu3 %v2822_v25  ;;  %1223 = vmatmul.f32.vlgmr.msrb.gmra.mxu1 %v2822_v25  ;;  %v2002_v0 = vrot.slane %v2820_v20, 5  ;;  %v2003_v7 = vrot.slane %v2820_v20, 6  ;;  %v2004_v41 = vrot.slane %v2820_v20, 7  ;;  %v4414_v20 = vld [vmem:[%s4860_s2 + $0x78] sm:$0xff]  ;;  %v4421_v25 = vld [vmem:[%s4861_s3 + $0x80] sm:$0xff] }
 0x303   : > { %2013 = vst [vmem:[%s2974_s16 + $0xa] sm:$0x1] %v1998_v62  ;;  %1411 = vmatpush.msra.mxu2 %v4985_v18  ;;  %1511 = vmatpush.msrb.mxu1 %v3943_v9  ;;  %v2824_v9 = vpop.eup %2823  ;;  %v4426_v62 = vld [vmem:[%s4860_s2 + $0x70] sm:$0xff] }
 0x304   : > { %2014 = vst [vmem:[%s2974_s16 + $0x12] sm:$0x1] %v1999_v44  ;;  %1431 = vmatpush.msra.mxu3 %v3729_v48  ;;  %v4996_v48 = vld [vmem:[#allocation17_spill] sm:$0xff] }
 0x305   : > { %2015 = vst [vmem:[%s2974_s16 + $0x1a] sm:$0x1] %v2000_v3  ;;  %1412 = vmatpush.msra.mxu2 %v4017_v54  ;;  %1512 = vmatpush.msrb.mxu1 %v3958_v33  ;;  %v1762_v44 = vld [vmem:[%s4861_s3 + $0x78] sm:$0xff]  ;;  %v4436_v3 = vld [vmem:[%s4860_s2 + $0x68] sm:$0xff] }
 0x306   : > { %2016 = vst [vmem:[%s2974_s16 + $0x22] sm:$0x1] %v2001_v5  ;;  %1432 = vmatpush.msra.mxu3 %v3741_v2  ;;  %v4997_v2 = vld [vmem:[#allocation18_spill] sm:$0xff]  ;;  %v1761_v5 = vld [vmem:[%s4861_s3 + $0x70] sm:$0xff] }
 0x307   : > { %2017 = vst [vmem:[%s2974_s16 + $0x2a] sm:$0x1] %v2002_v0  ;;  %1413 = vmatpush.msra.mxu2 %v4030_v39  ;;  %1513 = vmatpush.msrb.mxu1 %v3964_v36  ;;  %v4445_v0 = vld [vmem:[%s4860_s2 + $0x60] sm:$0xff] }
 0x308   : > { %2018 = vst [vmem:[%s2974_s16 + $0x32] sm:$0x1] %v2003_v7  ;;  %1433 = vmatpush.msra.mxu3 %v3754_v51  ;;  %v4998_v51 = vld [vmem:[#allocation8_spill] sm:$0xff]  ;;  %v4454_v7 = vld [vmem:[%s4860_s2 + $0x58] sm:$0xff] }
 0x309   : > { %2019 = vst [vmem:[%s2974_s16 + $0x3a] sm:$0x1] %v2004_v41  ;;  %1243 = vmatmul.f32.vlgmr.msrb.gmra.mxu2 %v2824_v9  ;;  %1514 = vmatpush.msrb.mxu1 %v4098_v49  ;;  %v1759_v41 = vld [vmem:[%s4861_s3 + $0x60] sm:$0xff] }
 0x30a   : > { %1371 = vmatmul.f32.vlgmr.msra.gmra.mxu1 %v2824_v9  ;;  %1414 = vmatpush.msra.mxu2 %v4039_v47  ;;  %v4463_v9 = vld [vmem:[%s4860_s2 + $0x50] sm:$0xff] }
 0x30b   : > { %1434 = vmatpush.msra.mxu3 %v3766_v21  ;;  %1515 = vmatpush.msrb.mxu1 %v4104_v12  ;;  %v4999_v21 = vld [vmem:[#allocation9_spill] sm:$0xff] }
 0x30c   : > { %1415 = vmatpush.msra.mxu2 %v4048_v42 }
 0x30d   : > { %1435 = vmatpush.msra.mxu3 %v3778_v28  ;;  %1516 = vmatpush.msrb.mxu1 %v4122_v50  ;;  %v5000_v28 = vld [vmem:[#allocation10_spill] sm:$0xff] }
 0x30e   : > { %1416 = vmatpush.msra.mxu2 %v3669_v55  ;;  %v4986_v55 = vld [vmem:[#allocation19_spill] sm:$0xff] }
 0x30f   : > { %1436 = vmatpush.msra.mxu3 %v3790_v34  ;;  %1517 = vmatpush.msrb.mxu1 %v4135_v57  ;;  %v5001_v34 = vld [vmem:[#allocation11_spill] sm:$0xff] }
 0x310   : > { %1417 = vmatpush.msra.mxu2 %v3675_v56  ;;  %v4987_v56 = vld [vmem:[#allocation20_spill] sm:$0xff] }
 0x311   : > { %1437 = vmatpush.msra.mxu3 %v3802_v40  ;;  %1518 = vmatpush.msrb.mxu1 %v4143_v30  ;;  %v5002_v40 = vld [vmem:[#allocation6_spill] sm:$0xff] }
 0x312   : > { %1418 = vmatpush.msra.mxu2 %v3682_v58  ;;  %v4988_v58 = vld [vmem:[#allocation5_spill] sm:$0xff] }
 0x313   : > { %1438 = vmatpush.msra.mxu3 %v3814_v45  ;;  %1519 = vmatpush.msrb.mxu1 %v4150_v29  ;;  %v5003_v45 = vld [vmem:[#allocation21_spill] sm:$0xff] }
 0x314   : > { %1419 = vmatpush.msra.mxu2 %v3688_v16  ;;  %v4989_v16 = vld [vmem:[#allocation31_spill] sm:$0xff] }
 0x315   : > { %1439 = vmatpush.msra.mxu3 %v3826_v53  ;;  %1520 = vmatpush.msrb.mxu1 %v4164_v10  ;;  %v5004_v53 = vld [vmem:[#allocation22_spill] sm:$0xff] }
 0x316   : > { %1420 = vmatpush.msra.mxu2 %v3694_v59  ;;  %v4990_v59 = vld [vmem:[#allocation12_spill] sm:$0xff] }
 0x317   : > { %1440 = vmatpush.msra.mxu3 %v3838_v4  ;;  %1521 = vmatpush.msrb.mxu1 %v4171_v23  ;;  %v5005_v4 = vld [vmem:[#allocation23_spill] sm:$0xff] }
 0x318   : > { %1421 = vmatpush.msra.mxu2 %v3700_v60  ;;  %v4991_v60 = vld [vmem:[#allocation7_spill] sm:$0xff] }
 0x319   : > { %1441 = vmatpush.msra.mxu3 %v3850_v6  ;;  %1522 = vmatpush.msrb.mxu1 %v4179_v19  ;;  %v2589_v19 = vld [vmem:[%s2972_s15 + $0x28] sm:$0xff] }
 0x31a   : > { %1422 = vmatpush.msra.mxu2 %v3706_v61  ;;  %v4992_v61 = vld [vmem:[#allocation13_spill] sm:$0xff] }
 0x31b   : > { %1442 = vmatpush.msra.mxu3 %v3862_v11  ;;  %1523 = vmatpush.msrb.mxu1 %v4187_v17  ;;  %v2792_v11 = vld [vmem:[%s4862_s4 + $0x1] ss:$0 sm:$0xff]  ;;  %v2793_v17 = vld [vmem:[%s4862_s4] ss:$0 sm:$0xff] }
 0x31c   : > { %1423 = vmatpush.msra.mxu2 %v3712_v63  ;;  %v4993_v63 = vld [vmem:[#allocation14_spill] sm:$0xff] }
 0x31d   : > { %1443 = vmatpush.msra.mxu3 %v3867_v13  ;;  %1524 = vmatpush.msrb.mxu1 %v4195_v15 }
 0x31e   : > { %1424 = vmatpush.msra.mxu2 %v3718_v1  ;;  %v4994_v1 = vld [vmem:[#allocation15_spill] sm:$0xff] }
 0x31f   : > { %1444 = vmatpush.msra.mxu3 %v3873_v14  ;;  %1525 = vmatpush.msrb.mxu1 %v4203_v8 }
 0x320   : > { %1425 = vmatpush.msra.mxu2 %v3724_v43  ;;  %v4995_v43 = vld [vmem:[#allocation16_spill] sm:$0xff] }
 0x321   : > { %1445 = vmatpush.msra.mxu3 %v4988_v58  ;;  %1526 = vmatpush.msrb.mxu1 %v4989_v16  ;;  %v1757_v58 = vld [vmem:[%s4861_s3 + $0x50] sm:$0xff]  ;;  %v4481_v16 = vld [vmem:[%s4860_s2 + $0x40] sm:$0xff] }
 0x322   : > { %1426 = vmatpush.msra.mxu2 %v4986_v55  ;;  %v1758_v55 = vld [vmem:[%s4861_s3 + $0x58] sm:$0xff] }
 0x323   : > { %1446 = vmatpush.msra.mxu3 %v4991_v60  ;;  %v4490_v60 = vld [vmem:[%s4860_s2 + $0x38] sm:$0xff] }
 0x324   : > { %1559 = vmatpush.msrb.mxu2 %v4987_v56  ;;  %v4472_v56 = vld [vmem:[%s4860_s2 + $0x48] sm:$0xff] }
 0x326   : > { %1560 = vmatpush.msrb.mxu2 %v4990_v59  ;;  %v1756_v59 = vld [vmem:[%s4861_s3 + $0x48] sm:$0xff] }
 0x328   : > { %1561 = vmatpush.msrb.mxu2 %v4992_v61  ;;  %v1755_v61 = vld [vmem:[%s4861_s3 + $0x40] sm:$0xff] }
 0x32a   : > { %1562 = vmatpush.msrb.mxu2 %v4993_v63  ;;  %v4499_v63 = vld [vmem:[%s4860_s2 + $0x30] sm:$0xff] }
 0x32c   : > { %1563 = vmatpush.msrb.mxu2 %v4994_v1  ;;  %v1754_v1 = vld [vmem:[%s4861_s3 + $0x38] sm:$0xff] }
 0x32e   : > { %1564 = vmatpush.msrb.mxu2 %v4995_v43  ;;  %v4508_v43 = vld [vmem:[%s4860_s2 + $0x28] sm:$0xff] }
 0x330   : > { %1565 = vmatpush.msrb.mxu2 %v4996_v48  ;;  %v1753_v48 = vld [vmem:[%s4861_s3 + $0x30] sm:$0xff] }
 0x332   : > { %1566 = vmatpush.msrb.mxu2 %v4997_v2  ;;  %v4517_v2 = vld [vmem:[%s4860_s2 + $0x20] sm:$0xff] }
 0x334   : > { %1567 = vmatpush.msrb.mxu2 %v4998_v51  ;;  %v4522_v51 = vld [vmem:[%s4860_s2 + $0x18] sm:$0xff] }
 0x336   : > { %1568 = vmatpush.msrb.mxu2 %v4999_v21  ;;  %v1752_v21 = vld [vmem:[%s4861_s3 + $0x28] sm:$0xff] }
 0x338   : > { %1569 = vmatpush.msrb.mxu2 %v5000_v28  ;;  %v4531_v28 = vld [vmem:[%s4860_s2 + $0x10] sm:$0xff] }
 0x33a   : > { %1570 = vmatpush.msrb.mxu2 %v5001_v34  ;;  %v1751_v34 = vld [vmem:[%s4861_s3 + $0x20] sm:$0xff] }
 0x33c   : > { %1571 = vmatpush.msrb.mxu2 %v5002_v40  ;;  %v4540_v40 = vld [vmem:[%s4860_s2 + $0x8] sm:$0xff] }
 0x33e   : > { %1572 = vmatpush.msrb.mxu2 %v5003_v45  ;;  %v1750_v45 = vld [vmem:[%s4861_s3 + $0x18] sm:$0xff] }
 0x340   : > { %1573 = vmatpush.msrb.mxu2 %v5004_v53  ;;  %v1749_v53 = vld [vmem:[%s4861_s3 + $0x10] sm:$0xff] }
 0x342   : > { %1574 = vmatpush.msrb.mxu2 %v5005_v4  ;;  %v4552_v4 = vld [vmem:[%s4860_s2] sm:$0xff] }
 0x37f   : > { %v1224_v6 = vpop.f32.mrf.mxu1 }
 0x384   : > { %v1100_v8 = vpop.f32.mrf.mxu2 }
 0x385   : > { %v1120_v13 = vpop.f32.mrf.mxu3 }
 0x386   : > { %v1121_v14 = vadd.f32 %v1120_v13, %v1100_v8  ;;  %v4561_v8 = vld [vmem:[%s4861_s3 + $0x178] sm:$0xff]  ;;  %v1747_v13 = vld [vmem:[%s4861_s3] sm:$0xff] }
 0x387   : > { %v1372_v23 = vpop.f32.mrf.mxu1  ;;  %1695 = vmatpush.msra.mxu1 %v4561_v8 }
 0x388   : > { %v1127_v15 = vadd.f32 %v2792_v11, %v1121_v14  ;;  %v1375_v33 = vadd.f32 %v2589_v19, %v1372_v23  ;;  %v4566_v11 = vld [vmem:[%s4861_s3 + $0x170] sm:$0xff]  ;;  %v4585_v23 = vld [vmem:[%s4861_s3 + $0x160] sm:$0xff] }
 0x389   : > { %1696 = vmatpush.msra.mxu1 %v4566_v11 }
 0x38a   : > { %2825 = vtanh.f32 %v1127_v15  ;;  %v4576_v15 = vld [vmem:[%s4861_s3 + $0x168] sm:$0xff] }
 0x38b   : > { %1697 = vmatpush.msra.mxu1 %v4576_v15 }
 0x38c   : > { %v1244_v10 = vpop.f32.mrf.mxu2 }
 0x38d   : > { %v1245_v29 = vadd.f32 %v1244_v10, %v1224_v6  ;;  %v1748_v6 = vld [vmem:[%s4861_s3 + $0x8] sm:$0xff]  ;;  %v2671_v10 = vld [vmem:[%s4860_s2 + $0xf8] sm:$0xff]  ;;  %1698 = vmatpush.msra.mxu1 %v4585_v23 }
 0x38f   : > { %v1251_v36 = vadd.f32 %v2793_v17, %v1245_v29  ;;  %v2794_v17 = vld [vmem:[%s4862_s4 + $0x1] ss:$0 sm:$0xff] }
 0x390   : > { %v2826_v22 = vpop.eup %2825 }
 0x391   : > { %v2022_v32 = vrot.slane %v2826_v22, 1  ;;  %v2023_v49 = vrot.slane %v2826_v22, 2  ;;  %v2024_v12 = vrot.slane %v2826_v22, 3  ;;  %2036 = vst [vmem:[%s2974_s16 + $0x3] sm:$0x1] %v2826_v22  ;;  %1303 = vmatmul.f32.vlgmr.msrb.gmra.mxu3 %v2826_v22  ;;  %v2025_v35 = vrot.slane %v2826_v22, 4 }
 0x392   : > { %2827 = vtanh.f32 %v1251_v36  ;;  %1615 = vmatpush.msrb.mxu3 %v4985_v18  ;;  %v2026_v38 = vrot.slane %v2826_v22, 5  ;;  %v2027_v50 = vrot.slane %v2826_v22, 6  ;;  %v2028_v52 = vrot.slane %v2826_v22, 7  ;;  %v1760_v18 = vld [vmem:[%s4861_s3 + $0x68] sm:$0xff]  ;;  %v4597_v36 = vld [vmem:[%s4861_s3 + $0x158] sm:$0xff] }
 0x393   : > { %2037 = vst [vmem:[%s2974_s16 + $0xb] sm:$0x1] %v2022_v32  ;;  %2829 = vtanh.f32 %v1375_v33  ;;  %v2670_v33 = vld [vmem:[%s4860_s2 + $0xf0] sm:$0xff]  ;;  %v2669_v22 = vld [vmem:[%s4860_s2 + $0xe8] sm:$0xff]  ;;  %1699 = vmatpush.msra.mxu1 %v4597_v36 }
 0x394   : > { %2038 = vst [vmem:[%s2974_s16 + $0x13] sm:$0x1] %v2023_v49  ;;  %1616 = vmatpush.msrb.mxu3 %v4017_v54  ;;  %v4366_v54 = vld [vmem:[%s4861_s3 + $0xc0] sm:$0xff]  ;;  %v4606_v49 = vld [vmem:[%s4861_s3 + $0x150] sm:$0xff] }
 0x395   : > { %2039 = vst [vmem:[%s2974_s16 + $0x1b] sm:$0x1] %v2024_v12  ;;  %1700 = vmatpush.msra.mxu1 %v4606_v49 }
 0x396   : > { %2040 = vst [vmem:[%s2974_s16 + $0x23] sm:$0x1] %v2025_v35  ;;  %1617 = vmatpush.msrb.mxu3 %v4030_v39  ;;  %v4360_v39 = vld [vmem:[%s4861_s3 + $0xc8] sm:$0xff]  ;;  %v2795_v35 = vld [vmem:[%s4862_s4] ss:$0 sm:$0xff] }
 0x397   : > { %2041 = vst [vmem:[%s2974_s16 + $0x2b] sm:$0x1] %v2026_v38  ;;  %v4615_v38 = vld [vmem:[%s4861_s3 + $0x148] sm:$0xff] }
 0x398   : > { %v2828_v57 = vpop.eup %2827  ;;  %2042 = vst [vmem:[%s2974_s16 + $0x33] sm:$0x1] %v2027_v50  ;;  %1618 = vmatpush.msrb.mxu3 %v4039_v47  ;;  %v4372_v47 = vld [vmem:[%s4861_s3 + $0xb8] sm:$0xff]  ;;  %1701 = vmatpush.msra.mxu1 %v4615_v38 }
 0x399   : > { %v2830_v30 = vpop.eup %2829  ;;  %2043 = vst [vmem:[%s2974_s16 + $0x3b] sm:$0x1] %v2028_v52  ;;  %1323 = vmatmul.f32.vlgmr.msra.gmra.mxu0 %v2828_v57  ;;  %1427 = vmatmul.f32.vlgmr.msra.gmra.mxu2 %v2828_v57  ;;  %v4621_v57 = vld [vmem:[%s4861_s3 + $0x140] sm:$0xff] }
 0x39a   : > { %1447 = vmatmul.f32.vlgmr.msra.gmra.mxu3 %v2830_v30  ;;  %1635 = vmatpush.msra.mxu0 %v4414_v20 }
 0x39b   : > { %1619 = vmatpush.msrb.mxu3 %v4048_v42  ;;  %v4378_v42 = vld [vmem:[%s4861_s3 + $0xb0] sm:$0xff]  ;;  %1715 = vmatpush.msra.mxu2 %v2671_v10 }
 0x39c   : > { %1636 = vmatpush.msra.mxu0 %v4426_v62  ;;  %1702 = vmatpush.msra.mxu1 %v4621_v57 }
 0x39d   : > { %1620 = vmatpush.msrb.mxu3 %v4354_v27  ;;  %1716 = vmatpush.msra.mxu2 %v2670_v33 }
 0x39e   : > { %1637 = vmatpush.msra.mxu0 %v4436_v3 }
 0x39f   : > { %1621 = vmatpush.msrb.mxu3 %v4360_v39  ;;  %1717 = vmatpush.msra.mxu2 %v2669_v22 }
 0x3a0   : > { %1638 = vmatpush.msra.mxu0 %v4445_v0 }
 0x3a1   : > { %1575 = vmatmul.f32.vlgmr.msrb.gmra.mxu2 %v2830_v30  ;;  %1622 = vmatpush.msrb.mxu3 %v4366_v54 }
 0x3a2   : > { %1639 = vmatpush.msra.mxu0 %v4454_v7 }
 0x3a3   : > { %1623 = vmatpush.msrb.mxu3 %v4372_v47 }
 0x3a4   : > { %1640 = vmatpush.msra.mxu0 %v4463_v9 }
 0x3a5   : > { %1624 = vmatpush.msrb.mxu3 %v4378_v42 }
 0x3a6   : > { %1641 = vmatpush.msra.mxu0 %v4472_v56 }
 0x3a7   : > { %1625 = vmatpush.msrb.mxu3 %v4385_v46 }
 0x3a8   : > { %1642 = vmatpush.msra.mxu0 %v4481_v16 }
 0x3a9   : > { %1626 = vmatpush.msrb.mxu3 %v4391_v24 }
 0x3aa   : > { %1643 = vmatpush.msra.mxu0 %v4490_v60 }
 0x3ab   : > { %1627 = vmatpush.msrb.mxu3 %v4397_v31 }
 0x3ac   : > { %1644 = vmatpush.msra.mxu0 %v4499_v63 }
 0x3ad   : > { %1628 = vmatpush.msrb.mxu3 %v4403_v26 }
 0x3ae   : > { %1645 = vmatpush.msra.mxu0 %v4508_v43 }
 0x3af   : > { %1629 = vmatpush.msrb.mxu3 %v4409_v37 }
 0x3b0   : > { %1646 = vmatpush.msra.mxu0 %v4517_v2 }
 0x3b1   : > { %1630 = vmatpush.msrb.mxu3 %v4421_v25 }
 0x3b2   : > { %1647 = vmatpush.msra.mxu0 %v4522_v51 }
 0x3b3   : > { %1763 = vmatpush.msra.mxu3 %v1762_v44  ;;  %v4627_v44 = vld [vmem:[%s4861_s3 + $0x138] sm:$0xff] }
 0x3b4   : > { %1648 = vmatpush.msra.mxu0 %v4531_v28  ;;  %1703 = vmatpush.msra.mxu1 %v4627_v44 }
 0x3b5   : > { %1764 = vmatpush.msra.mxu3 %v1761_v5 }
 0x3b6   : > { %1649 = vmatpush.msra.mxu0 %v4540_v40 }
 0x3b7   : > { %1765 = vmatpush.msra.mxu3 %v1760_v18  ;;  %v2639_v18 = vld [vmem:[%s2972_s15 + $0x30] sm:$0xff] }
 0x3b8   : > { %1650 = vmatpush.msra.mxu0 %v4552_v4 }
 0x3b9   : > { %1766 = vmatpush.msra.mxu3 %v1759_v41 }
 0x3bb   : > { %1767 = vmatpush.msra.mxu3 %v1758_v55 }
 0x3bd   : > { %1768 = vmatpush.msra.mxu3 %v1757_v58 }
 0x3bf   : > { %1769 = vmatpush.msra.mxu3 %v1756_v59  ;;  %v4635_v59 = vld [vmem:[%s4861_s3 + $0x130] sm:$0xff] }
 0x3c0   : > { %1704 = vmatpush.msra.mxu1 %v4635_v59 }
 0x3c1   : > { %1770 = vmatpush.msra.mxu3 %v1755_v61 }
 0x3c3   : > { %1771 = vmatpush.msra.mxu3 %v1754_v1 }
 0x3c5   : > { %1772 = vmatpush.msra.mxu3 %v1753_v48 }
 0x3c7   : > { %1773 = vmatpush.msra.mxu3 %v1752_v21  ;;  %v4642_v21 = vld [vmem:[%s4861_s3 + $0x128] sm:$0xff] }
 0x3c8   : > { %1705 = vmatpush.msra.mxu1 %v4642_v21 }
 0x3c9   : > { %1774 = vmatpush.msra.mxu3 %v1751_v34 }
 0x3cb   : > { %1775 = vmatpush.msra.mxu3 %v1750_v45 }
 0x3cd   : > { %1776 = vmatpush.msra.mxu3 %v1749_v53 }
 0x3cf   : > { %1777 = vmatpush.msra.mxu3 %v1748_v6  ;;  %v4650_v6 = vld [vmem:[%s4861_s3 + $0x120] sm:$0xff] }
 0x3d0   : > { %1706 = vmatpush.msra.mxu1 %v4650_v6 }
 0x3d1   : > { %1778 = vmatpush.msra.mxu3 %v1747_v13  ;;  %v4658_v13 = vld [vmem:[%s4861_s3 + $0x118] sm:$0xff] }
 0x3d2   : > { %1707 = vmatpush.msra.mxu1 %v4658_v13 }
 0x414   : > { %v1304_v14 = vpop.f32.mrf.mxu3 }
 0x416   : > { %v1324_v19 = vpop.f32.mrf.mxu0 }
 0x417   : > { %v1325_v29 = vadd.f32 %v1324_v19, %v1304_v14  ;;  %v4672_v19 = vld [vmem:[%s4861_s3 + $0x108] sm:$0xff] }
 0x419   : > { %v1331_v32 = vadd.f32 %v2794_v17, %v1325_v29  ;;  %v4666_v17 = vld [vmem:[%s4861_s3 + $0x110] sm:$0xff] }
 0x41a   : > { %1708 = vmatpush.msra.mxu1 %v4666_v17 }
 0x41b   : > { %2831 = vtanh.f32 %v1331_v32  ;;  %v2705_v32 = vld [vmem:[%s4861_s3 + $0xf8] sm:$0xff] }
 0x41c   : > { %v1428_v12 = vpop.f32.mrf.mxu2  ;;  %1709 = vmatpush.msra.mxu1 %v4672_v19 }
 0x41d   : > { %v1448_v50 = vpop.f32.mrf.mxu3 }
 0x41e   : > { %v1449_v52 = vadd.f32 %v1448_v50, %v1428_v12  ;;  %v2703_v12 = vld [vmem:[%s4861_s3 + $0xe8] sm:$0xff]  ;;  %v2667_v50 = vld [vmem:[%s4860_s2 + $0xd8] sm:$0xff] }
 0x420   : > { %v1455_v30 = vadd.f32 %v2795_v35, %v1449_v52  ;;  %v2702_v35 = vld [vmem:[%s4861_s3 + $0xe0] sm:$0xff]  ;;  %v2701_v52 = vld [vmem:[%s4861_s3 + $0xd8] sm:$0xff] }
 0x421   : > { %v2832_v5 = vpop.eup %2831 }
 0x422   : > { %v2046_v41 = vrot.slane %v2832_v5, 1  ;;  %v2047_v55 = vrot.slane %v2832_v5, 2  ;;  %v2048_v58 = vrot.slane %v2832_v5, 3  ;;  %2060 = vst [vmem:[%s2974_s16 + $0x4] sm:$0x1] %v2832_v5  ;;  %1507 = vmatmul.f32.vlgmr.msrb.gmra.mxu0 %v2832_v5  ;;  %v2049_v61 = vrot.slane %v2832_v5, 4 }
 0x423   : > { %2833 = vtanh.f32 %v1455_v30  ;;  %v2050_v1 = vrot.slane %v2832_v5, 5  ;;  %v2051_v34 = vrot.slane %v2832_v5, 6  ;;  %v2052_v53 = vrot.slane %v2832_v5, 7  ;;  %1819 = vmatpush.msrb.mxu0 %v2705_v32  ;;  %v2666_v30 = vld [vmem:[%s4860_s2 + $0xd0] sm:$0xff]  ;;  %v2799_v5 = vld [vmem:[%s4862_s4] ss:$0 sm:$0xff] }
 0x424   : > { %2061 = vst [vmem:[%s2974_s16 + $0xc] sm:$0x1] %v2046_v41  ;;  %v1576_v48 = vpop.f32.mrf.mxu2 }
 0x425   : > { %2062 = vst [vmem:[%s2974_s16 + $0x14] sm:$0x1] %v2047_v55  ;;  %v1579_v45 = vadd.f32 %v2639_v18, %v1576_v48 }
 0x426   : > { %2063 = vst [vmem:[%s2974_s16 + $0x1c] sm:$0x1] %v2048_v58 }
 0x427   : > { %2064 = vst [vmem:[%s2974_s16 + $0x24] sm:$0x1] %v2049_v61  ;;  %2835 = vtanh.f32 %v1579_v45 }
 0x428   : > { %2065 = vst [vmem:[%s2974_s16 + $0x2c] sm:$0x1] %v2050_v1 }
 0x429   : > { %v2834_v14 = vpop.eup %2833  ;;  %2066 = vst [vmem:[%s2974_s16 + $0x34] sm:$0x1] %v2051_v34 }
 0x42a   : > { %2067 = vst [vmem:[%s2974_s16 + $0x3c] sm:$0x1] %v2052_v53  ;;  %1527 = vmatmul.f32.vlgmr.msrb.gmra.mxu1 %v2834_v14  ;;  %1631 = vmatmul.f32.vlgmr.msrb.gmra.mxu3 %v2834_v14 }
 0x42b   : > { %1919 = vmatpush.msrb.mxu3 %v2671_v10  ;;  %v2704_v10 = vld [vmem:[%s4861_s3 + $0xf0] sm:$0xff] }
 0x42c   : > { %1820 = vmatpush.msrb.mxu0 %v2704_v10 }
 0x42d   : > { %v2836_v29 = vpop.eup %2835  ;;  %1920 = vmatpush.msrb.mxu3 %v2670_v33  ;;  %v4688_v33 = vld [vmem:[%s4861_s3 + $0x100] sm:$0xff] }
 0x42e   : > { %1651 = vmatmul.f32.vlgmr.msra.gmra.mxu0 %v2836_v29  ;;  %1710 = vmatpush.msra.mxu1 %v4688_v33 }
 0x42f   : > { %1921 = vmatpush.msrb.mxu3 %v2669_v22  ;;  %1821 = vmatpush.msrb.mxu0 %v2703_v12  ;;  %v2668_v22 = vld [vmem:[%s4860_s2 + $0xe0] sm:$0xff] }
 0x430   : > { %1718 = vmatpush.msra.mxu2 %v2668_v22  ;;  %1839 = vmatpush.msrb.mxu1 %v4414_v20  ;;  %v2665_v20 = vld [vmem:[%s4860_s2 + $0xc8] sm:$0xff] }
 0x431   : > { %1822 = vmatpush.msrb.mxu0 %v2702_v35  ;;  %1922 = vmatpush.msrb.mxu3 %v2668_v22 }
 0x432   : > { %1779 = vmatmul.f32.vlgmr.msra.gmra.mxu3 %v2836_v29  ;;  %1719 = vmatpush.msra.mxu2 %v2667_v50 }
 0x433   : > { %1840 = vmatpush.msrb.mxu1 %v4426_v62  ;;  %1823 = vmatpush.msrb.mxu0 %v2701_v52  ;;  %v2664_v62 = vld [vmem:[%s4860_s2 + $0xc0] sm:$0xff] }
 0x434   : > { %1923 = vmatpush.msrb.mxu3 %v2667_v50  ;;  %1720 = vmatpush.msra.mxu2 %v2666_v30 }
 0x435   : > { %1841 = vmatpush.msrb.mxu1 %v4436_v3  ;;  %1824 = vmatpush.msrb.mxu0 %v4354_v27  ;;  %v2663_v3 = vld [vmem:[%s4860_s2 + $0xb8] sm:$0xff]  ;;  %v2662_v27 = vld [vmem:[%s4860_s2 + $0xb0] sm:$0xff] }
 0x436   : > { %1924 = vmatpush.msrb.mxu3 %v2666_v30  ;;  %1721 = vmatpush.msra.mxu2 %v2665_v20 }
 0x437   : > { %1842 = vmatpush.msrb.mxu1 %v4445_v0  ;;  %1825 = vmatpush.msrb.mxu0 %v4360_v39  ;;  %v2661_v39 = vld [vmem:[%s4860_s2 + $0xa8] sm:$0xff] }
 0x438   : > { %1925 = vmatpush.msrb.mxu3 %v2665_v20  ;;  %1722 = vmatpush.msra.mxu2 %v2664_v62 }
 0x439   : > { %1843 = vmatpush.msrb.mxu1 %v4454_v7  ;;  %1826 = vmatpush.msrb.mxu0 %v4366_v54  ;;  %v2660_v54 = vld [vmem:[%s4860_s2 + $0xa0] sm:$0xff] }
 0x43a   : > { %1926 = vmatpush.msrb.mxu3 %v2664_v62  ;;  %1723 = vmatpush.msra.mxu2 %v2663_v3 }
 0x43b   : > { %1844 = vmatpush.msrb.mxu1 %v4463_v9  ;;  %1827 = vmatpush.msrb.mxu0 %v4372_v47  ;;  %v2659_v47 = vld [vmem:[%s4860_s2 + $0x98] sm:$0xff]  ;;  %v2797_v9 = vld [vmem:[%s4862_s4] ss:$0 sm:$0xff] }
 0x43c   : > { %1927 = vmatpush.msrb.mxu3 %v2663_v3  ;;  %1724 = vmatpush.msra.mxu2 %v2662_v27 }
 0x43d   : > { %1845 = vmatpush.msrb.mxu1 %v4472_v56  ;;  %1828 = vmatpush.msrb.mxu0 %v4378_v42  ;;  %v2658_v42 = vld [vmem:[%s4860_s2 + $0x90] sm:$0xff] }
 0x43e   : > { %1928 = vmatpush.msrb.mxu3 %v2662_v27  ;;  %1725 = vmatpush.msra.mxu2 %v2661_v39 }
 0x43f   : > { %1846 = vmatpush.msrb.mxu1 %v4481_v16  ;;  %1829 = vmatpush.msrb.mxu0 %v4385_v46  ;;  %v2657_v46 = vld [vmem:[%s4860_s2 + $0x88] sm:$0xff] }
 0x440   : > { %1929 = vmatpush.msrb.mxu3 %v2661_v39  ;;  %1726 = vmatpush.msra.mxu2 %v2660_v54 }
 0x441   : > { %1847 = vmatpush.msrb.mxu1 %v4490_v60  ;;  %1830 = vmatpush.msrb.mxu0 %v4391_v24  ;;  %v2656_v24 = vld [vmem:[%s4860_s2 + $0x80] sm:$0xff] }
 0x442   : > { %1930 = vmatpush.msrb.mxu3 %v2660_v54  ;;  %1727 = vmatpush.msra.mxu2 %v2659_v47 }
 0x443   : > { %1848 = vmatpush.msrb.mxu1 %v4499_v63  ;;  %1831 = vmatpush.msrb.mxu0 %v4397_v31 }
 0x444   : > { %1931 = vmatpush.msrb.mxu3 %v2659_v47  ;;  %1728 = vmatpush.msra.mxu2 %v2658_v42 }
 0x445   : > { %1849 = vmatpush.msrb.mxu1 %v4508_v43  ;;  %1832 = vmatpush.msrb.mxu0 %v4403_v26  ;;  %v2796_v26 = vld [vmem:[%s4862_s4 + $0x1] ss:$0 sm:$0xff] }
 0x446   : > { %1932 = vmatpush.msrb.mxu3 %v2658_v42  ;;  %1729 = vmatpush.msra.mxu2 %v2657_v46 }
 0x447   : > { %1850 = vmatpush.msrb.mxu1 %v4517_v2  ;;  %1833 = vmatpush.msrb.mxu0 %v4409_v37 }
 0x448   : > { %1933 = vmatpush.msrb.mxu3 %v2657_v46  ;;  %1730 = vmatpush.msra.mxu2 %v2656_v24 }
 0x449   : > { %1851 = vmatpush.msrb.mxu1 %v4522_v51  ;;  %1834 = vmatpush.msrb.mxu0 %v4421_v25 }
 0x44a   : > { %1899 = vmatpush.msrb.mxu2 %v4561_v8  ;;  %1934 = vmatpush.msrb.mxu3 %v2656_v24 }
 0x44b   : > { %1852 = vmatpush.msrb.mxu1 %v4531_v28  ;;  %v2689_v28 = vld [vmem:[%s2972_s15 + $0x38] sm:$0xff] }
 0x44c   : > { %1900 = vmatpush.msrb.mxu2 %v4566_v11 }
 0x44d   : > { %1853 = vmatpush.msrb.mxu1 %v4540_v40 }
 0x44e   : > { %1901 = vmatpush.msrb.mxu2 %v4576_v15 }
 0x44f   : > { %1854 = vmatpush.msrb.mxu1 %v4552_v4 }
 0x450   : > { %1902 = vmatpush.msrb.mxu2 %v4585_v23 }
 0x452   : > { %1903 = vmatpush.msrb.mxu2 %v4597_v36 }
 0x454   : > { %1904 = vmatpush.msrb.mxu2 %v4606_v49 }
 0x456   : > { %1905 = vmatpush.msrb.mxu2 %v4615_v38 }
 0x458   : > { %1906 = vmatpush.msrb.mxu2 %v4621_v57  ;;  %v2798_v57 = vld [vmem:[%s4862_s4 + $0x1] ss:$0 sm:$0xff] }
 0x45a   : > { %1907 = vmatpush.msrb.mxu2 %v4627_v44 }
 0x45c   : > { %1908 = vmatpush.msrb.mxu2 %v4635_v59 }
 0x45e   : > { %1909 = vmatpush.msrb.mxu2 %v4642_v21 }
 0x460   : > { %1910 = vmatpush.msrb.mxu2 %v4650_v6 }
 0x462   : > { %1911 = vmatpush.msrb.mxu2 %v4658_v13 }
 0x464   : > { %1912 = vmatpush.msrb.mxu2 %v4666_v17 }
 0x466   : > { %1913 = vmatpush.msrb.mxu2 %v4672_v19  ;;  %v2800_v19 = vld [vmem:[%s4862_s4 + $0x1] ss:$0 sm:$0xff] }
 0x468   : > { %1914 = vmatpush.msrb.mxu2 %v4688_v33 }
 0x49f   : > { %v1508_v31 = vpop.f32.mrf.mxu0 }
 0x4a7   : > { %v1528_v37 = vpop.f32.mrf.mxu1 }
 0x4a8   : > { %v1529_v25 = vadd.f32 %v1528_v37, %v1508_v31 }
 0x4aa   : > { %v1535_v0 = vadd.f32 %v2796_v26, %v1529_v25 }
 0x4ab   : > { %v1652_v7 = vpop.f32.mrf.mxu0 }
 0x4ac   : > { %2837 = vtanh.f32 %v1535_v0 }
 0x4ad   : > { %v1632_v56 = vpop.f32.mrf.mxu3 }
 0x4ae   : > { %v1653_v16 = vadd.f32 %v1652_v7, %v1632_v56 }
 0x4b0   : > { %v1659_v60 = vadd.f32 %v2797_v9, %v1653_v16 }
 0x4b2   : > { %v2838_v63 = vpop.eup %2837  ;;  %2839 = vtanh.f32 %v1659_v60 }
 0x4b3   : > { %v2070_v43 = vrot.slane %v2838_v63, 1  ;;  %v2071_v2 = vrot.slane %v2838_v63, 2  ;;  %v2072_v51 = vrot.slane %v2838_v63, 3  ;;  %2084 = vst [vmem:[%s2974_s16 + $0x5] sm:$0x1] %v2838_v63  ;;  %1711 = vmatmul.f32.vlgmr.msra.gmra.mxu1 %v2838_v63  ;;  %v2073_v40 = vrot.slane %v2838_v63, 4 }
 0x4b4   : > { %v2074_v4 = vrot.slane %v2838_v63, 5  ;;  %v2075_v11 = vrot.slane %v2838_v63, 6  ;;  %v2076_v23 = vrot.slane %v2838_v63, 7 }
 0x4b5   : > { %2085 = vst [vmem:[%s2974_s16 + $0xd] sm:$0x1] %v2070_v43  ;;  %v1780_v8 = vpop.f32.mrf.mxu3 }
 0x4b6   : > { %2086 = vst [vmem:[%s2974_s16 + $0x15] sm:$0x1] %v2071_v2  ;;  %v1783_v15 = vadd.f32 %v2689_v28, %v1780_v8 }
 0x4b7   : > { %2087 = vst [vmem:[%s2974_s16 + $0x1d] sm:$0x1] %v2072_v51 }
 0x4b8   : > { %v2840_v36 = vpop.eup %2839  ;;  %2088 = vst [vmem:[%s2974_s16 + $0x25] sm:$0x1] %v2073_v40  ;;  %2841 = vtanh.f32 %v1783_v15 }
 0x4b9   : > { %2089 = vst [vmem:[%s2974_s16 + $0x2d] sm:$0x1] %v2074_v4  ;;  %1731 = vmatmul.f32.vlgmr.msra.gmra.mxu2 %v2840_v36  ;;  %1835 = vmatmul.f32.vlgmr.msrb.gmra.mxu0 %v2840_v36 }
 0x4ba   : > { %2090 = vst [vmem:[%s2974_s16 + $0x35] sm:$0x1] %v2075_v11 }
 0x4bb   : > { %2091 = vst [vmem:[%s2974_s16 + $0x3d] sm:$0x1] %v2076_v23 }
 0x4be   : > { %v2842_v49 = vpop.eup %2841 }
 0x4bf   : > { %1785 = vst [vmem:[#allocation2 + $0x10] sm:$0xff] %v2842_v49  ;;  %1855 = vmatmul.f32.vlgmr.msrb.gmra.mxu1 %v2842_v49 }
 0x530   : > { %v1712_v38 = vpop.f32.mrf.mxu1 }
 0x536   : > { %v1836_v44 = vpop.f32.mrf.mxu0 }
 0x53c   : > { %v1732_v18 = vpop.f32.mrf.mxu2  ;;  %v1856_v41 = vpop.f32.mrf.mxu1 }
 0x53d   : > { %v1733_v55 = vadd.f32 %v1732_v18, %v1712_v38  ;;  %v1857_v58 = vadd.f32 %v1856_v41, %v1836_v44 }
 0x53f   : > { %v1739_v59 = vadd.f32 %v2798_v57, %v1733_v55  ;;  %v1863_v61 = vadd.f32 %v2799_v5, %v1857_v58 }
 0x541   : > { %2843 = vtanh.f32 %v1739_v59 }
 0x542   : > { %2845 = vtanh.f32 %v1863_v61 }
 0x547   : > { %v2844_v1 = vpop.eup %2843 }
 0x548   : > { %v2846_v48 = vpop.eup %2845  ;;  %v2094_v21 = vrot.slane %v2844_v1, 1  ;;  %v2095_v34 = vrot.slane %v2844_v1, 2  ;;  %v2096_v45 = vrot.slane %v2844_v1, 3  ;;  %2108 = vst [vmem:[%s2974_s16 + $0x6] sm:$0x1] %v2844_v1  ;;  %1915 = vmatmul.f32.vlgmr.msrb.gmra.mxu2 %v2844_v1  ;;  %v2097_v53 = vrot.slane %v2844_v1, 4 }
 0x549   : > { %1865 = vst [vmem:[#allocation2] sm:$0xff] %v2846_v48  ;;  %1935 = vmatmul.f32.vlgmr.msrb.gmra.mxu3 %v2846_v48  ;;  %v2098_v6 = vrot.slane %v2844_v1, 5  ;;  %v2099_v13 = vrot.slane %v2844_v1, 6  ;;  %v2100_v14 = vrot.slane %v2844_v1, 7 }
 0x54a   : > { %2109 = vst [vmem:[%s2974_s16 + $0xe] sm:$0x1] %v2094_v21 }
 0x54b   : > { %2110 = vst [vmem:[%s2974_s16 + $0x16] sm:$0x1] %v2095_v34 }
 0x54c   : > { %2111 = vst [vmem:[%s2974_s16 + $0x1e] sm:$0x1] %v2096_v45 }
 0x54d   : > { %2112 = vst [vmem:[%s2974_s16 + $0x26] sm:$0x1] %v2097_v53 }
 0x54e   : > { %2113 = vst [vmem:[%s2974_s16 + $0x2e] sm:$0x1] %v2098_v6 }
 0x54f   : > { %2114 = vst [vmem:[%s2974_s16 + $0x36] sm:$0x1] %v2099_v13 }
 0x550   : > { %2115 = vst [vmem:[%s2974_s16 + $0x3e] sm:$0x1] %v2100_v14 }
 0x5cb   : > { %v1916_v17 = vpop.f32.mrf.mxu2 }
 0x5cc   : > { %v1936_v29 = vpop.f32.mrf.mxu3 }
 0x5cd   : > { %v1937_v32 = vadd.f32 %v1936_v29, %v1916_v17 }
 0x5cf   : > { %v1943_v10 = vadd.f32 %v2800_v19, %v1937_v32 }
 0x5d1   : > { %2847 = vtanh.f32 %v1943_v10 }
 0x5d7   : > { %v2848_v12 = vpop.eup %2847 }
 0x5d8   : > { %1945 = vst [vmem:[#allocation2 + $0x8] sm:$0xff] %v2848_v12  ;;  %v2118_v33 = vrot.slane %v2848_v12, 1  ;;  %v2119_v22 = vrot.slane %v2848_v12, 2  ;;  %v2120_v35 = vrot.slane %v2848_v12, 3  ;;  %v2121_v50 = vrot.slane %v2848_v12, 4 }
 0x5d9   : > { %2132 = vst [vmem:[%s2974_s16 + $0x7] sm:$0x1] %v2848_v12  ;;  %v2122_v52 = vrot.slane %v2848_v12, 5  ;;  %v2123_v30 = vrot.slane %v2848_v12, 6  ;;  %v2124_v20 = vrot.slane %v2848_v12, 7 }
 0x5da   : > { %2133 = vst [vmem:[%s2974_s16 + $0xf] sm:$0x1] %v2118_v33 }
 0x5db   : > { %2134 = vst [vmem:[%s2974_s16 + $0x17] sm:$0x1] %v2119_v22 }
 0x5dc   : > { %2135 = vst [vmem:[%s2974_s16 + $0x1f] sm:$0x1] %v2120_v35  ;;  %2143 = sbr.rel (%p2739_p10) target bundleno = 1509 (0x5e5), region = 48 }
 0x5dd   : > { %2136 = vst [vmem:[%s2974_s16 + $0x27] sm:$0x1] %v2121_v50 }
 0x5de   : > { %2137 = vst [vmem:[%s2974_s16 + $0x2f] sm:$0x1] %v2122_v52 }
 0x5df   : > { %2138 = vst [vmem:[%s2974_s16 + $0x37] sm:$0x1] %v2123_v30 }
 0x5e0   : > { %2139 = vst [vmem:[%s2974_s16 + $0x3f] sm:$0x1] %v2124_v20 }
 0x5e1   : > { %v2144_v62 = vld [vmem:[#allocation2 + $0x10] sm:$0xff]  ;;  %v2145_v3 = vld [vmem:[#allocation2] sm:$0xff]  ;;  %v2146_v27 = vld [vmem:[#allocation2 + $0x8] sm:$0xff] }
 0x5e2   : > { %2147 = vst [vmem:[%s4864_s6] sm:$0xff] %v2144_v62 }
 0x5e3   : > { %2148 = vst [vmem:[%s4864_s6 + $0x8] sm:$0xff] %v2145_v3 }
 0x5e4   : > { %2149 = vst [vmem:[%s4864_s6 + $0x10] sm:$0xff] %v2146_v27 }
 0x5e5 PF: > { %2160 = sbr.rel (!%p2953_p3) target bundleno = 1518 (0x5ee), region = 52  ;;  %s2165_s28 = scalar_lea.vmem (%p2953_p3), %s4863_s5, %s2965_s9  ;;  %v2208_v39 = vld [vmem:[%s2974_s16] sm:$0xff] (%p2953_p3)  ;;  %v2210_v54 = vld [vmem:[%s2974_s16 + $0x8] sm:$0xff] (%p2953_p3) }
 0x5e6   : > { %v2212_v47 = vld [vmem:[%s2974_s16 + $0x10] sm:$0xff] (%p2953_p3)  ;;  %2209 = vst [vmem:[%s2165_s28] sm:$0xff] (%p2953_p3), %v2208_v39 }
 0x5e7   : > { %v2214_v42 = vld [vmem:[%s2974_s16 + $0x18] sm:$0xff] (%p2953_p3)  ;;  %2211 = vst [vmem:[%s2165_s28 + $0x28] sm:$0xff] (%p2953_p3), %v2210_v54 }
 0x5e8   : > { %v2216_v46 = vld [vmem:[%s2974_s16 + $0x20] sm:$0xff] (%p2953_p3)  ;;  %2213 = vst [vmem:[%s2165_s28 + $0x50] sm:$0xff] (%p2953_p3), %v2212_v47 }
 0x5e9   : > { %v2218_v24 = vld [vmem:[%s2974_s16 + $0x28] sm:$0xff] (%p2953_p3)  ;;  %2215 = vst [vmem:[%s2165_s28 + $0x78] sm:$0xff] (%p2953_p3), %v2214_v42 }
 0x5ea   : > { %v2220_v31 = vld [vmem:[%s2974_s16 + $0x30] sm:$0xff]  ;;  %2217 = vst [vmem:[%s2165_s28 + $0xa0] sm:$0xff] %v2216_v46 }
 0x5eb   : > { %v2222_v26 = vld [vmem:[%s2974_s16 + $0x38] sm:$0xff]  ;;  %2219 = vst [vmem:[%s2165_s28 + $0xc8] sm:$0xff] %v2218_v24 }
 0x5ec   : > { %2221 = vst [vmem:[%s2165_s28 + $0xf0] sm:$0xff] %v2220_v31 }
 0x5ed   : > { %2223 = vst [vmem:[%s2165_s28 + $0x118] sm:$0xff] %v2222_v26 }
 0x5ee PF: > { %s17_s25 = sadd.s32 1, %s2887_s25   ;;  %s5006_s21 = smov %s2875_s22 }
 0x5ef   : > { %p14_p11 = scmp.ge.s32.totalorder %s17_s25, 7   ;;  %s5007_s22 = smov %s2962_s7 }
 0x5f0   : > { %s5008_s23 = smov %s2883_s24  ;;  %s5009_s24 = smov %s5011_s27 }
 0x5f1   :  { %16 = sbr.rel (!%p14_p11) target bundleno = 3 (0x3), region = 151 }

</bundles_post_ra>
